<compile_context>
chip_gen: v6e
topology: v6e:2x2x1
jax: 0.10.0
libtpu: 0.0.40
codegen_flags: <defaults>
</compile_context>

<pallas_src>
import numpy as np
import jax
import jax.numpy as jnp
from jax.experimental import pallas as pl
from jax.experimental.pallas import tpu as pltpu

# ----------------------------- configuration --------------------------------
B = 2
IMG_CH = 3                  # module adds +1 mask channel internally
IMG_CH1 = IMG_CH + 1        # fromrgb input channels
TMP_CH = 8
OUT_CH = 8                  # kept equal to TMP_CH (lets all biases pack into one array)
RES = 16
RES2 = RES // 2

ACT_GAIN = float(np.sqrt(2.0))          # bias_act def_gain for 'lrelu'
LRELU_SLOPE = 0.2
FROMRGB_GAIN = 1.0 / float(np.sqrt(IMG_CH1 * 1 * 1))
CONV_GAIN = 1.0 / float(np.sqrt(TMP_CH * 3 * 3))

# upfirdn2d.setup_filter([1,3,3,1]): outer product normalized to sum 1.  The filter is
# symmetric, so the flip inside upfirdn2d is a no-op.
_f1 = np.array([1.0, 3.0, 3.0, 1.0], np.float64)
FIR_2D = np.outer(_f1, _f1)
FIR_2D = (FIR_2D / FIR_2D.sum()).astype(np.float32)

# Padded flattened spatial layout used inside the kernel: each (16,16) map is embedded in a
# zero-padded (21,21) cell (pad top/left 2, bottom/right 3 -- covers every tap offset used),
# batch-major, flattened onto the lane axis: flat = b*HP*WP + (i+PAD_T)*WP + (j+PAD_L).
PAD_T, PAD_B2, PAD_L, PAD_R = 2, 3, 2, 3
HP = RES + PAD_T + PAD_B2
WP = RES + PAD_L + PAD_R
NPOS = B * HP * WP                      # padded-flat positions (lane axis)
NOUT = B * RES2 * RES2                  # stride-2 output positions
MARGIN = 128                            # lane margin so every shifted read is in-bounds
NBUF = NPOS + 2 * MARGIN


# ----------------------------- host-side constants --------------------------
def _build_selection_and_valid():
    """0/1 selection matrix implementing the stride-2 subsample as a matmul, and the
    'real pixel' mask for the padded-flat layout."""
    sel = np.zeros((NPOS, NOUT), np.float32)
    valid = np.zeros((1, NPOS), np.float32)
    for b in range(B):
        for i in range(RES):
            for j in range(RES):
                n = b * HP * WP + (i + PAD_T) * WP + (j + PAD_L)
                valid[0, n] = 1.0
                if i % 2 == 0 and j % 2 == 0:
                    sel[n, b * RES2 * RES2 + (i // 2) * RES2 + (j // 2)] = 1.0
    return sel, valid


_SEL_NP, _VALID_NP = _build_selection_and_valid()


def init_params(key):
    """Parameters mirroring EncoderBlock.__init__ (weights ~ randn).  Biases are zeros in
    the module __init__; small random values are used here so the bias path is exercised."""
    ks = jax.random.split(key, 6)
    return {
        "fromrgb_w": jax.random.normal(ks[0], (TMP_CH, IMG_CH1, 1, 1), jnp.float32),
        "fromrgb_b": 0.1 * jax.random.normal(ks[1], (TMP_CH,), jnp.float32),
        "conv0_w": jax.random.normal(ks[2], (TMP_CH, TMP_CH, 3, 3), jnp.float32),
        "conv0_b": 0.1 * jax.random.normal(ks[3], (TMP_CH,), jnp.float32),
        "conv1_w": jax.random.normal(ks[4], (OUT_CH, TMP_CH, 3, 3), jnp.float32),
        "conv1_b": 0.1 * jax.random.normal(ks[5], (OUT_CH,), jnp.float32),
    }


# ----------------------------- the fused Pallas kernel ----------------------
def _lrelu_bias(v, b_col):
    v = v + b_col
    return jnp.where(v >= 0.0, v, LRELU_SLOPE * v) * ACT_GAIN


def _encoder_block_kernel(img_ref, wrgb_ref, w0_ref, w1_ref, bias_ref, sel_ref,
                          valid_ref, feat_ref, x_ref, imgds_ref, buf_ref):
    f32 = jnp.float32
    bf16 = jnp.bfloat16
    valid = valid_ref[...]                                   # (1, NPOS): 1.0 on real pixels

    def shifted(ref, d):
        # ref holds a padded-flat feature map at lane offset MARGIN; returns value[n] =
        # map[n + d].  Zero padding/margins supply the conv zero-extension.
        return ref[:, pl.ds(MARGIN + d, NPOS)]

    # ---- fromrgb : 1x1 conv + bias + lrelu*sqrt(2) --------------------------------------
    img_c = img_ref[:, pl.ds(MARGIN, NPOS)]                  # (IMG_CH1, NPOS) f32
    y = jnp.dot(wrgb_ref[...], img_c.astype(bf16), preferred_element_type=f32)
    y = _lrelu_bias(y, bias_ref[:, 0:1]) * valid             # re-zero padding cells

    buf_ref[...] = jnp.zeros((TMP_CH, NBUF), f32)            # zero margins + padding once
    buf_ref[:, pl.ds(MARGIN, NPOS)] = y

    # ---- conv0 : 3x3 (pad 1) + bias + lrelu*sqrt(2)   (this is also `feat`) -------------
    p0 = jnp.concatenate([shifted(buf_ref, (u - 1) * WP + (v - 1))
                          for u in range(3) for v in range(3)], axis=0)      # (9*TMP_CH, NPOS)
    x0 = jnp.dot(w0_ref[...], p0.astype(bf16), preferred_element_type=f32)
    x0 = _lrelu_bias(x0, bias_ref[:, 1:2]) * valid
    feat_ref[...] = x0

    # ---- conv1 : FIR([1,3,3,1]) blur (pad 2) -> 3x3 stride-2 conv -> bias + lrelu -------
    # (conv2d_resample down=2 fast path).  Blur and the 3x3 conv are evaluated densely at
    # every padded-flat position; the stride-2 subsample is the selection matmul below.
    buf_ref[:, pl.ds(MARGIN, NPOS)] = x0
    t = None
    for a in range(4):
        for e in range(4):
            term = float(FIR_2D[a, e]) * shifted(buf_ref, (a - 2) * WP + (e - 2))
            t = term if t is None else t + term              # (TMP_CH, NPOS) f32
    buf_ref[:, pl.ds(MARGIN, NPOS)] = t
    p1 = jnp.concatenate([shifted(buf_ref, u * WP + v)
                          for u in range(3) for v in range(3)], axis=0)      # (9*TMP_CH, NPOS)
    d1 = jnp.dot(w1_ref[...], p1.astype(bf16), preferred_element_type=f32)   # (OUT_CH, NPOS)
    x1 = jnp.dot(d1, sel_ref[...], preferred_element_type=f32)               # (OUT_CH, NOUT)
    x_ref[...] = _lrelu_bias(x1, bias_ref[:, 2:3])

    # ---- img skip : downsample2d(img, f) = 4x4 FIR blur (pad 1) + stride-2 --------------
    dd = None
    for a in range(4):
        for e in range(4):
            term = float(FIR_2D[a, e]) * shifted(img_ref, (a - 1) * WP + (e - 1))
            dd = term if dd is None else dd + term           # (IMG_CH1, NPOS) f32
    imgds_ref[...] = jnp.dot(dd, sel_ref[...], preferred_element_type=f32)


# ----------------------------- wrapper (layout plumbing only) ---------------
def encoder_block_forward(params, img):
    """EncoderBlock.forward with x=None, in_channels=0, architecture='skip'.
    img: (B, img_channels+1, RES, RES) float32.  Returns (x, img, feat)."""
    f32, bf16 = jnp.float32, jnp.bfloat16
    assert img.shape == (B, IMG_CH1, RES, RES)
    assert OUT_CH == TMP_CH  # required by the packed-bias layout below

    # fold weight gains, reshape to (C_out, 9*C_in) matching the in-kernel tap order, bf16
    def pack3x3(w):
        return jnp.transpose(w * CONV_GAIN, (0, 2, 3, 1)).reshape(w.shape[0], -1).astype(bf16)

    wrgb = (params["fromrgb_w"][:, :, 0, 0] * FROMRGB_GAIN).astype(bf16)     # (TMP_CH, IMG_CH1)
    w0 = pack3x3(params["conv0_w"])                                          # (TMP_CH, 9*TMP_CH)
    w1 = pack3x3(params["conv1_w"])                                          # (OUT_CH, 9*TMP_CH)
    biases = jnp.stack([params["fromrgb_b"], params["conv0_b"], params["conv1_b"]],
                       axis=1).astype(f32)                                   # (TMP_CH, 3)

    # img -> channel-major, zero-padded 21x21 cells, flattened onto lanes, zero lane margins
    imgp = jnp.pad(img.astype(f32), ((0, 0), (0, 0), (PAD_T, PAD_B2), (PAD_L, PAD_R)))
    img_flat = jnp.transpose(imgp, (1, 0, 2, 3)).reshape(IMG_CH1, NPOS)
    img_buf = jnp.pad(img_flat, ((0, 0), (MARGIN, MARGIN)))                  # (IMG_CH1, NBUF)

    sel = jnp.asarray(_SEL_NP)      # (NPOS, NOUT) constant 0/1 stride-2 gather
    valid = jnp.asarray(_VALID_NP)  # (1, NPOS)   constant real-pixel mask

    feat_flat, x_flat, imgds_flat = pl.pallas_call(
        _encoder_block_kernel,
        out_shape=(
            jax.ShapeDtypeStruct((TMP_CH, NPOS), f32),    # feat (conv0 output, padded-flat)
            jax.ShapeDtypeStruct((OUT_CH, NOUT), f32),    # x    (conv1 output)
            jax.ShapeDtypeStruct((IMG_CH1, NOUT), f32),   # img  (downsampled skip image)
        ),
        scratch_shapes=[pltpu.VMEM((TMP_CH, NBUF), f32)],
    )(img_buf, wrgb, w0, w1, biases, sel, valid)

    # unpack to NCHW (wrapper-side reshape/transpose only)
    feat = feat_flat.reshape(TMP_CH, B, HP, WP)[:, :, PAD_T:PAD_T + RES, PAD_L:PAD_L + RES]
    feat = jnp.transpose(feat, (1, 0, 2, 3))
    x = jnp.transpose(x_flat.reshape(OUT_CH, B, RES2, RES2), (1, 0, 2, 3))
    img_ds = jnp.transpose(imgds_flat.reshape(IMG_CH1, B, RES2, RES2), (1, 0, 2, 3))
    return x, img_ds, feat


# ----------------------------- pure-XLA reference ---------------------------
def reference_forward(params, img):
    """Reference mirroring EncoderBlock.forward.  Conv operands are rounded to bf16
    (f32 accumulation) exactly like the kernel's MXU inputs, so agreement is tight."""
    f32 = jnp.float32
    dn = ("NCHW", "OIHW", "NCHW")
    hp = jax.lax.Precision.HIGHEST

    def rnd(a):
        return a.astype(jnp.bfloat16).astype(f32)

    def lrelu(v, b):
        v = v + b[None, :, None, None]
        return jnp.where(v >= 0.0, v, LRELU_SLOPE * v) * ACT_GAIN

    f2 = jnp.asarray(FIR_2D, f32)

    wrgb = rnd(params["fromrgb_w"] * FROMRGB_GAIN)
    y = jax.lax.conv_general_dilated(rnd(img), wrgb, (1, 1), "VALID",
                                     dimension_numbers=dn, precision=hp)
    y = lrelu(y, params["fromrgb_b"])

    w0 = rnd(params["conv0_w"] * CONV_GAIN)
    x0 = jax.lax.conv_general_dilated(rnd(y), w0, (1, 1), ((1, 1), (1, 1)),
                                      dimension_numbers=dn, precision=hp)
    x0 = lrelu(x0, params["conv0_b"])
    feat = x0

    fdw = jnp.tile(f2[None, None], (TMP_CH, 1, 1, 1))
    t = jax.lax.conv_general_dilated(x0, fdw, (1, 1), ((2, 2), (2, 2)),
                                     feature_group_count=TMP_CH,
                                     dimension_numbers=dn, precision=hp)
    w1 = rnd(params["conv1_w"] * CONV_GAIN)
    x1 = jax.lax.conv_general_dilated(rnd(t), w1, (2, 2), "VALID",
                                      dimension_numbers=dn, precision=hp)
    x1 = lrelu(x1, params["conv1_b"])

    fdwi = jnp.tile(f2[None, None], (IMG_CH1, 1, 1, 1))
    img_ds = jax.lax.conv_general_dilated(img.astype(f32), fdwi, (2, 2), ((1, 1), (1, 1)),
                                          feature_group_count=IMG_CH1,
                                          dimension_numbers=dn, precision=hp)
    return x1, img_ds, feat


# ----------------------------- main ------------------------------------------
if __name__ == "__main__":
    key = jax.random.PRNGKey(0)
    kp, ki = jax.random.split(key)
    params = init_params(kp)
    # LaMa feeds RGB + mask => img_channels + 1 = 4 input channels; first block gets x=None.
    img = jax.random.normal(ki, (B, IMG_CH1, RES, RES), jnp.float32)

    fwd = jax.jit(encoder_block_forward)
    x, img_ds, feat = fwd(params, img)
    jax.block_until_ready((x, img_ds, feat))

    # module forward contract
    assert x.shape == (B, OUT_CH, RES2, RES2) and x.dtype == jnp.float32
    assert img_ds.shape == (B, IMG_CH1, RES2, RES2) and img_ds.dtype == jnp.float32
    assert feat.shape == (B, TMP_CH, RES, RES) and feat.dtype == jnp.float32
    assert bool(jnp.all(jnp.isfinite(x)))
    assert bool(jnp.all(jnp.isfinite(img_ds)))
    assert bool(jnp.all(jnp.isfinite(feat)))

    # numerical check against the plain-XLA reference (bf16 MXU-operand rounding mirrored)
    xr, imgr, featr = reference_forward(params, img)
    np.testing.assert_allclose(np.asarray(x), np.asarray(xr), rtol=3e-2, atol=3e-2)
    np.testing.assert_allclose(np.asarray(feat), np.asarray(featr), rtol=3e-2, atol=3e-2)
    np.testing.assert_allclose(np.asarray(img_ds), np.asarray(imgr), rtol=3e-2, atol=3e-2)

    print("KERNEL_OK")
</pallas_src>

<mosaic_0001>
module attributes {stable_mosaic.version = 11 : i64} {
  func.func @_encoder_block_kernel(%arg0: memref<4x1138xf32, #tpu.memory_space<vmem>>, %arg1: memref<8x4xbf16, #tpu.memory_space<vmem>>, %arg2: memref<8x72xbf16, #tpu.memory_space<vmem>>, %arg3: memref<8x72xbf16, #tpu.memory_space<vmem>>, %arg4: memref<8x3xf32, #tpu.memory_space<vmem>>, %arg5: memref<882x128xf32, #tpu.memory_space<vmem>>, %arg6: memref<1x882xf32, #tpu.memory_space<vmem>>, %arg7: memref<8x882xf32, #tpu.memory_space<vmem>>, %arg8: memref<8x128xf32, #tpu.memory_space<vmem>>, %arg9: memref<4x128xf32, #tpu.memory_space<vmem>>, %arg10: memref<8x1138xf32, #tpu.memory_space<vmem>>) attributes {dimension_semantics = [], scalar_prefetch = 0 : i64, scratch_operands = 1 : i64, tpu.core_type = #tpu.core_type<tc>} {
    %c0 = arith.constant 0 : index
    %c0_0 = arith.constant 0 : index
    %0 = vector.load %arg6[%c0, %c0_0] : memref<1x882xf32, #tpu.memory_space<vmem>>, vector<1x882xf32>
    %c0_1 = arith.constant 0 : index
    %c128 = arith.constant 128 : index
    %1 = vector.load %arg0[%c0_1, %c128] : memref<4x1138xf32, #tpu.memory_space<vmem>>, vector<4x882xf32>
    %c0_2 = arith.constant 0 : index
    %c0_3 = arith.constant 0 : index
    %2 = vector.load %arg1[%c0_2, %c0_3] : memref<8x4xbf16, #tpu.memory_space<vmem>>, vector<8x4xbf16>
    %3 = arith.truncf %1 : vector<4x882xf32> to vector<4x882xbf16>
    %cst = arith.constant dense<0.000000e+00> : vector<8x882xf32>
    %4 = tpu.matmul %2, %3, %cst {dimension_numbers = #tpu.dot_dimension_numbers<[1], [0], [0], [1], [0, 0, 1, 1], [], []>} : vector<8x4xbf16>, vector<4x882xbf16>, vector<8x882xf32> -> vector<8x882xf32>
    %c0_4 = arith.constant 0 : index
    %c0_5 = arith.constant 0 : index
    %5 = vector.load %arg4[%c0_4, %c0_5] : memref<8x3xf32, #tpu.memory_space<vmem>>, vector<8x1xf32>
    %6 = vector.broadcast %5 : vector<8x1xf32> to vector<8x882xf32>
    %7 = arith.addf %4, %6 : vector<8x882xf32>
    %cst_6 = arith.constant 0.000000e+00 : f32
    %8 = vector.broadcast %cst_6 : f32 to vector<8x882xf32>
    %9 = arith.cmpf oge, %7, %8 : vector<8x882xf32>
    %cst_7 = arith.constant 2.000000e-01 : f32
    %10 = vector.broadcast %cst_7 : f32 to vector<8x882xf32>
    %11 = arith.mulf %10, %7 : vector<8x882xf32>
    %12 = arith.select %9, %7, %11 : vector<8x882xi1>, vector<8x882xf32>
    %cst_8 = arith.constant 1.41421354 : f32
    %13 = vector.broadcast %cst_8 : f32 to vector<8x882xf32>
    %14 = arith.mulf %12, %13 : vector<8x882xf32>
    %15 = vector.broadcast %0 : vector<1x882xf32> to vector<8x882xf32>
    %16 = arith.mulf %14, %15 : vector<8x882xf32>
    %cst_9 = arith.constant 0.000000e+00 : f32
    %17 = vector.broadcast %cst_9 : f32 to vector<8x1138xf32>
    %c0_10 = arith.constant 0 : index
    %c0_11 = arith.constant 0 : index
    %18 = vector.load %arg10[%c0_10, %c0_11] : memref<8x1138xf32, #tpu.memory_space<vmem>>, vector<8x1138xf32>
    tpu.vector_store %arg10[%c0_10, %c0_11], %17 {strides = array<i32>} : memref<8x1138xf32, #tpu.memory_space<vmem>>, vector<8x1138xf32>,
    %c0_12 = arith.constant 0 : index
    %c128_13 = arith.constant 128 : index
    %19 = vector.load %arg10[%c0_12, %c128_13] : memref<8x1138xf32, #tpu.memory_space<vmem>>, vector<8x882xf32>
    tpu.vector_store %arg10[%c0_12, %c128_13], %16 {strides = array<i32>} : memref<8x1138xf32, #tpu.memory_space<vmem>>, vector<8x882xf32>,
    %c0_14 = arith.constant 0 : index
    %c106 = arith.constant 106 : index
    %20 = vector.load %arg10[%c0_14, %c106] : memref<8x1138xf32, #tpu.memory_space<vmem>>, vector<8x882xf32>
    %c0_15 = arith.constant 0 : index
    %c107 = arith.constant 107 : index
    %21 = vector.load %arg10[%c0_15, %c107] : memref<8x1138xf32, #tpu.memory_space<vmem>>, vector<8x882xf32>
    %c0_16 = arith.constant 0 : index
    %c108 = arith.constant 108 : index
    %22 = vector.load %arg10[%c0_16, %c108] : memref<8x1138xf32, #tpu.memory_space<vmem>>, vector<8x882xf32>
    %c0_17 = arith.constant 0 : index
    %c127 = arith.constant 127 : index
    %23 = vector.load %arg10[%c0_17, %c127] : memref<8x1138xf32, #tpu.memory_space<vmem>>, vector<8x882xf32>
    %c0_18 = arith.constant 0 : index
    %c128_19 = arith.constant 128 : index
    %24 = vector.load %arg10[%c0_18, %c128_19] : memref<8x1138xf32, #tpu.memory_space<vmem>>, vector<8x882xf32>
    %c0_20 = arith.constant 0 : index
    %c129 = arith.constant 129 : index
    %25 = vector.load %arg10[%c0_20, %c129] : memref<8x1138xf32, #tpu.memory_space<vmem>>, vector<8x882xf32>
    %c0_21 = arith.constant 0 : index
    %c148 = arith.constant 148 : index
    %26 = vector.load %arg10[%c0_21, %c148] : memref<8x1138xf32, #tpu.memory_space<vmem>>, vector<8x882xf32>
    %c0_22 = arith.constant 0 : index
    %c149 = arith.constant 149 : index
    %27 = vector.load %arg10[%c0_22, %c149] : memref<8x1138xf32, #tpu.memory_space<vmem>>, vector<8x882xf32>
    %c0_23 = arith.constant 0 : index
    %c150 = arith.constant 150 : index
    %28 = vector.load %arg10[%c0_23, %c150] : memref<8x1138xf32, #tpu.memory_space<vmem>>, vector<8x882xf32>
    %29 = tpu.concatenate %20, %21, %22, %23, %24, %25, %26, %27, %28 in 0 : vector<8x882xf32>, vector<8x882xf32>, vector<8x882xf32>, vector<8x882xf32>, vector<8x882xf32>, vector<8x882xf32>, vector<8x882xf32>, vector<8x882xf32>, vector<8x882xf32> -> vector<72x882xf32>
    %c0_24 = arith.constant 0 : index
    %c0_25 = arith.constant 0 : index
    %30 = vector.load %arg2[%c0_24, %c0_25] : memref<8x72xbf16, #tpu.memory_space<vmem>>, vector<8x72xbf16>
    %31 = arith.truncf %29 : vector<72x882xf32> to vector<72x882xbf16>
    %cst_26 = arith.constant dense<0.000000e+00> : vector<8x882xf32>
    %32 = tpu.matmul %30, %31, %cst_26 {dimension_numbers = #tpu.dot_dimension_numbers<[1], [0], [0], [1], [0, 0, 1, 1], [], []>} : vector<8x72xbf16>, vector<72x882xbf16>, vector<8x882xf32> -> vector<8x882xf32>
    %c0_27 = arith.constant 0 : index
    %c1 = arith.constant 1 : index
    %33 = vector.load %arg4[%c0_27, %c1] : memref<8x3xf32, #tpu.memory_space<vmem>>, vector<8x1xf32>
    %34 = vector.broadcast %33 : vector<8x1xf32> to vector<8x882xf32>
    %35 = arith.addf %32, %34 : vector<8x882xf32>
    %cst_28 = arith.constant 0.000000e+00 : f32
    %36 = vector.broadcast %cst_28 : f32 to vector<8x882xf32>
    %37 = arith.cmpf oge, %35, %36 : vector<8x882xf32>
    %cst_29 = arith.constant 2.000000e-01 : f32
    %38 = vector.broadcast %cst_29 : f32 to vector<8x882xf32>
    %39 = arith.mulf %38, %35 : vector<8x882xf32>
    %40 = arith.select %37, %35, %39 : vector<8x882xi1>, vector<8x882xf32>
    %cst_30 = arith.constant 1.41421354 : f32
    %41 = vector.broadcast %cst_30 : f32 to vector<8x882xf32>
    %42 = arith.mulf %40, %41 : vector<8x882xf32>
    %43 = vector.broadcast %0 : vector<1x882xf32> to vector<8x882xf32>
    %44 = arith.mulf %42, %43 : vector<8x882xf32>
    %c0_31 = arith.constant 0 : index
    %c0_32 = arith.constant 0 : index
    %45 = vector.load %arg7[%c0_31, %c0_32] : memref<8x882xf32, #tpu.memory_space<vmem>>, vector<8x882xf32>
    tpu.vector_store %arg7[%c0_31, %c0_32], %44 {strides = array<i32>} : memref<8x882xf32, #tpu.memory_space<vmem>>, vector<8x882xf32>,
    %c0_33 = arith.constant 0 : index
    %c128_34 = arith.constant 128 : index
    %46 = vector.load %arg10[%c0_33, %c128_34] : memref<8x1138xf32, #tpu.memory_space<vmem>>, vector<8x882xf32>
    tpu.vector_store %arg10[%c0_33, %c128_34], %44 {strides = array<i32>} : memref<8x1138xf32, #tpu.memory_space<vmem>>, vector<8x882xf32>,
    %c0_35 = arith.constant 0 : index
    %c84 = arith.constant 84 : index
    %47 = vector.load %arg10[%c0_35, %c84] : memref<8x1138xf32, #tpu.memory_space<vmem>>, vector<8x882xf32>
    %cst_36 = arith.constant 1.562500e-02 : f32
    %48 = vector.broadcast %cst_36 : f32 to vector<8x882xf32>
    %49 = arith.mulf %48, %47 : vector<8x882xf32>
    %c0_37 = arith.constant 0 : index
    %c85 = arith.constant 85 : index
    %50 = vector.load %arg10[%c0_37, %c85] : memref<8x1138xf32, #tpu.memory_space<vmem>>, vector<8x882xf32>
    %cst_38 = arith.constant 4.687500e-02 : f32
    %51 = vector.broadcast %cst_38 : f32 to vector<8x882xf32>
    %52 = arith.mulf %51, %50 : vector<8x882xf32>
    %53 = arith.addf %49, %52 : vector<8x882xf32>
    %c0_39 = arith.constant 0 : index
    %c86 = arith.constant 86 : index
    %54 = vector.load %arg10[%c0_39, %c86] : memref<8x1138xf32, #tpu.memory_space<vmem>>, vector<8x882xf32>
    %cst_40 = arith.constant 4.687500e-02 : f32
    %55 = vector.broadcast %cst_40 : f32 to vector<8x882xf32>
    %56 = arith.mulf %55, %54 : vector<8x882xf32>
    %57 = arith.addf %53, %56 : vector<8x882xf32>
    %c0_41 = arith.constant 0 : index
    %c87 = arith.constant 87 : index
    %58 = vector.load %arg10[%c0_41, %c87] : memref<8x1138xf32, #tpu.memory_space<vmem>>, vector<8x882xf32>
    %cst_42 = arith.constant 1.562500e-02 : f32
    %59 = vector.broadcast %cst_42 : f32 to vector<8x882xf32>
    %60 = arith.mulf %59, %58 : vector<8x882xf32>
    %61 = arith.addf %57, %60 : vector<8x882xf32>
    %c0_43 = arith.constant 0 : index
    %c105 = arith.constant 105 : index
    %62 = vector.load %arg10[%c0_43, %c105] : memref<8x1138xf32, #tpu.memory_space<vmem>>, vector<8x882xf32>
    %cst_44 = arith.constant 4.687500e-02 : f32
    %63 = vector.broadcast %cst_44 : f32 to vector<8x882xf32>
    %64 = arith.mulf %63, %62 : vector<8x882xf32>
    %65 = arith.addf %61, %64 : vector<8x882xf32>
    %c0_45 = arith.constant 0 : index
    %c106_46 = arith.constant 106 : index
    %66 = vector.load %arg10[%c0_45, %c106_46] : memref<8x1138xf32, #tpu.memory_space<vmem>>, vector<8x882xf32>
    %cst_47 = arith.constant 1.406250e-01 : f32
    %67 = vector.broadcast %cst_47 : f32 to vector<8x882xf32>
    %68 = arith.mulf %67, %66 : vector<8x882xf32>
    %69 = arith.addf %65, %68 : vector<8x882xf32>
    %c0_48 = arith.constant 0 : index
    %c107_49 = arith.constant 107 : index
    %70 = vector.load %arg10[%c0_48, %c107_49] : memref<8x1138xf32, #tpu.memory_space<vmem>>, vector<8x882xf32>
    %cst_50 = arith.constant 1.406250e-01 : f32
    %71 = vector.broadcast %cst_50 : f32 to vector<8x882xf32>
    %72 = arith.mulf %71, %70 : vector<8x882xf32>
    %73 = arith.addf %69, %72 : vector<8x882xf32>
    %c0_51 = arith.constant 0 : index
    %c108_52 = arith.constant 108 : index
    %74 = vector.load %arg10[%c0_51, %c108_52] : memref<8x1138xf32, #tpu.memory_space<vmem>>, vector<8x882xf32>
    %cst_53 = arith.constant 4.687500e-02 : f32
    %75 = vector.broadcast %cst_53 : f32 to vector<8x882xf32>
    %76 = arith.mulf %75, %74 : vector<8x882xf32>
    %77 = arith.addf %73, %76 : vector<8x882xf32>
    %c0_54 = arith.constant 0 : index
    %c126 = arith.constant 126 : index
    %78 = vector.load %arg10[%c0_54, %c126] : memref<8x1138xf32, #tpu.memory_space<vmem>>, vector<8x882xf32>
    %cst_55 = arith.constant 4.687500e-02 : f32
    %79 = vector.broadcast %cst_55 : f32 to vector<8x882xf32>
    %80 = arith.mulf %79, %78 : vector<8x882xf32>
    %81 = arith.addf %77, %80 : vector<8x882xf32>
    %c0_56 = arith.constant 0 : index
    %c127_57 = arith.constant 127 : index
    %82 = vector.load %arg10[%c0_56, %c127_57] : memref<8x1138xf32, #tpu.memory_space<vmem>>, vector<8x882xf32>
    %cst_58 = arith.constant 1.406250e-01 : f32
    %83 = vector.broadcast %cst_58 : f32 to vector<8x882xf32>
    %84 = arith.mulf %83, %82 : vector<8x882xf32>
    %85 = arith.addf %81, %84 : vector<8x882xf32>
    %c0_59 = arith.constant 0 : index
    %c128_60 = arith.constant 128 : index
    %86 = vector.load %arg10[%c0_59, %c128_60] : memref<8x1138xf32, #tpu.memory_space<vmem>>, vector<8x882xf32>
    %cst_61 = arith.constant 1.406250e-01 : f32
    %87 = vector.broadcast %cst_61 : f32 to vector<8x882xf32>
    %88 = arith.mulf %87, %86 : vector<8x882xf32>
    %89 = arith.addf %85, %88 : vector<8x882xf32>
    %c0_62 = arith.constant 0 : index
    %c129_63 = arith.constant 129 : index
    %90 = vector.load %arg10[%c0_62, %c129_63] : memref<8x1138xf32, #tpu.memory_space<vmem>>, vector<8x882xf32>
    %cst_64 = arith.constant 4.687500e-02 : f32
    %91 = vector.broadcast %cst_64 : f32 to vector<8x882xf32>
    %92 = arith.mulf %91, %90 : vector<8x882xf32>
    %93 = arith.addf %89, %92 : vector<8x882xf32>
    %c0_65 = arith.constant 0 : index
    %c147 = arith.constant 147 : index
    %94 = vector.load %arg10[%c0_65, %c147] : memref<8x1138xf32, #tpu.memory_space<vmem>>, vector<8x882xf32>
    %cst_66 = arith.constant 1.562500e-02 : f32
    %95 = vector.broadcast %cst_66 : f32 to vector<8x882xf32>
    %96 = arith.mulf %95, %94 : vector<8x882xf32>
    %97 = arith.addf %93, %96 : vector<8x882xf32>
    %c0_67 = arith.constant 0 : index
    %c148_68 = arith.constant 148 : index
    %98 = vector.load %arg10[%c0_67, %c148_68] : memref<8x1138xf32, #tpu.memory_space<vmem>>, vector<8x882xf32>
    %cst_69 = arith.constant 4.687500e-02 : f32
    %99 = vector.broadcast %cst_69 : f32 to vector<8x882xf32>
    %100 = arith.mulf %99, %98 : vector<8x882xf32>
    %101 = arith.addf %97, %100 : vector<8x882xf32>
    %c0_70 = arith.constant 0 : index
    %c149_71 = arith.constant 149 : index
    %102 = vector.load %arg10[%c0_70, %c149_71] : memref<8x1138xf32, #tpu.memory_space<vmem>>, vector<8x882xf32>
    %cst_72 = arith.constant 4.687500e-02 : f32
    %103 = vector.broadcast %cst_72 : f32 to vector<8x882xf32>
    %104 = arith.mulf %103, %102 : vector<8x882xf32>
    %105 = arith.addf %101, %104 : vector<8x882xf32>
    %c0_73 = arith.constant 0 : index
    %c150_74 = arith.constant 150 : index
    %106 = vector.load %arg10[%c0_73, %c150_74] : memref<8x1138xf32, #tpu.memory_space<vmem>>, vector<8x882xf32>
    %cst_75 = arith.constant 1.562500e-02 : f32
    %107 = vector.broadcast %cst_75 : f32 to vector<8x882xf32>
    %108 = arith.mulf %107, %106 : vector<8x882xf32>
    %109 = arith.addf %105, %108 : vector<8x882xf32>
    %c0_76 = arith.constant 0 : index
    %c128_77 = arith.constant 128 : index
    %110 = vector.load %arg10[%c0_76, %c128_77] : memref<8x1138xf32, #tpu.memory_space<vmem>>, vector<8x882xf32>
    tpu.vector_store %arg10[%c0_76, %c128_77], %109 {strides = array<i32>} : memref<8x1138xf32, #tpu.memory_space<vmem>>, vector<8x882xf32>,
    %c0_78 = arith.constant 0 : index
    %c128_79 = arith.constant 128 : index
    %111 = vector.load %arg10[%c0_78, %c128_79] : memref<8x1138xf32, #tpu.memory_space<vmem>>, vector<8x882xf32>
    %c0_80 = arith.constant 0 : index
    %c129_81 = arith.constant 129 : index
    %112 = vector.load %arg10[%c0_80, %c129_81] : memref<8x1138xf32, #tpu.memory_space<vmem>>, vector<8x882xf32>
    %c0_82 = arith.constant 0 : index
    %c130 = arith.constant 130 : index
    %113 = vector.load %arg10[%c0_82, %c130] : memref<8x1138xf32, #tpu.memory_space<vmem>>, vector<8x882xf32>
    %c0_83 = arith.constant 0 : index
    %c149_84 = arith.constant 149 : index
    %114 = vector.load %arg10[%c0_83, %c149_84] : memref<8x1138xf32, #tpu.memory_space<vmem>>, vector<8x882xf32>
    %c0_85 = arith.constant 0 : index
    %c150_86 = arith.constant 150 : index
    %115 = vector.load %arg10[%c0_85, %c150_86] : memref<8x1138xf32, #tpu.memory_space<vmem>>, vector<8x882xf32>
    %c0_87 = arith.constant 0 : index
    %c151 = arith.constant 151 : index
    %116 = vector.load %arg10[%c0_87, %c151] : memref<8x1138xf32, #tpu.memory_space<vmem>>, vector<8x882xf32>
    %c0_88 = arith.constant 0 : index
    %c170 = arith.constant 170 : index
    %117 = vector.load %arg10[%c0_88, %c170] : memref<8x1138xf32, #tpu.memory_space<vmem>>, vector<8x882xf32>
    %c0_89 = arith.constant 0 : index
    %c171 = arith.constant 171 : index
    %118 = vector.load %arg10[%c0_89, %c171] : memref<8x1138xf32, #tpu.memory_space<vmem>>, vector<8x882xf32>
    %c0_90 = arith.constant 0 : index
    %c172 = arith.constant 172 : index
    %119 = vector.load %arg10[%c0_90, %c172] : memref<8x1138xf32, #tpu.memory_space<vmem>>, vector<8x882xf32>
    %120 = tpu.concatenate %111, %112, %113, %114, %115, %116, %117, %118, %119 in 0 : vector<8x882xf32>, vector<8x882xf32>, vector<8x882xf32>, vector<8x882xf32>, vector<8x882xf32>, vector<8x882xf32>, vector<8x882xf32>, vector<8x882xf32>, vector<8x882xf32> -> vector<72x882xf32>
    %c0_91 = arith.constant 0 : index
    %c0_92 = arith.constant 0 : index
    %121 = vector.load %arg3[%c0_91, %c0_92] : memref<8x72xbf16, #tpu.memory_space<vmem>>, vector<8x72xbf16>
    %122 = arith.truncf %120 : vector<72x882xf32> to vector<72x882xbf16>
    %cst_93 = arith.constant dense<0.000000e+00> : vector<8x882xf32>
    %123 = tpu.matmul %121, %122, %cst_93 {dimension_numbers = #tpu.dot_dimension_numbers<[1], [0], [0], [1], [0, 0, 1, 1], [], []>} : vector<8x72xbf16>, vector<72x882xbf16>, vector<8x882xf32> -> vector<8x882xf32>
    %c0_94 = arith.constant 0 : index
    %c0_95 = arith.constant 0 : index
    %124 = vector.load %arg5[%c0_94, %c0_95] : memref<882x128xf32, #tpu.memory_space<vmem>>, vector<882x128xf32>
    %cst_96 = arith.constant dense<0.000000e+00> : vector<8x128xf32>
    %125 = tpu.matmul %123, %124, %cst_96 {dimension_numbers = #tpu.dot_dimension_numbers<[1], [0], [0], [1], [0, 0, 1, 1], [], []>} : vector<8x882xf32>, vector<882x128xf32>, vector<8x128xf32> -> vector<8x128xf32>
    %c0_97 = arith.constant 0 : index
    %c2 = arith.constant 2 : index
    %126 = vector.load %arg4[%c0_97, %c2] : memref<8x3xf32, #tpu.memory_space<vmem>>, vector<8x1xf32>
    %127 = vector.broadcast %126 : vector<8x1xf32> to vector<8x128xf32>
    %128 = arith.addf %125, %127 : vector<8x128xf32>
    %cst_98 = arith.constant 0.000000e+00 : f32
    %129 = vector.broadcast %cst_98 : f32 to vector<8x128xf32>
    %130 = arith.cmpf oge, %128, %129 : vector<8x128xf32>
    %cst_99 = arith.constant 2.000000e-01 : f32
    %131 = vector.broadcast %cst_99 : f32 to vector<8x128xf32>
    %132 = arith.mulf %131, %128 : vector<8x128xf32>
    %133 = arith.select %130, %128, %132 : vector<8x128xi1>, vector<8x128xf32>
    %cst_100 = arith.constant 1.41421354 : f32
    %134 = vector.broadcast %cst_100 : f32 to vector<8x128xf32>
    %135 = arith.mulf %133, %134 : vector<8x128xf32>
    %c0_101 = arith.constant 0 : index
    %c0_102 = arith.constant 0 : index
    %136 = vector.load %arg8[%c0_101, %c0_102] : memref<8x128xf32, #tpu.memory_space<vmem>>, vector<8x128xf32>
    tpu.vector_store %arg8[%c0_101, %c0_102], %135 {strides = array<i32>} : memref<8x128xf32, #tpu.memory_space<vmem>>, vector<8x128xf32>,
    %c0_103 = arith.constant 0 : index
    %c106_104 = arith.constant 106 : index
    %137 = vector.load %arg0[%c0_103, %c106_104] : memref<4x1138xf32, #tpu.memory_space<vmem>>, vector<4x882xf32>
    %cst_105 = arith.constant 1.562500e-02 : f32
    %138 = vector.broadcast %cst_105 : f32 to vector<4x882xf32>
    %139 = arith.mulf %138, %137 : vector<4x882xf32>
    %c0_106 = arith.constant 0 : index
    %c107_107 = arith.constant 107 : index
    %140 = vector.load %arg0[%c0_106, %c107_107] : memref<4x1138xf32, #tpu.memory_space<vmem>>, vector<4x882xf32>
    %cst_108 = arith.constant 4.687500e-02 : f32
    %141 = vector.broadcast %cst_108 : f32 to vector<4x882xf32>
    %142 = arith.mulf %141, %140 : vector<4x882xf32>
    %143 = arith.addf %139, %142 : vector<4x882xf32>
    %c0_109 = arith.constant 0 : index
    %c108_110 = arith.constant 108 : index
    %144 = vector.load %arg0[%c0_109, %c108_110] : memref<4x1138xf32, #tpu.memory_space<vmem>>, vector<4x882xf32>
    %cst_111 = arith.constant 4.687500e-02 : f32
    %145 = vector.broadcast %cst_111 : f32 to vector<4x882xf32>
    %146 = arith.mulf %145, %144 : vector<4x882xf32>
    %147 = arith.addf %143, %146 : vector<4x882xf32>
    %c0_112 = arith.constant 0 : index
    %c109 = arith.constant 109 : index
    %148 = vector.load %arg0[%c0_112, %c109] : memref<4x1138xf32, #tpu.memory_space<vmem>>, vector<4x882xf32>
    %cst_113 = arith.constant 1.562500e-02 : f32
    %149 = vector.broadcast %cst_113 : f32 to vector<4x882xf32>
    %150 = arith.mulf %149, %148 : vector<4x882xf32>
    %151 = arith.addf %147, %150 : vector<4x882xf32>
    %c0_114 = arith.constant 0 : index
    %c127_115 = arith.constant 127 : index
    %152 = vector.load %arg0[%c0_114, %c127_115] : memref<4x1138xf32, #tpu.memory_space<vmem>>, vector<4x882xf32>
    %cst_116 = arith.constant 4.687500e-02 : f32
    %153 = vector.broadcast %cst_116 : f32 to vector<4x882xf32>
    %154 = arith.mulf %153, %152 : vector<4x882xf32>
    %155 = arith.addf %151, %154 : vector<4x882xf32>
    %c0_117 = arith.constant 0 : index
    %c128_118 = arith.constant 128 : index
    %156 = vector.load %arg0[%c0_117, %c128_118] : memref<4x1138xf32, #tpu.memory_space<vmem>>, vector<4x882xf32>
    %cst_119 = arith.constant 1.406250e-01 : f32
    %157 = vector.broadcast %cst_119 : f32 to vector<4x882xf32>
    %158 = arith.mulf %157, %156 : vector<4x882xf32>
    %159 = arith.addf %155, %158 : vector<4x882xf32>
    %c0_120 = arith.constant 0 : index
    %c129_121 = arith.constant 129 : index
    %160 = vector.load %arg0[%c0_120, %c129_121] : memref<4x1138xf32, #tpu.memory_space<vmem>>, vector<4x882xf32>
    %cst_122 = arith.constant 1.406250e-01 : f32
    %161 = vector.broadcast %cst_122 : f32 to vector<4x882xf32>
    %162 = arith.mulf %161, %160 : vector<4x882xf32>
    %163 = arith.addf %159, %162 : vector<4x882xf32>
    %c0_123 = arith.constant 0 : index
    %c130_124 = arith.constant 130 : index
    %164 = vector.load %arg0[%c0_123, %c130_124] : memref<4x1138xf32, #tpu.memory_space<vmem>>, vector<4x882xf32>
    %cst_125 = arith.constant 4.687500e-02 : f32
    %165 = vector.broadcast %cst_125 : f32 to vector<4x882xf32>
    %166 = arith.mulf %165, %164 : vector<4x882xf32>
    %167 = arith.addf %163, %166 : vector<4x882xf32>
    %c0_126 = arith.constant 0 : index
    %c148_127 = arith.constant 148 : index
    %168 = vector.load %arg0[%c0_126, %c148_127] : memref<4x1138xf32, #tpu.memory_space<vmem>>, vector<4x882xf32>
    %cst_128 = arith.constant 4.687500e-02 : f32
    %169 = vector.broadcast %cst_128 : f32 to vector<4x882xf32>
    %170 = arith.mulf %169, %168 : vector<4x882xf32>
    %171 = arith.addf %167, %170 : vector<4x882xf32>
    %c0_129 = arith.constant 0 : index
    %c149_130 = arith.constant 149 : index
    %172 = vector.load %arg0[%c0_129, %c149_130] : memref<4x1138xf32, #tpu.memory_space<vmem>>, vector<4x882xf32>
    %cst_131 = arith.constant 1.406250e-01 : f32
    %173 = vector.broadcast %cst_131 : f32 to vector<4x882xf32>
    %174 = arith.mulf %173, %172 : vector<4x882xf32>
    %175 = arith.addf %171, %174 : vector<4x882xf32>
    %c0_132 = arith.constant 0 : index
    %c150_133 = arith.constant 150 : index
    %176 = vector.load %arg0[%c0_132, %c150_133] : memref<4x1138xf32, #tpu.memory_space<vmem>>, vector<4x882xf32>
    %cst_134 = arith.constant 1.406250e-01 : f32
    %177 = vector.broadcast %cst_134 : f32 to vector<4x882xf32>
    %178 = arith.mulf %177, %176 : vector<4x882xf32>
    %179 = arith.addf %175, %178 : vector<4x882xf32>
    %c0_135 = arith.constant 0 : index
    %c151_136 = arith.constant 151 : index
    %180 = vector.load %arg0[%c0_135, %c151_136] : memref<4x1138xf32, #tpu.memory_space<vmem>>, vector<4x882xf32>
    %cst_137 = arith.constant 4.687500e-02 : f32
    %181 = vector.broadcast %cst_137 : f32 to vector<4x882xf32>
    %182 = arith.mulf %181, %180 : vector<4x882xf32>
    %183 = arith.addf %179, %182 : vector<4x882xf32>
    %c0_138 = arith.constant 0 : index
    %c169 = arith.constant 169 : index
    %184 = vector.load %arg0[%c0_138, %c169] : memref<4x1138xf32, #tpu.memory_space<vmem>>, vector<4x882xf32>
    %cst_139 = arith.constant 1.562500e-02 : f32
    %185 = vector.broadcast %cst_139 : f32 to vector<4x882xf32>
    %186 = arith.mulf %185, %184 : vector<4x882xf32>
    %187 = arith.addf %183, %186 : vector<4x882xf32>
    %c0_140 = arith.constant 0 : index
    %c170_141 = arith.constant 170 : index
    %188 = vector.load %arg0[%c0_140, %c170_141] : memref<4x1138xf32, #tpu.memory_space<vmem>>, vector<4x882xf32>
    %cst_142 = arith.constant 4.687500e-02 : f32
    %189 = vector.broadcast %cst_142 : f32 to vector<4x882xf32>
    %190 = arith.mulf %189, %188 : vector<4x882xf32>
    %191 = arith.addf %187, %190 : vector<4x882xf32>
    %c0_143 = arith.constant 0 : index
    %c171_144 = arith.constant 171 : index
    %192 = vector.load %arg0[%c0_143, %c171_144] : memref<4x1138xf32, #tpu.memory_space<vmem>>, vector<4x882xf32>
    %cst_145 = arith.constant 4.687500e-02 : f32
    %193 = vector.broadcast %cst_145 : f32 to vector<4x882xf32>
    %194 = arith.mulf %193, %192 : vector<4x882xf32>
    %195 = arith.addf %191, %194 : vector<4x882xf32>
    %c0_146 = arith.constant 0 : index
    %c172_147 = arith.constant 172 : index
    %196 = vector.load %arg0[%c0_146, %c172_147] : memref<4x1138xf32, #tpu.memory_space<vmem>>, vector<4x882xf32>
    %cst_148 = arith.constant 1.562500e-02 : f32
    %197 = vector.broadcast %cst_148 : f32 to vector<4x882xf32>
    %198 = arith.mulf %197, %196 : vector<4x882xf32>
    %199 = arith.addf %195, %198 : vector<4x882xf32>
    %c0_149 = arith.constant 0 : index
    %c0_150 = arith.constant 0 : index
    %200 = vector.load %arg5[%c0_149, %c0_150] : memref<882x128xf32, #tpu.memory_space<vmem>>, vector<882x128xf32>
    %cst_151 = arith.constant dense<0.000000e+00> : vector<4x128xf32>
    %201 = tpu.matmul %199, %200, %cst_151 {dimension_numbers = #tpu.dot_dimension_numbers<[1], [0], [0], [1], [0, 0, 1, 1], [], []>} : vector<4x882xf32>, vector<882x128xf32>, vector<4x128xf32> -> vector<4x128xf32>
    %c0_152 = arith.constant 0 : index
    %c0_153 = arith.constant 0 : index
    %202 = vector.load %arg9[%c0_152, %c0_153] : memref<4x128xf32, #tpu.memory_space<vmem>>, vector<4x128xf32>
    tpu.vector_store %arg9[%c0_152, %c0_153], %201 {strides = array<i32>} : memref<4x128xf32, #tpu.memory_space<vmem>>, vector<4x128xf32>,
    return
  }
}

</mosaic_0001>

<bundles_post_ra>
// kernel: encoder_block_forward.1
= control target key start
LH: loop header
LB: loop body
LE: loop exit
PB: predicated region body
PF: predicated region fallthrough
CT: control target
= control target key end

     0   :  { %vm7202_vm0 = vcmask 1041408   ;;  %v7193_v2 = vmov 0   ;;  %v4277_v3 = vmov 0.0   ;;  %vm58_vm1 = vcmask 31744   ;;  %s4280_s21 = smov 84   ;;  %s4282_s24 = smov 107   ;;  %s7183_s0 = inlined_call_operand.vmem [shape: f32[4,1138], index: 0, kind: input, shape index: {}]   ;;  %s7184_s4 = inlined_call_operand.vmem [shape: f32[8,3], index: 4, kind: input, shape index: {}]   ;;  %s7185_s1 = inlined_call_operand.vmem [shape: bf16[8,4], index: 1, kind: input, shape index: {}]   ;;  %s7186_s6 = inlined_call_operand.vmem [shape: f32[1,882], index: 6, kind: input, shape index: {}]   ;;  %s7187_s2 = inlined_call_operand.vmem [shape: bf16[8,72], index: 2, kind: input, shape index: {}]   ;;  %s7188_s7 = inlined_call_operand.vmem [shape: f32[8,882], index: 7, kind: output, shape index: {0}]   ;;  %s7189_s3 = inlined_call_operand.vmem [shape: bf16[8,72], index: 3, kind: input, shape index: {}]   ;;  %s7190_s5 = inlined_call_operand.vmem [shape: f32[882,128], index: 5, kind: input, shape index: {}]   ;;  %s7191_s8 = inlined_call_operand.vmem [shape: f32[8,128], index: 8, kind: output, shape index: {1}]   ;;  %s7192_s9 = inlined_call_operand.vmem [shape: f32[4,128], index: 9, kind: output, shape index: {2}]  }
   0x1   :  { %v31_v0 = vld [vmem:[%s7183_s0 + $0x4] sm:$0xff]  ;;  %v32_v1 = vld [vmem:[%s7183_s0 + $0xc] sm:$0xff]  ;;  %116 = vmatprep.mubr.bf16.mxu0 %v7193_v2  ;;  %157 = vmatprep.mubr.bf16.mxu1 %v7193_v2  ;;  %318 = vst [vmem:[#allocation2] sm:$0xff] %v4277_v3  ;;  %325 = vst [vmem:[#allocation2 + $0x38] sm:$0xff] %v4277_v3  ;;  %vm7204_vm2 = vmmov 0   ;;  %vm7213_vm3 = vcmask 932864   ;;  %v276_v23 = vlaneseq }
   0x2   :  { %v39_v4 = vcombine.high %v31_v0, %v31_v0  ;;  %v40_v5 = vcombine.high %v32_v1, %v32_v1  ;;  %v45_v6 = vpack.c.bf16 %v31_v0, %v31_v0  ;;  %v47_v7 = vpack.c.bf16 %v32_v1, %v32_v1  ;;  %v33_v8 = vld [vmem:[%s7183_s0 + $0x14] sm:$0xff]  ;;  %v34_v9 = vld [vmem:[%s7183_s0 + $0x1c] sm:$0xf]  ;;  %3954 = vset.pattern.permute.xlu0 %v7193_v2  ;;  %v52_v10 = vld [vmem:[%s7184_s4] sm:$0xff]  ;;  %s4283_s25 = smov 86   ;;  %s4284_s26 = smov 127  }
   0x3   :  { %v41_v11 = vcombine.high %v33_v8, %v33_v8  ;;  %v49_v12 = vpack.c.bf16 %v33_v8, %v33_v8  ;;  %v51_v13 = vpack.c.bf16 %v34_v9, %v34_v9  ;;  %55 = vperm.xlu0 %3954, %v52_v10   ;;  %v35_v19 = vld [vmem:[%s7185_s1] sm:$0xf]  ;;  %327 = vst.msk [vmem:[#allocation2 + $0x40] sm:$0xff] %vm7213_vm3, %v4277_v3  ;;  %s4279_s1 = smov 85   ;;  %v4392_v24 = vshrl.u32 %v276_v23, 7  ;;  %s4285_s27 = smov 106  }
   0x4   :  { %v46_v14 = vpack.c.bf16 %v39_v4, %v39_v4  ;;  %v48_v15 = vpack.c.bf16 %v40_v5, %v40_v5  ;;  %v64_v16 = vsel %vm7202_vm0, %v45_v6, 0  ;;  %v70_v17 = vsel %vm7202_vm0, %v47_v7, 0  ;;  %v4400_v29 = vld [vmem:[%s7186_s6] sm:$0x7f]  ;;  %s4281_s6 = smov 126   ;;  %s4286_s28 = smov 105  }
   0x5   :  { %v50_v18 = vpack.c.bf16 %v41_v11, %v41_v11  ;;  %v76_v20 = vsel %vm7202_vm0, %v49_v12, 0  ;;  %v82_v21 = vsel %vm7202_vm0, %v51_v13, 0  ;;  %v286_v28 = vsub.s32 2, %v4392_v24  ;;  %s4287_s29 = smov 22   ;;  %s4290_s13 = smov 104  }
   0x6   :  { %3551 = vmatprep.subr.msk.bf16.mxu0 %vm7202_vm0, %v46_v14  ;;  %3553 = vmatprep.subr.msk.bf16.mxu1 %vm7202_vm0, %v48_v15  ;;  %v290_v38 = vsub.s32 3, %v4392_v24  ;;  %v282_v43 = vsub.s32 1, %v4392_v24  ;;  %v278_v49 = vsub.s32 0, %v4392_v24  ;;  %v302_v54 = vsub.s32 6, %v4392_v24  ;;  %s4291_s23 = smov 83   ;;  %s4292_s30 = smov 65  }
   0x7   :  { %99 = vmatpush1.bf16.msra.mxu0 %v64_v16  ;;  %140 = vmatpush1.bf16.msra.mxu1 %v70_v17  ;;  %v4405_v35 = vrot.slane %v4400_v29, %v286_v28  ;;  %vm400_vm11 = vcmask 1031168   ;;  %vm432_vm12 = vcmask 875520   ;;  %vm587_vm13 = vcmask 687104   ;;  %s4293_s15 = smov 64   ;;  %s4294_s16 = smov 63  }
   0x8   :  { %3555 = vmatprep.subr.msk.bf16.mxu0 %vm7202_vm0, %v50_v18  ;;  %3832 = vmatprep.subr.bf16.mxu1 %v4277_v3  ;;  %v4416_v51 = vrot.slane %v4400_v29, %v290_v38  ;;  %v4421_v60 = vrot.slane %v4400_v29, %v282_v43  ;;  %v4426_v5 = vrot.slane %v4400_v29, %v278_v49  ;;  %vm368_vm14 = vcmask 1039360   ;;  %s4295_s17 = smov 62  }
   0x9   :  { %v4432_v7 = vrot.slane %v4400_v29, %v302_v54  ;;  %vm555_vm15 = vcmask 695296   ;;  %vm7216_vm0 = vcmask 531456  }
   0xa   :  { %3552 = vmatmul.mubr.msk.bf16.vlgmr.msra.gmra.mxu0 %vm58_vm1, %v35_v19  ;;  %3554 = vmatmul.mubr.msk.bf16.vlgmr.msra.gmra.mxu1 %vm58_vm1, %v35_v19  ;;  %v4386_v22 = vld [vmem:[#allocation2 + $0x40] sm:$0xff] }
   0xb   :  { %181 = vmatpush1.bf16.msra.mxu0 %v76_v20  ;;  %3833 = vmatpush3.bf16.msra.mxu1 %v82_v21  ;;  %v294_v21 = vsub.s32 4, %v4392_v24 }
   0xc   :  { %198 = vmatprep.mubr.bf16.mxu0 %v7193_v2  ;;  %3834 = vmatprep.mubr.msk.bf16.mxu1 %vm7204_vm2, %v4277_v3 }
   0xd   :  { %553 = vrot.lane.b32.xlu0 %v4386_v22, %s4279_s1  ;;  %585 = vrot.lane.b32.xlu1 %v4386_v22, %s4280_s21 }
  0x12   :  { %3556 = vmatmul.mubr.msk.bf16.vlgmr.msra.gmra.mxu0 %vm58_vm1, %v35_v19  ;;  %3835 = vmatmul.mubr.msk.bf16.vlgmr.msra.gmra.mxu1 %vm58_vm1, %v35_v19  ;;  %vm523_vm1 = vcmask 703488  }
  0x13   :  { %892 = vmatprep.mubr.bf16.mxu0 %v7193_v2  ;;  %933 = vmatprep.mubr.bf16.mxu1 %v7193_v2 }
  0x7e   :  { %v4394_v25 = vpop.permute.xlu0 %55 }
  0xca   :  { %v118_v26 = vpop.f32.mrf.mxu0  ;;  %v159_v27 = vpop.f32.mrf.mxu1 }
  0xcb   :  { %v119_v30 = vadd.f32 %v118_v26, %v4394_v25  ;;  %v160_v31 = vadd.f32 %v159_v27, %v4394_v25  ;;  %v4462_v27 = vrot.slane %v4400_v29, %v294_v21 }
  0xcc   :  { %v120_v32 = vpop.f32.mrf.mxu0  ;;  %v161_v33 = vpop.f32.mrf.mxu1 }
  0xcd   :  { %vm249_vm4 = vcmp.ge.f32.partialorder %v160_v31, 0.0  ;;  %v256_v34 = vmul.f32 0.2, %v160_v31  ;;  %v121_v36 = vadd.f32 %v120_v32, %v4394_v25  ;;  %v162_v37 = vadd.f32 %v161_v33, %v4394_v25 }
  0xce   :  { %v122_v39 = vpop.f32.mrf.mxu0  ;;  %v163_v40 = vpop.f32.mrf.mxu1  ;;  %v254_v41 = vmul.f32 0.2, %v119_v30  ;;  %vm247_vm5 = vcmp.ge.f32.partialorder %v119_v30, 0.0  ;;  %v298_v33 = vsub.s32 5, %v4392_v24 }
  0xcf   :  { %v263_v42 = vsel %vm249_vm4, %v160_v31, %v256_v34  ;;  %vm248_vm6 = vcmp.ge.f32.partialorder %v121_v36, 0.0  ;;  %vm250_vm7 = vcmp.ge.f32.partialorder %v162_v37, 0.0  ;;  %v255_v47 = vmul.f32 0.2, %v121_v36  ;;  %v4508_v39 = vpop.permute.xlu0 %553  ;;  %v4510_v40 = vpop.permute.xlu1 %585 }
  0xd0   :  { %v270_v44 = vmul.f32 1.4142135, %v263_v42  ;;  %v123_v45 = vpop.f32.mrf.mxu0  ;;  %v164_v46 = vpop.f32.mrf.mxu1  ;;  %v257_v48 = vmul.f32 0.2, %v162_v37  ;;  %v261_v55 = vsel %vm247_vm5, %v119_v30, %v254_v41  ;;  %v4483_v38 = vrot.slane %v4400_v29, %v298_v33 }
  0xd1   :  { %v262_v56 = vsel %vm248_vm6, %v121_v36, %v255_v47  ;;  %v268_v4 = vmul.f32 1.4142135, %v261_v55  ;;  %vm491_vm4 = vcmask 859136   ;;  %vm462_vm5 = vcmask 867328  }
  0xd2   :  { %v4413_v50 = vmul.f32 %v4405_v35, %v270_v44  ;;  %v200_v52 = vpop.f32.mrf.mxu0  ;;  %v241_v53 = vpop.f32.mrf.mxu1  ;;  %v264_v57 = vsel %vm250_vm7, %v162_v37, %v257_v48  ;;  %v269_v59 = vmul.f32 1.4142135, %v262_v56  ;;  %vm7200_vm6 = vcmask 179200  }
  0xd3   :  { %v242_v58 = vadd.f32 %v241_v53, %v4394_v25  ;;  %v271_v61 = vmul.f32 1.4142135, %v264_v57  ;;  %v4441_v16 = vmul.f32 %v4426_v5, %v268_v4  ;;  %v201_v19 = vadd.f32 %v200_v52, %v4394_v25 }
  0xd4   :  { %v202_v62 = vpop.f32.mrf.mxu0  ;;  %v3955_v63 = vpack.i.bf16 %v4277_v3, %v4413_v50  ;;  %v3836_v0 = vpop.f32.mrf.mxu1  ;;  %v4436_v11 = vmul.f32 %v4421_v60, %v269_v59  ;;  %vm7208_vm7 = vcmask 1043456  }
  0xd5   :  { %vm253_vm8 = vcmp.ge.f32.partialorder %v242_v58, 0.0  ;;  %v260_v1 = vmul.f32 0.2, %v242_v58  ;;  %v4429_v6 = vmul.f32 %v4416_v51, %v271_v61  ;;  %v258_v20 = vmul.f32 0.2, %v201_v19 }
  0xd6   :  { %3956 = vrot.lane.b32.xlu0 %v3955_v63, %s4281_s6  ;;  %v204_v8 = vpop.f32.mrf.mxu0  ;;  %v244_v9 = vpop.f32.mrf.mxu1  ;;  %v3980_v18 = vpack.i.bf16 %v4436_v11, %v4441_v16  ;;  %vm251_vm9 = vcmp.ge.f32.partialorder %v201_v19, 0.0  ;;  %v203_v28 = vadd.f32 %v202_v62, %v4394_v25 }
  0xd7   :  { %v267_v10 = vsel %vm253_vm8, %v242_v58, %v260_v1  ;;  %v3975_v13 = vpack.i.bf16 %v4429_v6, %v4413_v50  ;;  %v265_v23 = vsel %vm251_vm9, %v201_v19, %v258_v20  ;;  %vm7207_vm8 = vcmask 588800  }
  0xd8   :  { %v274_v12 = vmul.f32 1.4142135, %v267_v10  ;;  %v205_v14 = vpop.f32.mrf.mxu0  ;;  %v3837_v15 = vpop.f32.mrf.mxu1  ;;  %v272_v26 = vmul.f32 1.4142135, %v265_v23  ;;  %v259_v31 = vmul.f32 0.2, %v203_v28 }
  0xd9   :  { %3976 = vrot.lane.b32.xlu1 %v3975_v13, %s4280_s21  ;;  %vm252_vm10 = vcmp.ge.f32.partialorder %v203_v28, 0.0 }
  0xda   :  { %v317_v17 = vmul.f32 %v4432_v7, %v274_v12  ;;  %3961 = vrot.lane.b32.xlu0 %v3955_v63, %s4282_s24  ;;  %v4468_v30 = vmul.f32 %v4462_v27, %v272_v26  ;;  %v266_v36 = vsel %vm252_vm10, %v203_v28, %v259_v31 }
  0xdb   :  { %v273_v37 = vmul.f32 1.4142135, %v266_v36 }
  0xdc   :  { %334 = vst.msk [vmem:[#allocation2 + $0x38] sm:$0xff] %vm7213_vm3, %v317_v17  ;;  %v4040_v25 = vpack.i.bf16 %v4468_v30, %v4429_v6 }
  0xdd   :  { %3981 = vrot.lane.b32.xlu1 %v3980_v18, %s4283_s25  ;;  %v4489_v24 = vmul.f32 %v4483_v38, %v273_v37 }
  0xde   :  { %3966 = vrot.lane.b32.xlu0 %v3955_v63, %s4284_s26 }
  0xe1   :  { %3991 = vrot.lane.b32.xlu1 %v3980_v18, %s4279_s1 }
  0xe2   :  { %3971 = vrot.lane.b32.xlu0 %v3980_v18, %s4280_s21 }
  0xe3   :  { %v4470_v32 = vld [vmem:[#allocation2 + $0x38] sm:$0xff] }
  0xe4   :  { %v4035_v34 = vpack.i.bf16 %v4386_v22, %v4470_v32  ;;  %v4055_v22 = vpack.i.bf16 %v4489_v24, %v4468_v30  ;;  %v4080_v29 = vpack.i.bf16 %v4470_v32, %v4489_v24 }
  0xe5   :  { %4001 = vrot.lane.b32.xlu1 %v3980_v18, %s4285_s27 }
  0xe6   :  { %3986 = vrot.lane.b32.xlu0 %v3975_v13, %s4283_s25 }
  0xe9   :  { %4011 = vrot.lane.b32.xlu1 %v3980_v18, %s4286_s28 }
  0xea   :  { %3996 = vrot.lane.b32.xlu0 %v3975_v13, %s4279_s1 }
  0xed   :  { %4021 = vrot.lane.b32.xlu1 %v3980_v18, %s4281_s6 }
  0xee   :  { %4006 = vrot.lane.b32.xlu0 %v3975_v13, %s4285_s27 }
  0xf1   :  { %4026 = vrot.lane.b32.xlu1 %v3980_v18, %s4282_s24 }
  0xf2   :  { %4016 = vrot.lane.b32.xlu0 %v3975_v13, %s4286_s28 }
  0xf5   :  { %4031 = vrot.lane.b32.xlu1 %v3980_v18, %s4284_s26 }
  0xf6   :  { %583 = vrot.lane.b32.xlu0 %v4470_v32, %s4280_s21 }
  0xf9   :  { %4041 = vrot.lane.b32.xlu1 %v4040_v25, %s4281_s6 }
  0xfa   :  { %4036 = vrot.lane.b32.xlu0 %v4035_v34, %s4283_s25 }
  0xfd   :  { %4046 = vrot.lane.b32.xlu1 %v4040_v25, %s4282_s24 }
  0xfe   :  { %551 = vrot.lane.b32.xlu0 %v4470_v32, %s4279_s1 }
 0x101   :  { %4051 = vrot.lane.b32.xlu1 %v4040_v25, %s4284_s26 }
 0x102   :  { %460 = vrot.lane.b32.xlu0 %v4470_v32, %s4285_s27 }
 0x105   :  { %4056 = vrot.lane.b32.xlu1 %v4055_v22, %s4280_s21 }
 0x106   :  { %489 = vrot.lane.b32.xlu0 %v4470_v32, %s4286_s28 }
 0x109   :  { %4061 = vrot.lane.b32.xlu1 %v4055_v22, %s4283_s25 }
 0x10a   :  { %4081 = vrot.lane.b32.xlu0 %v4080_v29, %s4281_s6 }
 0x10d   :  { %4066 = vrot.lane.b32.xlu1 %v4055_v22, %s4279_s1 }
 0x10e   :  { %4086 = vrot.lane.b32.xlu0 %v4080_v29, %s4282_s24 }
 0x111   :  { %4071 = vrot.lane.b32.xlu1 %v4055_v22, %s4285_s27 }
 0x112   :  { %4091 = vrot.lane.b32.xlu0 %v4080_v29, %s4284_s26 }
 0x115   :  { %4076 = vrot.lane.b32.xlu1 %v4055_v22, %s4286_s28 }
 0x148   :  { %v4512_v41 = vpop.permute.xlu0 %3956 }
 0x149   :  { %v3959_v8 = vunpack.i.h.bf16 %v4512_v41 }
 0x14b   :  { %v4514_v42 = vpop.permute.xlu1 %3976 }
 0x14c   :  { %v4516_v43 = vpop.permute.xlu0 %3961  ;;  %v3978_v26 = vunpack.i.l.bf16 %v4514_v42 }
 0x14d   :  { %v3964_v9 = vunpack.i.h.bf16 %v4516_v43 }
 0x14f   :  { %v4518_v44 = vpop.permute.xlu1 %3981 }
 0x150   :  { %v4520_v45 = vpop.permute.xlu0 %3966  ;;  %v3983_v48 = vunpack.i.l.bf16 %v4518_v44  ;;  %v3984_v28 = vunpack.i.h.bf16 %v4518_v44 }
 0x151   :  { %v3969_v18 = vunpack.i.h.bf16 %v4520_v45 }
 0x153   :  { %v4522_v46 = vpop.permute.xlu1 %3991 }
 0x154   :  { %v3972_v47 = vpop.permute.xlu0 %3971  ;;  %v3993_v49 = vunpack.i.l.bf16 %v4522_v46  ;;  %v3994_v19 = vunpack.i.h.bf16 %v4522_v46 }
 0x155   :  { %v3973_v52 = vunpack.i.l.bf16 %v3972_v47  ;;  %v3974_v10 = vunpack.i.h.bf16 %v3972_v47 }
 0x156   :  { %v628_v53 = vpack.c.bf16 %v3993_v49, %v3983_v48  ;;  %v556_v29 = vsel %vm555_vm15, %v3993_v49, %v3994_v19 }
 0x157   :  { %v636_v54 = vpack.c.bf16 %v3973_v52, %v3973_v52  ;;  %v4526_v55 = vpop.permute.xlu1 %4001  ;;  %v588_v21 = vsel %vm587_vm13, %v3973_v52, %v3974_v10  ;;  %v589_v22 = vsel %vm587_vm13, %v3974_v10, %v3978_v26  ;;  %v524_v52 = vsel %vm523_vm1, %v3983_v48, %v3984_v28 }
 0x158   :  { %v4528_v56 = vpop.permute.xlu0 %3986  ;;  %738 = vrot.lane.b32.xlu0 %v628_v53, %s4287_s29  ;;  %v4003_v58 = vunpack.i.l.bf16 %v4526_v55  ;;  %v637_v34 = vpack.c.bf16 %v588_v21, %v588_v21  ;;  %v4004_v49 = vunpack.i.h.bf16 %v4526_v55 }
 0x159   :  { %754 = vrot.lane.b32.xlu1 %v636_v54, %s4287_s29  ;;  %v3988_v44 = vunpack.i.l.bf16 %v4528_v56 }
 0x15b   :  { %v4532_v57 = vpop.permute.xlu1 %4011 }
 0x15c   :  { %v4013_v59 = vunpack.i.l.bf16 %v4532_v57  ;;  %v4536_v61 = vpop.permute.xlu0 %3996  ;;  %v4014_v46 = vunpack.i.h.bf16 %v4532_v57 }
 0x15d   :  { %v3998_v36 = vunpack.i.l.bf16 %v4536_v61 }
 0x15e   :  { %v620_v62 = vpack.c.bf16 %v4013_v59, %v4003_v58 }
 0x15f   :  { %v4542_v63 = vpop.permute.xlu1 %4021  ;;  %v557_v10 = vsel %vm555_vm15, %v3994_v19, %v3998_v36 }
 0x160   :  { %722 = vrot.lane.b32.xlu1 %v620_v62, %s4287_s29  ;;  %v4023_v0 = vunpack.i.l.bf16 %v4542_v63  ;;  %v4546_v1 = vpop.permute.xlu0 %4006  ;;  %v638_v62 = vpack.c.bf16 %v589_v22, %v589_v22  ;;  %v4024_v48 = vunpack.i.h.bf16 %v4542_v63  ;;  %v3968_v22 = vunpack.i.l.bf16 %v4520_v45 }
 0x161   :  { %v4008_v47 = vunpack.i.l.bf16 %v4546_v1 }
 0x162   :  { %v401_v13 = vsel %vm400_vm11, %v3959_v8, %v4023_v0  ;;  %v629_v8 = vpack.c.bf16 %v556_v29, %v524_v52  ;;  %v463_v29 = vsel %vm462_vm5, %v4003_v58, %v4004_v49  ;;  %v402_v57 = vsel %vm400_vm11, %v4023_v0, %v4024_v48 }
 0x163   :  { %v4548_v4 = vpop.permute.xlu1 %4026  ;;  %v3958_v52 = vunpack.i.l.bf16 %v4512_v41 }
 0x164   :  { %v4028_v12 = vunpack.i.l.bf16 %v4548_v4  ;;  %v4563_v23 = vpop.permute.xlu0 %4016 }
 0x165   :  { %v4018_v37 = vunpack.i.l.bf16 %v4563_v23  ;;  %v403_v58 = vsel %vm400_vm11, %v4024_v48, %v3958_v52  ;;  %v3989_v48 = vunpack.i.h.bf16 %v4528_v56 }
 0x166   :  { %v433_v14 = vsel %vm432_vm12, %v3964_v9, %v4028_v12  ;;  %v4029_v9 = vunpack.i.h.bf16 %v4548_v4  ;;  %v464_v4 = vsel %vm462_vm5, %v4004_v49, %v4008_v47  ;;  %v3999_v49 = vunpack.i.h.bf16 %v4536_v61 }
 0x167   :  { %v4557_v15 = vpop.permute.xlu1 %4031  ;;  %v612_v17 = vpack.c.bf16 %v433_v14, %v401_v13  ;;  %v493_v13 = vsel %vm491_vm4, %v4014_v46, %v4018_v37  ;;  %v525_v14 = vsel %vm523_vm1, %v3984_v28, %v3988_v44  ;;  %v3963_v28 = vunpack.i.l.bf16 %v4516_v43 }
 0x168   :  { %v4033_v20 = vunpack.i.l.bf16 %v4557_v15  ;;  %v4586_v53 = vpop.permute.xlu0 %583  ;;  %v622_v19 = vpack.c.bf16 %v493_v13, %v464_v4  ;;  %v4034_v21 = vunpack.i.h.bf16 %v4557_v15 }
 0x169   :  { %706 = vrot.lane.b32.xlu0 %v612_v17, %s4287_s29  ;;  %v435_v43 = vsel %vm432_vm12, %v4029_v9, %v3963_v28 }
 0x16a   :  { %v369_v31 = vsel %vm368_vm14, %v3969_v18, %v4033_v20  ;;  %v630_v18 = vpack.c.bf16 %v557_v10, %v525_v14  ;;  %v371_v55 = vsel %vm368_vm14, %v4034_v21, %v3968_v22  ;;  %v370_v10 = vsel %vm368_vm14, %v4033_v20, %v4034_v21 }
 0x16b   :  { %v4571_v33 = vpop.permute.xlu1 %4041  ;;  %v604_v25 = vpack.c.bf16 %v369_v31, %v4277_v3  ;;  %v492_v31 = vsel %vm491_vm4, %v4013_v59, %v4014_v46  ;;  %v606_v41 = vpack.c.bf16 %v371_v55, %v4436_v11  ;;  %v605_v11 = vpack.c.bf16 %v370_v10, %v4441_v16 }
 0x16c   :  { %v526_v21 = vsel %vm523_vm1, %v3988_v44, %v3989_v48  ;;  %v4043_v56 = vunpack.i.l.bf16 %v4571_v33 }
 0x16d   :  { %690 = vrot.lane.b32.xlu1 %v604_v25, %s4287_s29  ;;  %756 = vrot.lane.b32.xlu0 %v637_v34, %s4287_s29  ;;  %v434_v25 = vsel %vm432_vm12, %v4028_v12, %v4029_v9  ;;  %v4614_v34 = vpop.permute.xlu0 %4036  ;;  %v621_v12 = vpack.c.bf16 %v492_v31, %v463_v29 }
 0x16e   :  { %v613_v46 = vpack.c.bf16 %v434_v25, %v402_v57  ;;  %v404_v10 = vsel %vm400_vm11, %v3958_v52, %v4043_v56 }
 0x16f   :  { %v4588_v54 = vpop.permute.xlu1 %4046 }
 0x171   :  { %758 = vrot.lane.b32.xlu1 %v638_v62, %s4287_s29  ;;  %740 = vrot.lane.b32.xlu0 %v629_v8, %s4287_s29  ;;  %v3979_v62 = vunpack.i.h.bf16 %v4514_v42  ;;  %v4637_v63 = vpop.permute.xlu0 %551  ;;  %v614_v8 = vpack.c.bf16 %v435_v43, %v403_v58  ;;  %v558_v42 = vsel %vm555_vm15, %v3998_v36, %v3999_v49  ;;  %v4048_v36 = vunpack.i.l.bf16 %v4588_v54 }
 0x172   :  { %v631_v61 = vpack.c.bf16 %v558_v42, %v526_v21 }
 0x173   :  { %v4607_v17 = vpop.permute.xlu1 %4051  ;;  %v590_v13 = vsel %vm587_vm13, %v3978_v26, %v3979_v62 }
 0x174   :  { %v639_v4 = vpack.c.bf16 %v590_v13, %v590_v13  ;;  %v4053_v58 = vunpack.i.l.bf16 %v4607_v17 }
 0x175   :  { %742 = vrot.lane.b32.xlu1 %v630_v18, %s4287_s29  ;;  %726 = vrot.lane.b32.xlu0 %v622_v19, %s4287_s29  ;;  %v4019_v18 = vunpack.i.h.bf16 %v4563_v23  ;;  %v4662_v26 = vpop.permute.xlu0 %460  ;;  %v4009_v19 = vunpack.i.h.bf16 %v4546_v1  ;;  %v4044_v1 = vunpack.i.h.bf16 %v4571_v33 }
 0x177   :  { %v4626_v59 = vpop.permute.xlu1 %4056  ;;  %v494_v57 = vsel %vm491_vm4, %v4018_v37, %v4019_v18  ;;  %v4049_v37 = vunpack.i.h.bf16 %v4588_v54  ;;  %v4054_v54 = vunpack.i.h.bf16 %v4607_v17  ;;  %v405_v33 = vsel %vm400_vm11, %v4043_v56, %v4044_v1 }
 0x178   :  { %v4058_v9 = vunpack.i.l.bf16 %v4626_v59 }
 0x179   :  { %724 = vrot.lane.b32.xlu1 %v621_v12, %s4287_s29  ;;  %708 = vrot.lane.b32.xlu0 %v613_v46, %s4287_s29  ;;  %v465_v46 = vsel %vm462_vm5, %v4008_v47, %v4009_v19 }
 0x17a   :  { %v591_v20 = vsel %vm587_vm13, %v3979_v62, %v4058_v9  ;;  %v4686_v62 = vpop.permute.xlu0 %489  ;;  %v623_v55 = vpack.c.bf16 %v494_v57, %v465_v46 }
 0x17b   :  { %v4639_v0 = vpop.permute.xlu1 %4061  ;;  %v640_v25 = vpack.c.bf16 %v591_v20, %v591_v20 }
 0x17c   :  { %v4063_v16 = vunpack.i.l.bf16 %v4639_v0  ;;  %v4064_v45 = vunpack.i.h.bf16 %v4639_v0 }
 0x17d   :  { %710 = vrot.lane.b32.xlu1 %v614_v8, %s4287_s29  ;;  %694 = vrot.lane.b32.xlu0 %v606_v41, %s4287_s29  ;;  %v436_v41 = vsel %vm432_vm12, %v3963_v28, %v4048_v36  ;;  %v437_v28 = vsel %vm432_vm12, %v4048_v36, %v4049_v37 }
 0x17e   :  { %v527_v12 = vsel %vm523_vm1, %v3989_v48, %v4063_v16  ;;  %v615_v48 = vpack.c.bf16 %v436_v41, %v404_v10  ;;  %v4703_v20 = vpop.permute.xlu0 %4081  ;;  %v616_v52 = vpack.c.bf16 %v437_v28, %v405_v33 }
 0x17f   :  { %v4653_v14 = vpop.permute.xlu1 %4066  ;;  %v4084_v41 = vunpack.i.h.bf16 %v4703_v20 }
 0x180   :  { %v4068_v15 = vunpack.i.l.bf16 %v4653_v14  ;;  %v4069_v17 = vunpack.i.h.bf16 %v4653_v14 }
 0x181   :  { %692 = vrot.lane.b32.xlu1 %v605_v11, %s4287_s29  ;;  %760 = vrot.lane.b32.xlu0 %v639_v4, %s4287_s29  ;;  %v4059_v11 = vunpack.i.h.bf16 %v4626_v59  ;;  %v372_v4 = vsel %vm368_vm14, %v3968_v22, %v4053_v58  ;;  %v373_v59 = vsel %vm368_vm14, %v4053_v58, %v4054_v54 }
 0x182   :  { %v559_v29 = vsel %vm555_vm15, %v3999_v49, %v4068_v15  ;;  %v4087_v22 = vpop.permute.xlu0 %4086  ;;  %v560_v14 = vsel %vm555_vm15, %v4068_v15, %v4069_v17  ;;  %v561_v57 = vsel %vm555_vm15, %v4069_v17, %v4637_v63  ;;  %v4083_v15 = vunpack.i.l.bf16 %v4703_v20 }
 0x183   :  { %v4671_v31 = vpop.permute.xlu1 %4071  ;;  %v632_v23 = vpack.c.bf16 %v559_v29, %v527_v12  ;;  %v592_v42 = vsel %vm587_vm13, %v4058_v9, %v4059_v11  ;;  %v4038_v29 = vunpack.i.l.bf16 %v4614_v34 }
 0x184   :  { %v4073_v44 = vunpack.i.l.bf16 %v4671_v31  ;;  %v641_v21 = vpack.c.bf16 %v592_v42, %v592_v42  ;;  %v4074_v9 = vunpack.i.h.bf16 %v4671_v31 }
 0x185   :  { %762 = vrot.lane.b32.xlu1 %v640_v25, %s4287_s29  ;;  %744 = vrot.lane.b32.xlu0 %v631_v61, %s4287_s29  ;;  %v528_v61 = vsel %vm523_vm1, %v4063_v16, %v4064_v45  ;;  %v529_v31 = vsel %vm523_vm1, %v4064_v45, %v4038_v29 }
 0x186   :  { %v466_v47 = vsel %vm462_vm5, %v4009_v19, %v4073_v44  ;;  %v608_v19 = vpack.c.bf16 %v373_v59, %v4429_v6  ;;  %v633_v0 = vpack.c.bf16 %v560_v14, %v528_v61  ;;  %v4088_v6 = vunpack.i.l.bf16 %v4087_v22  ;;  %v4092_v12 = vpop.permute.xlu0 %4091 }
 0x187   :  { %v4077_v43 = vpop.permute.xlu1 %4076  ;;  %v467_v16 = vsel %vm462_vm5, %v4073_v44, %v4074_v9  ;;  %v634_v46 = vpack.c.bf16 %v561_v57, %v529_v31  ;;  %v406_v44 = vsel %vm400_vm11, %v4044_v1, %v4083_v15  ;;  %v594_v1 = vsel %vm587_vm13, %v4586_v53, %v4510_v40 }
 0x188   :  { %v4078_v8 = vunpack.i.l.bf16 %v4077_v43  ;;  %v4079_v25 = vunpack.i.h.bf16 %v4077_v43  ;;  %v643_v33 = vpack.c.bf16 %v594_v1, %v594_v1  ;;  %v627_v40 = vpack.c.bf16 %v4686_v62, %v4662_v26 }
 0x189   :  { %746 = vrot.lane.b32.xlu1 %v632_v23, %s4287_s29  ;;  %728 = vrot.lane.b32.xlu0 %v623_v55, %s4287_s29  ;;  %v4089_v23 = vunpack.i.h.bf16 %v4087_v22  ;;  %v4093_v55 = vunpack.i.l.bf16 %v4092_v12 }
 0x18a   :  { %v495_v49 = vsel %vm491_vm4, %v4019_v18, %v4078_v8  ;;  %v607_v18 = vpack.c.bf16 %v372_v4, %v4413_v50  ;;  %v593_v50 = vsel %vm587_vm13, %v4059_v11, %v4586_v53  ;;  %v496_v56 = vsel %vm491_vm4, %v4078_v8, %v4079_v25 }
 0x18b   :  { %v624_v13 = vpack.c.bf16 %v495_v49, %v466_v47  ;;  %v642_v36 = vpack.c.bf16 %v593_v50, %v593_v50  ;;  %v625_v43 = vpack.c.bf16 %v496_v56, %v467_v16  ;;  %v497_v58 = vsel %vm491_vm4, %v4079_v25, %v4686_v62 }
 0x18c   :  { %v438_v8 = vsel %vm432_vm12, %v4049_v37, %v4088_v6  ;;  %v468_v47 = vsel %vm462_vm5, %v4074_v9, %v4662_v26  ;;  %v374_v11 = vsel %vm368_vm14, %v4054_v54, %v4093_v55  ;;  %v407_v37 = vsel %vm400_vm11, %v4083_v15, %v4084_v41 }
 0x18d   :  { %730 = vrot.lane.b32.xlu1 %v624_v13, %s4287_s29  ;;  %712 = vrot.lane.b32.xlu0 %v615_v48, %s4287_s29  ;;  %v626_v49 = vpack.c.bf16 %v497_v58, %v468_v47  ;;  %v617_v10 = vpack.c.bf16 %v438_v8, %v406_v44  ;;  %v4094_v13 = vunpack.i.h.bf16 %v4092_v12  ;;  %v439_v48 = vsel %vm432_vm12, %v4088_v6, %v4089_v23 }
 0x18e   :  { %v618_v28 = vpack.c.bf16 %v439_v48, %v407_v37  ;;  %v609_v4 = vpack.c.bf16 %v374_v11, %v4468_v30  ;;  %v4039_v54 = vunpack.i.h.bf16 %v4614_v34  ;;  %v619_v34 = vpack.c.bf16 %v4089_v23, %v4084_v41 }
 0x18f   :  { %v375_v20 = vsel %vm368_vm14, %v4093_v55, %v4094_v13  ;;  %v4793_v55 = vld [vmem:[%s7187_s2] sm:$0xf]  ;;  %s4289_s2 = smov 125  }
 0x190   :  { %v530_v30 = vsel %vm523_vm1, %v4038_v29, %v4039_v54 }
 0x191   :  { %714 = vrot.lane.b32.xlu1 %v616_v52, %s4287_s29  ;;  %696 = vrot.lane.b32.xlu0 %v607_v18, %s4287_s29  ;;  %v610_v52 = vpack.c.bf16 %v375_v20, %v4489_v24  ;;  %v562_v18 = vsel %vm555_vm15, %v4637_v63, %v4508_v39  ;;  %v611_v24 = vpack.c.bf16 %v4094_v13, %v4470_v32  ;;  %v4288_v39 = vmov 1   ;;  %v644_v63 = vld [vmem:[%s7184_s4] sm:$0xff] }
 0x192   :  { %v635_v53 = vpack.c.bf16 %v562_v18, %v530_v30  ;;  %4095 = vset.pattern.permute.xlu1 %v4288_v39 }
 0x195   :  { %698 = vrot.lane.b32.xlu1 %v608_v19, %s4287_s29  ;;  %764 = vrot.lane.b32.xlu0 %v641_v21, %s4287_s29 }
 0x199   :  { %766 = vrot.lane.b32.xlu1 %v642_v36, %s4287_s29  ;;  %748 = vrot.lane.b32.xlu0 %v633_v0, %s4287_s29 }
 0x19d   :  { %750 = vrot.lane.b32.xlu1 %v634_v46, %s4287_s29  ;;  %732 = vrot.lane.b32.xlu0 %v625_v43, %s4287_s29 }
 0x1a1   :  { %734 = vrot.lane.b32.xlu1 %v626_v49, %s4287_s29  ;;  %716 = vrot.lane.b32.xlu0 %v617_v10, %s4287_s29 }
 0x1a5   :  { %718 = vrot.lane.b32.xlu1 %v618_v28, %s4287_s29  ;;  %700 = vrot.lane.b32.xlu0 %v609_v4, %s4287_s29 }
 0x1a9   :  { %702 = vrot.lane.b32.xlu1 %v610_v52, %s4287_s29  ;;  %768 = vrot.lane.b32.xlu0 %v643_v33, %s4287_s29 }
 0x1ad   :  { %752 = vrot.lane.b32.xlu1 %v635_v53, %s4287_s29  ;;  %736 = vrot.lane.b32.xlu0 %v627_v40, %s4287_s29 }
 0x1b1   :  { %720 = vrot.lane.b32.xlu1 %v619_v34, %s4287_s29  ;;  %704 = vrot.lane.b32.xlu0 %v611_v24, %s4287_s29 }
 0x1b5   :  { %647 = vperm.xlu1 %4095, %v644_v63   ;;  %1143 = vrot.lane.b32.xlu0 %v4277_v3, %s4281_s6 }
 0x1b9   :  { %1104 = vrot.lane.b32.xlu1 %v4277_v3, %s4284_s26  ;;  %1230 = vrot.lane.b32.xlu0 %v4277_v3, %s4282_s24 }
 0x1ca   :  { %v739_v32 = vpop.permute.xlu0 %738 }
 0x1cb   :  { %v755_v26 = vpop.permute.xlu1 %754 }
 0x1d2   :  { %v723_v62 = vpop.permute.xlu1 %722 }
 0x1db   :  { %v707_v17 = vpop.permute.xlu0 %706 }
 0x1df   :  { %v691_v59 = vpop.permute.xlu1 %690  ;;  %v757_v42 = vpop.permute.xlu0 %756 }
 0x1e0   :  { %v799_v45 = vsel %vm7200_vm6, %v755_v26, %v757_v42 }
 0x1e1   :  { %v840_v25 = vsel %vm7208_vm7, %v799_v45, 0 }
 0x1e3   :  { %v759_v22 = vpop.permute.xlu1 %758  ;;  %v741_v19 = vpop.permute.xlu0 %740 }
 0x1e4   :  { %v800_v21 = vsel %vm7200_vm6, %v757_v42, %v759_v22  ;;  %v792_v61 = vsel %vm7200_vm6, %v739_v32, %v741_v19 }
 0x1e5   :  { %3558 = vmatprep.subr.msk.bf16.mxu0 %vm7208_vm7, %v800_v21 }
 0x1e6   :  { %867 = vmatpush1.bf16.msra.mxu0 %v840_v25 }
 0x1e7   :  { %v743_v50 = vpop.permute.xlu1 %742  ;;  %v727_v14 = vpop.permute.xlu0 %726 }
 0x1e8   :  { %v793_v9 = vsel %vm7200_vm6, %v741_v19, %v743_v50 }
 0x1e9   :  { %868 = vmatprep.subr.bf16.mxu0 %v793_v9 }
 0x1ea   :  { %869 = vmatpush1.bf16.msra.mxu0 %v792_v61 }
 0x1eb   :  { %v725_v36 = vpop.permute.xlu1 %724  ;;  %v709_v0 = vpop.permute.xlu0 %708 }
 0x1ec   :  { %v786_v29 = vsel %vm7200_vm6, %v725_v36, %v727_v14  ;;  %v785_v6 = vsel %vm7200_vm6, %v723_v62, %v725_v36  ;;  %v778_v15 = vsel %vm7200_vm6, %v707_v17, %v709_v0 }
 0x1ed   :  { %870 = vmatprep.subr.bf16.mxu0 %v786_v29 }
 0x1ee   :  { %871 = vmatpush1.bf16.msra.mxu0 %v785_v6  ;;  %v4226_v6 = vld [vmem:[#allocation2] sm:$0xff] }
 0x1ef   :  { %v711_v57 = vpop.permute.xlu1 %710  ;;  %v695_v56 = vpop.permute.xlu0 %694 }
 0x1f0   :  { %v779_v12 = vsel %vm7200_vm6, %v709_v0, %v711_v57 }
 0x1f1   :  { %872 = vmatprep.subr.bf16.mxu0 %v779_v12 }
 0x1f2   :  { %873 = vmatpush1.bf16.msra.mxu0 %v778_v15 }
 0x1f3   :  { %v693_v31 = vpop.permute.xlu1 %692  ;;  %v761_v16 = vpop.permute.xlu0 %760 }
 0x1f4   :  { %v772_v46 = vsel %vm7200_vm6, %v693_v31, %v695_v56  ;;  %v771_v43 = vsel %vm7200_vm6, %v691_v59, %v693_v31  ;;  %v801_v23 = vsel %vm7200_vm6, %v759_v22, %v761_v16 }
 0x1f5   :  { %874 = vmatprep.subr.bf16.mxu0 %v772_v46  ;;  %v846_v47 = vsel %vm7208_vm7, %v801_v23, 0  ;;  %v1269_v23 = vmul.f32 0.140625, %v4226_v6 }
 0x1f6   :  { %875 = vmatpush1.bf16.msra.mxu0 %v771_v43  ;;  %v4838_v43 = vmul.f32 0.015625, %v4226_v6 }
 0x1f7   :  { %v763_v58 = vpop.permute.xlu1 %762  ;;  %v745_v8 = vpop.permute.xlu0 %744  ;;  %1324 = vrot.lane.b32.xlu0 %v1269_v23, %s4286_s28 }
 0x1f8   :  { %v802_v41 = vsel %vm7200_vm6, %v761_v16, %v763_v58  ;;  %v794_v13 = vsel %vm7200_vm6, %v743_v50, %v745_v8  ;;  %1190 = vrot.lane.b32.xlu1 %v4838_v43, %s4289_s2 }
 0x1f9   :  { %3559 = vmatmul.mubr.msk.bf16.vlgmr.msra.gmra.mxu0 %vm7207_vm8, %v4793_v55  ;;  %3560 = vmatprep.subr.msk.bf16.mxu1 %vm7208_vm7, %v802_v41 }
 0x1fa   :  { %908 = vmatpush1.bf16.msra.mxu1 %v846_v47  ;;  %974 = vmatprep.mubr.bf16.mxu0 %v7193_v2 }
 0x1fb   :  { %v747_v44 = vpop.permute.xlu1 %746  ;;  %v729_v49 = vpop.permute.xlu0 %728  ;;  %1403 = vrot.lane.b32.xlu0 %v4277_v3, %s4283_s25 }
 0x1fc   :  { %v795_v10 = vsel %vm7200_vm6, %v745_v8, %v747_v44  ;;  %v787_v28 = vsel %vm7200_vm6, %v727_v14, %v729_v49  ;;  %1285 = vrot.lane.b32.xlu1 %v1269_v23, %s4285_s27 }
 0x1fd   :  { %909 = vmatprep.subr.bf16.mxu1 %v795_v10 }
 0x1fe   :  { %910 = vmatpush1.bf16.msra.mxu1 %v794_v13 }
 0x1ff   :  { %v731_v48 = vpop.permute.xlu1 %730  ;;  %v713_v11 = vpop.permute.xlu0 %712 }
 0x200   :  { %v788_v37 = vsel %vm7200_vm6, %v729_v49, %v731_v48  ;;  %v780_v54 = vsel %vm7200_vm6, %v711_v57, %v713_v11  ;;  %1363 = vrot.lane.b32.xlu1 %v4277_v3, %s4290_s13 }
 0x201   :  { %911 = vmatprep.subr.bf16.mxu1 %v788_v37 }
 0x202   :  { %912 = vmatpush1.bf16.msra.mxu1 %v787_v28 }
 0x203   :  { %v715_v4 = vpop.permute.xlu1 %714  ;;  %v697_v1 = vpop.permute.xlu0 %696 }
 0x204   :  { %v781_v20 = vsel %vm7200_vm6, %v713_v11, %v715_v4  ;;  %v773_v30 = vsel %vm7200_vm6, %v695_v56, %v697_v1  ;;  %1442 = vrot.lane.b32.xlu1 %v1269_v23, %s4279_s1 }
 0x205   :  { %913 = vmatprep.subr.bf16.mxu1 %v781_v20 }
 0x206   :  { %914 = vmatpush1.bf16.msra.mxu1 %v780_v54 }
 0x207   :  { %v699_v33 = vpop.permute.xlu1 %698  ;;  %v765_v52 = vpop.permute.xlu0 %764 }
 0x208   :  { %v774_v18 = vsel %vm7200_vm6, %v697_v1, %v699_v33  ;;  %v803_v40 = vsel %vm7200_vm6, %v763_v58, %v765_v52 }
 0x209   :  { %915 = vmatprep.subr.bf16.mxu1 %v774_v18  ;;  %v852_v39 = vsel %vm7208_vm7, %v803_v40, 0 }
 0x20a   :  { %916 = vmatpush1.bf16.msra.mxu1 %v773_v30 }
 0x20b   :  { %v767_v53 = vpop.permute.xlu1 %766  ;;  %v749_v34 = vpop.permute.xlu0 %748  ;;  %3838 = vmatprep.subr.bf16.mxu1 %v4277_v3 }
 0x20c   :  { %v804_v24 = vsel %vm7200_vm6, %v765_v52, %v767_v53  ;;  %v796_v62 = vsel %vm7200_vm6, %v747_v44, %v749_v34 }
 0x20d   :  { %3561 = vmatmul.mubr.msk.bf16.vlgmr.msra.gmra.mxu1 %vm7207_vm8, %v4793_v55  ;;  %3562 = vmatprep.subr.msk.bf16.mxu0 %vm7208_vm7, %v804_v24 }
 0x20e   :  { %949 = vmatpush1.bf16.msra.mxu0 %v852_v39  ;;  %3848 = vmatprep.mubr.msk.bf16.mxu1 %vm7204_vm2, %v4277_v3  ;;  %vm7212_vm2 = vcmask 523264  }
 0x20f   :  { %v751_v63 = vpop.permute.xlu1 %750  ;;  %v733_v32 = vpop.permute.xlu0 %732 }
 0x210   :  { %v797_v26 = vsel %vm7200_vm6, %v749_v34, %v751_v63  ;;  %v789_v45 = vsel %vm7200_vm6, %v731_v48, %v733_v32 }
 0x211   :  { %950 = vmatprep.subr.bf16.mxu0 %v797_v26 }
 0x212   :  { %951 = vmatpush1.bf16.msra.mxu0 %v796_v62 }
 0x213   :  { %v735_v17 = vpop.permute.xlu1 %734  ;;  %v717_v59 = vpop.permute.xlu0 %716 }
 0x214   :  { %v790_v42 = vsel %vm7200_vm6, %v733_v32, %v735_v17  ;;  %v782_v25 = vsel %vm7200_vm6, %v715_v4, %v717_v59 }
 0x215   :  { %952 = vmatprep.subr.bf16.mxu0 %v790_v42 }
 0x216   :  { %953 = vmatpush1.bf16.msra.mxu0 %v789_v45 }
 0x217   :  { %v719_v22 = vpop.permute.xlu1 %718  ;;  %v701_v19 = vpop.permute.xlu0 %700 }
 0x218   :  { %v783_v21 = vsel %vm7200_vm6, %v717_v59, %v719_v22  ;;  %v775_v0 = vsel %vm7200_vm6, %v699_v33, %v701_v19 }
 0x219   :  { %954 = vmatprep.subr.bf16.mxu0 %v783_v21 }
 0x21a   :  { %955 = vmatpush1.bf16.msra.mxu0 %v782_v25 }
 0x21b   :  { %v703_v50 = vpop.permute.xlu1 %702  ;;  %v769_v14 = vpop.permute.xlu0 %768 }
 0x21c   :  { %v805_v9 = vsel %vm7200_vm6, %v767_v53, %v769_v14  ;;  %v776_v61 = vsel %vm7200_vm6, %v701_v19, %v703_v50 }
 0x21d   :  { %v858_v36 = vsel %vm7208_vm7, %v805_v9, 0  ;;  %956 = vmatprep.subr.bf16.mxu0 %v776_v61  ;;  %vm7214_vm7 = vcmask 506880  }
 0x21e   :  { %957 = vmatpush1.bf16.msra.mxu0 %v775_v0  ;;  %3839 = vmatpush3.bf16.msra.mxu1 %v858_v36 }
 0x21f   :  { %v753_v29 = vpop.permute.xlu1 %752  ;;  %3840 = vmatprep.subr.bf16.mxu1 %v4226_v6  ;;  %v737_v56 = vpop.permute.xlu0 %736 }
 0x220   :  { %v798_v57 = vsel %vm7200_vm6, %v751_v63, %v753_v29  ;;  %v791_v12 = vsel %vm7200_vm6, %v735_v17, %v737_v56 }
 0x221   :  { %3563 = vmatmul.mubr.msk.bf16.vlgmr.msra.gmra.mxu0 %vm7207_vm8, %v4793_v55 }
 0x222   :  { %3841 = vmatpush3.bf16.msra.mxu1 %v798_v57  ;;  %2107 = vmatprep.mubr.bf16.mxu0 %v7193_v2 }
 0x223   :  { %3842 = vmatprep.subr.bf16.mxu1 %v4226_v6  ;;  %v721_v15 = vpop.permute.xlu1 %720  ;;  %v705_v16 = vpop.permute.xlu0 %704 }
 0x224   :  { %v784_v31 = vsel %vm7200_vm6, %v719_v22, %v721_v15  ;;  %v777_v46 = vsel %vm7200_vm6, %v703_v50, %v705_v16  ;;  %vm1531_vm6 = vcmask 678912  }
 0x226   :  { %3843 = vmatpush3.bf16.msra.mxu1 %v791_v12 }
 0x227   :  { %3844 = vmatprep.subr.bf16.mxu1 %v4226_v6 }
 0x22a   :  { %3845 = vmatpush3.bf16.msra.mxu1 %v784_v31 }
 0x22b   :  { %3846 = vmatprep.subr.bf16.mxu1 %v4226_v6 }
 0x22e   :  { %3847 = vmatpush3.bf16.msra.mxu1 %v777_v46 }
 0x231   :  { %3849 = vmatmul.mubr.msk.bf16.vlgmr.msra.gmra.mxu1 %vm7207_vm8, %v4793_v55  ;;  %v4849_v55 = vpop.permute.xlu1 %647  ;;  %vm7215_vm8 = vcmask 515072  }
 0x232   :  { %2148 = vmatprep.mubr.bf16.mxu1 %v7193_v2 }
 0x2b9   :  { %v894_v58 = vpop.f32.mrf.mxu0 }
 0x2ba   :  { %v895_v8 = vadd.f32 %v894_v58, %v4849_v55  ;;  %v4970_v58 = vpop.permute.xlu1 %1104 }
 0x2bb   :  { %v896_v41 = vpop.f32.mrf.mxu0 }
 0x2bc   :  { %vm1023_vm9 = vcmp.ge.f32.partialorder %v895_v8, 0.0  ;;  %v1030_v47 = vmul.f32 0.2, %v895_v8  ;;  %v897_v44 = vadd.f32 %v896_v41, %v4849_v55  ;;  %v4977_v41 = vpop.permute.xlu0 %1143 }
 0x2bd   :  { %v898_v49 = vpop.f32.mrf.mxu0 }
 0x2be   :  { %v1037_v10 = vsel %vm1023_vm9, %v895_v8, %v1030_v47  ;;  %vm1024_vm10 = vcmp.ge.f32.partialorder %v897_v44, 0.0  ;;  %v1031_v13 = vmul.f32 0.2, %v897_v44  ;;  %v4975_v8 = vpop.permute.xlu1 %1190 }
 0x2bf   :  { %v1044_v48 = vmul.f32 1.4142135, %v1037_v10  ;;  %v899_v11 = vpop.f32.mrf.mxu0 }
 0x2c0   :  { %v1038_v37 = vsel %vm1024_vm10, %v897_v44, %v1031_v13  ;;  %v4990_v49 = vpop.permute.xlu0 %1230 }
 0x2c1   :  { %v1051_v3 = vmul.f32 %v1044_v48, %v4426_v5  ;;  %v1045_v28 = vmul.f32 1.4142135, %v1038_v37 }
 0x2c2   :  { %v4988_v44 = vpop.permute.xlu1 %1285 }
 0x2c3   :  { %1058 = vst [vmem:[%s7188_s7] sm:$0xff] %v1051_v3  ;;  %v1052_v4 = vmul.f32 %v1045_v28, %v4421_v60  ;;  %v4858_v1 = vmul.f32 0.046875, %v1051_v3  ;;  %v4867_v5 = vmul.f32 0.015625, %v1051_v3  ;;  %v1270_v60 = vmul.f32 0.140625, %v1051_v3 }
 0x2c4   :  { %v4996_v13 = vpop.permute.xlu0 %1324 }
 0x2c5   :  { %1059 = vst [vmem:[%s7188_s7 + $0x8] sm:$0xff] %v1052_v4  ;;  %1145 = vrot.lane.b32.xlu1 %v4858_v1, %s4281_s6  ;;  %1106 = vrot.lane.b32.xlu0 %v4858_v1, %s4284_s26  ;;  %v1090_v24 = vmul.f32 0.046875, %v1052_v4  ;;  %v4909_v50 = vmul.f32 0.015625, %v1052_v4 }
 0x2c6   :  { %v4994_v10 = vpop.permute.xlu1 %1363 }
 0x2c8   :  { %v5005_v11 = vpop.permute.xlu0 %1403 }
 0x2c9   :  { %1232 = vrot.lane.b32.xlu1 %v4858_v1, %s4282_s24  ;;  %1192 = vrot.lane.b32.xlu0 %v4867_v5, %s4289_s2  ;;  %7230 = vst [vmem:[#allocation4_spill] sm:$0xff] %v5005_v11 }
 0x2ca   :  { %v5003_v48 = vpop.permute.xlu1 %1442 }
 0x2cb   :  { %7229 = vst [vmem:[#allocation3_spill] sm:$0xff] %v5003_v48 }
 0x2cd   :  { %v935_v20 = vpop.f32.mrf.mxu1  ;;  %1326 = vrot.lane.b32.xlu1 %v1270_v60, %s4286_s28  ;;  %1287 = vrot.lane.b32.xlu0 %v1270_v60, %s4285_s27 }
 0x2ce   :  { %v936_v54 = vadd.f32 %v935_v20, %v4849_v55 }
 0x2cf   :  { %v937_v33 = vpop.f32.mrf.mxu1 }
 0x2d0   :  { %vm1025_vm9 = vcmp.ge.f32.partialorder %v936_v54, 0.0  ;;  %v1032_v52 = vmul.f32 0.2, %v936_v54  ;;  %v938_v18 = vadd.f32 %v937_v33, %v4849_v55 }
 0x2d1   :  { %1405 = vrot.lane.b32.xlu1 %v4858_v1, %s4283_s25  ;;  %1365 = vrot.lane.b32.xlu0 %v4858_v1, %s4290_s13  ;;  %v939_v30 = vpop.f32.mrf.mxu1 }
 0x2d2   :  { %v1039_v40 = vsel %vm1025_vm9, %v936_v54, %v1032_v52  ;;  %vm1026_vm10 = vcmp.ge.f32.partialorder %v938_v18, 0.0  ;;  %v1033_v53 = vmul.f32 0.2, %v938_v18 }
 0x2d3   :  { %v1046_v34 = vmul.f32 1.4142135, %v1039_v40  ;;  %v940_v39 = vpop.f32.mrf.mxu1 }
 0x2d4   :  { %v1040_v63 = vsel %vm1026_vm10, %v938_v18, %v1033_v53 }
 0x2d5   :  { %v4882_v32 = vmul.f32 %v1046_v34, %v4405_v35  ;;  %v1047_v26 = vmul.f32 1.4142135, %v1040_v63  ;;  %1147 = vrot.lane.b32.xlu1 %v1090_v24, %s4281_s6  ;;  %1444 = vrot.lane.b32.xlu0 %v1270_v60, %s4279_s1  ;;  %v1271_v35 = vmul.f32 0.140625, %v1052_v4 }
 0x2d7   :  { %1060 = vst [vmem:[%s7188_s7 + $0x10] sm:$0xff] %v4882_v32  ;;  %v4891_v62 = vmul.f32 %v1047_v26, %v4416_v51  ;;  %v1091_v15 = vmul.f32 0.046875, %v4882_v32  ;;  %v4947_v46 = vmul.f32 0.015625, %v4882_v32 }
 0x2d9   :  { %1061 = vst [vmem:[%s7188_s7 + $0x18] sm:$0xff] %v4891_v62  ;;  %1234 = vrot.lane.b32.xlu1 %v1090_v24, %s4282_s24  ;;  %1481 = vrot.lane.b32.xlu0 %v1270_v60, %s4280_s21  ;;  %v1092_v23 = vmul.f32 0.046875, %v4891_v62  ;;  %v4982_v47 = vmul.f32 0.015625, %v4891_v62 }
 0x2dd   :  { %1328 = vrot.lane.b32.xlu1 %v1271_v35, %s4286_s28  ;;  %1517 = vrot.lane.b32.xlu0 %v4858_v1, %s4291_s23 }
 0x2e1   :  { %v976_v17 = vpop.f32.mrf.mxu0  ;;  %1407 = vrot.lane.b32.xlu1 %v1090_v24, %s4283_s25  ;;  %1557 = vrot.lane.b32.xlu0 %v4867_v5, %s4292_s30 }
 0x2e2   :  { %v977_v51 = vadd.f32 %v976_v17, %v4849_v55 }
 0x2e3   :  { %v978_v59 = vpop.f32.mrf.mxu0 }
 0x2e4   :  { %vm1027_vm9 = vcmp.ge.f32.partialorder %v977_v51, 0.0  ;;  %v1034_v42 = vmul.f32 0.2, %v977_v51  ;;  %v979_v45 = vadd.f32 %v978_v59, %v4849_v55 }
 0x2e5   :  { %1483 = vrot.lane.b32.xlu1 %v1271_v35, %s4280_s21  ;;  %1108 = vrot.lane.b32.xlu0 %v1090_v24, %s4284_s26  ;;  %v980_v22 = vpop.f32.mrf.mxu0 }
 0x2e6   :  { %v1041_v19 = vsel %vm1027_vm9, %v977_v51, %v1034_v42  ;;  %vm1028_vm10 = vcmp.ge.f32.partialorder %v979_v45, 0.0  ;;  %v1035_v21 = vmul.f32 0.2, %v979_v45 }
 0x2e7   :  { %v1048_v25 = vmul.f32 1.4142135, %v1041_v19  ;;  %v981_v14 = vpop.f32.mrf.mxu0 }
 0x2e8   :  { %v1042_v9 = vsel %vm1028_vm10, %v979_v45, %v1035_v21  ;;  %vm1206_vm10 = vcmask 1022976  }
 0x2e9   :  { %v4912_v61 = vmul.f32 %v1048_v25, %v4462_v27  ;;  %v1049_v36 = vmul.f32 1.4142135, %v1042_v9  ;;  %1559 = vrot.lane.b32.xlu1 %v4909_v50, %s4292_s30  ;;  %1194 = vrot.lane.b32.xlu0 %v4909_v50, %s4289_s2 }
 0x2eb   :  { %1062 = vst [vmem:[%s7188_s7 + $0x20] sm:$0xff] %v4912_v61  ;;  %v4923_v0 = vmul.f32 %v1049_v36, %v4483_v38  ;;  %v1093_v37 = vmul.f32 0.046875, %v4912_v61  ;;  %v5015_v4 = vmul.f32 0.015625, %v4912_v61  ;;  %v1274_v54 = vmul.f32 0.140625, %v4912_v61 }
 0x2ed   :  { %1063 = vst [vmem:[%s7188_s7 + $0x28] sm:$0xff] %v4923_v0  ;;  %1601 = vrot.lane.b32.xlu1 %v1090_v24, %s4293_s15  ;;  %1289 = vrot.lane.b32.xlu0 %v1271_v35, %s4285_s27  ;;  %v1094_v39 = vmul.f32 0.046875, %v4923_v0  ;;  %v5084_v19 = vmul.f32 0.015625, %v4923_v0 }
 0x2ef   :  { %7238 = vst [vmem:[#allocation12_spill] sm:$0xff] %v5084_v19 }
 0x2f1   :  { %v1017_v27 = vpop.f32.mrf.mxu1  ;;  %1641 = vrot.lane.b32.xlu1 %v1090_v24, %s4294_s16  ;;  %1367 = vrot.lane.b32.xlu0 %v1090_v24, %s4290_s13 }
 0x2f2   :  { %v1018_v29 = vadd.f32 %v1017_v27, %v4849_v55  ;;  %v1273_v55 = vmul.f32 0.140625, %v4891_v62 }
 0x2f3   :  { %v3850_v38 = vpop.f32.mrf.mxu1 }
 0x2f4   :  { %vm1029_vm9 = vcmp.ge.f32.partialorder %v1018_v29, 0.0  ;;  %v1036_v6 = vmul.f32 0.2, %v1018_v29 }
 0x2f5   :  { %1681 = vrot.lane.b32.xlu1 %v4909_v50, %s4295_s17  ;;  %1446 = vrot.lane.b32.xlu0 %v1271_v35, %s4279_s1  ;;  %v1020_v57 = vpop.f32.mrf.mxu1  ;;  %v1275_v35 = vmul.f32 0.140625, %v4923_v0 }
 0x2f6   :  { %v1043_v56 = vsel %vm1029_vm9, %v1018_v29, %v1036_v6  ;;  %vm1379_vm9 = vcmask 850944  }
 0x2f7   :  { %v1050_v12 = vmul.f32 1.4142135, %v1043_v56  ;;  %v3851_v31 = vpop.f32.mrf.mxu1  ;;  %v5123_v56 = vld [vmem:[#allocation2 + $0x40] sm:$0xff] }
 0x2f8   :  { %7242 = vst [vmem:[#allocation16_spill] sm:$0xff] %v5123_v56 }
 0x2f9   :  { %v1057_v16 = vmul.f32 %v1050_v12, %v4432_v7  ;;  %1519 = vrot.lane.b32.xlu0 %v1090_v24, %s4291_s23  ;;  %1110 = vrot.lane.b32.xlu1 %v1091_v15, %s4284_s26  ;;  %v1272_v7 = vmul.f32 0.140625, %v4882_v32 }
 0x2fb   :  { %1064 = vst.msk [vmem:[%s7188_s7 + $0x30] sm:$0xff] %vm7213_vm3, %v1057_v16  ;;  %1071 = vst.msk [vmem:[#allocation2 + $0x38] sm:$0xff] %vm7213_vm3, %v1057_v16  ;;  %s4296_s7 = smov 44  }
 0x2fd   :  { %1149 = vrot.lane.b32.xlu0 %v1091_v15, %s4281_s6  ;;  %1196 = vrot.lane.b32.xlu1 %v4947_v46, %s4289_s2 }
 0x301   :  { %1236 = vrot.lane.b32.xlu0 %v1091_v15, %s4282_s24  ;;  %1291 = vrot.lane.b32.xlu1 %v1272_v7, %s4285_s27 }
 0x302   :  { %v1079_v31 = vld [vmem:[#allocation2 + $0x38] sm:$0xff] }
 0x305   :  { %1330 = vrot.lane.b32.xlu0 %v1272_v7, %s4286_s28  ;;  %1369 = vrot.lane.b32.xlu1 %v1091_v15, %s4290_s13 }
 0x309   :  { %1409 = vrot.lane.b32.xlu0 %v1091_v15, %s4283_s25  ;;  %1448 = vrot.lane.b32.xlu1 %v1272_v7, %s4279_s1 }
 0x30d   :  { %1485 = vrot.lane.b32.xlu0 %v1272_v7, %s4280_s21  ;;  %1521 = vrot.lane.b32.xlu1 %v1091_v15, %s4291_s23  ;;  %v5137_v7 = vmul.f32 0.015625, %v5123_v56 }
 0x311   :  { %1561 = vrot.lane.b32.xlu0 %v4947_v46, %s4292_s30  ;;  %1151 = vrot.lane.b32.xlu1 %v1092_v23, %s4281_s6 }
 0x315   :  { %1603 = vrot.lane.b32.xlu0 %v1091_v15, %s4293_s15  ;;  %1238 = vrot.lane.b32.xlu1 %v1092_v23, %s4282_s24 }
 0x319   :  { %1643 = vrot.lane.b32.xlu0 %v1091_v15, %s4294_s16  ;;  %1332 = vrot.lane.b32.xlu1 %v1273_v55, %s4286_s28 }
 0x31d   :  { %1683 = vrot.lane.b32.xlu0 %v4947_v46, %s4295_s17  ;;  %1411 = vrot.lane.b32.xlu1 %v1092_v23, %s4283_s25 }
 0x321   :  { %1112 = vrot.lane.b32.xlu0 %v1092_v23, %s4284_s26  ;;  %1487 = vrot.lane.b32.xlu1 %v1273_v55, %s4280_s21 }
 0x325   :  { %1198 = vrot.lane.b32.xlu0 %v4982_v47, %s4289_s2  ;;  %1563 = vrot.lane.b32.xlu1 %v4982_v47, %s4292_s30 }
 0x329   :  { %1293 = vrot.lane.b32.xlu0 %v1273_v55, %s4285_s27  ;;  %1605 = vrot.lane.b32.xlu1 %v1092_v23, %s4293_s15 }
 0x32d   :  { %1371 = vrot.lane.b32.xlu0 %v1092_v23, %s4290_s13  ;;  %1645 = vrot.lane.b32.xlu1 %v1092_v23, %s4294_s16 }
 0x331   :  { %1450 = vrot.lane.b32.xlu0 %v1273_v55, %s4279_s1  ;;  %1685 = vrot.lane.b32.xlu1 %v4982_v47, %s4295_s17 }
 0x335   :  { %1523 = vrot.lane.b32.xlu0 %v1092_v23, %s4291_s23  ;;  %1114 = vrot.lane.b32.xlu1 %v1093_v37, %s4284_s26 }
 0x337   :  { %v5010_v3 = vpop.permute.xlu1 %1145  ;;  %v5012_v28 = vpop.permute.xlu0 %1106 }
 0x339   :  { %1153 = vrot.lane.b32.xlu0 %v1093_v37, %s4281_s6  ;;  %1200 = vrot.lane.b32.xlu1 %v5015_v4, %s4289_s2 }
 0x33b   :  { %v5020_v60 = vpop.permute.xlu1 %1232  ;;  %v5022_v20 = vpop.permute.xlu0 %1192 }
 0x33d   :  { %1240 = vrot.lane.b32.xlu0 %v1093_v37, %s4282_s24  ;;  %1295 = vrot.lane.b32.xlu1 %v1274_v54, %s4285_s27 }
 0x33f   :  { %v5027_v33 = vpop.permute.xlu1 %1326  ;;  %v5029_v52 = vpop.permute.xlu0 %1287 }
 0x341   :  { %1334 = vrot.lane.b32.xlu0 %v1274_v54, %s4286_s28  ;;  %1373 = vrot.lane.b32.xlu1 %v1093_v37, %s4290_s13 }
 0x343   :  { %v5033_v18 = vpop.permute.xlu1 %1405  ;;  %v5035_v30 = vpop.permute.xlu0 %1365 }
 0x344   :  { %7231 = vst [vmem:[#allocation5_spill] sm:$0xff] %v5033_v18 }
 0x345   :  { %1413 = vrot.lane.b32.xlu0 %v1093_v37, %s4283_s25  ;;  %1452 = vrot.lane.b32.xlu1 %v1274_v54, %s4279_s1 }
 0x347   :  { %v5039_v40 = vpop.permute.xlu1 %1147  ;;  %v5041_v53 = vpop.permute.xlu0 %1444 }
 0x348   :  { %7232 = vst [vmem:[#allocation6_spill] sm:$0xff] %v5041_v53 }
 0x349   :  { %1489 = vrot.lane.b32.xlu0 %v1274_v54, %s4280_s21  ;;  %1525 = vrot.lane.b32.xlu1 %v1093_v37, %s4291_s23  ;;  %v5146_v54 = vmul.f32 0.046875, %v1079_v31 }
 0x34b   :  { %v5045_v34 = vpop.permute.xlu1 %1234  ;;  %v5047_v24 = vpop.permute.xlu0 %1481 }
 0x34c   :  { %7233 = vst [vmem:[#allocation7_spill] sm:$0xff] %v5047_v24 }
 0x34d   :  { %1565 = vrot.lane.b32.xlu0 %v5015_v4, %s4292_s30  ;;  %1155 = vrot.lane.b32.xlu1 %v1094_v39, %s4281_s6 }
 0x34f   :  { %v5053_v63 = vpop.permute.xlu1 %1328  ;;  %v5055_v32 = vpop.permute.xlu0 %1517 }
 0x350   :  { %7234 = vst [vmem:[#allocation8_spill] sm:$0xff] %v5055_v32 }
 0x351   :  { %1607 = vrot.lane.b32.xlu0 %v1093_v37, %s4293_s15  ;;  %1242 = vrot.lane.b32.xlu1 %v1094_v39, %s4282_s24 }
 0x353   :  { %v5059_v26 = vpop.permute.xlu1 %1407  ;;  %v5061_v62 = vpop.permute.xlu0 %1557 }
 0x354   :  { %7235 = vst [vmem:[#allocation9_spill] sm:$0xff] %v5061_v62 }
 0x355   :  { %1647 = vrot.lane.b32.xlu0 %v1093_v37, %s4294_s16  ;;  %1336 = vrot.lane.b32.xlu1 %v1275_v35, %s4286_s28 }
 0x357   :  { %v5066_v17 = vpop.permute.xlu1 %1483  ;;  %v5068_v51 = vpop.permute.xlu0 %1108 }
 0x358   :  { %7236 = vst [vmem:[#allocation10_spill] sm:$0xff] %v5066_v17 }
 0x359   :  { %1687 = vrot.lane.b32.xlu0 %v5015_v4, %s4295_s17  ;;  %1415 = vrot.lane.b32.xlu1 %v1094_v39, %s4283_s25 }
 0x35b   :  { %v5073_v59 = vpop.permute.xlu1 %1559  ;;  %v5075_v42 = vpop.permute.xlu0 %1194 }
 0x35d   :  { %1116 = vrot.lane.b32.xlu0 %v1094_v39, %s4284_s26  ;;  %1491 = vrot.lane.b32.xlu1 %v1275_v35, %s4280_s21 }
 0x35f   :  { %v5079_v45 = vpop.permute.xlu1 %1601  ;;  %v5081_v22 = vpop.permute.xlu0 %1289 }
 0x360   :  { %7237 = vst [vmem:[#allocation11_spill] sm:$0xff] %v5079_v45 }
 0x361   :  { %1202 = vrot.lane.b32.xlu0 %v5084_v19, %s4289_s2  ;;  %1639 = vrot.lane.b32.xlu1 %v4858_v1, %s4294_s16 }
 0x363   :  { %v5090_v21 = vpop.permute.xlu1 %1641  ;;  %v5092_v25 = vpop.permute.xlu0 %1367 }
 0x365   :  { %1297 = vrot.lane.b32.xlu0 %v1275_v35, %s4285_s27  ;;  %1679 = vrot.lane.b32.xlu1 %v4867_v5, %s4295_s17 }
 0x367   :  { %v5097_v14 = vpop.permute.xlu1 %1681  ;;  %v5099_v9 = vpop.permute.xlu0 %1446 }
 0x368   :  { %7239 = vst [vmem:[#allocation13_spill] sm:$0xff] %v5097_v14  ;;  %7240 = vst [vmem:[#allocation14_spill] sm:$0xff] %v5099_v9 }
 0x369   :  { %1375 = vrot.lane.b32.xlu0 %v1094_v39, %s4290_s13  ;;  %1567 = vrot.lane.b32.xlu1 %v5084_v19, %s4292_s30 }
 0x36b   :  { %v5104_v61 = vpop.permute.xlu1 %1110  ;;  %v5106_v36 = vpop.permute.xlu0 %1519 }
 0x36c   :  { %7241 = vst [vmem:[#allocation15_spill] sm:$0xff] %v5106_v36  ;;  %v1122_v0 = vsel %vm368_vm14, %v5068_v51, %v5104_v61 }
 0x36d   :  { %1609 = vrot.lane.b32.xlu1 %v1094_v39, %s4293_s15  ;;  %1454 = vrot.lane.b32.xlu0 %v1275_v35, %s4279_s1  ;;  %v1137_v27 = vadd.f32 %v1122_v0, %v4909_v50 }
 0x36f   :  { %v5114_v29 = vpop.permute.xlu1 %1196  ;;  %v5116_v38 = vpop.permute.xlu0 %1149 }
 0x370   :  { %v1161_v6 = vsel %vm400_vm11, %v5039_v40, %v5116_v38  ;;  %v1209_v50 = vsel %vm1206_vm10, %v5075_v42, %v5114_v29 }
 0x371   :  { %v1176_v57 = vadd.f32 %v1161_v6, %v1137_v27  ;;  %1649 = vrot.lane.b32.xlu1 %v1094_v39, %s4294_s16  ;;  %1527 = vrot.lane.b32.xlu0 %v1094_v39, %s4291_s23 }
 0x373   :  { %v5125_v12 = vpop.permute.xlu1 %1291  ;;  %v5127_v15 = vpop.permute.xlu0 %1236  ;;  %v1224_v16 = vadd.f32 %v1209_v50, %v1176_v57 }
 0x374   :  { %v1248_v23 = vsel %vm432_vm12, %v5045_v34, %v5127_v15  ;;  %v1303_v27 = vsel %vm462_vm5, %v5081_v22, %v5125_v12 }
 0x375   :  { %1689 = vrot.lane.b32.xlu1 %v5084_v19, %s4295_s17  ;;  %1599 = vrot.lane.b32.xlu0 %v4858_v1, %s4293_s15  ;;  %v1263_v39 = vadd.f32 %v1248_v23, %v1224_v16  ;;  %v1597_v1 = vmul.f32 0.046875, %v5123_v56  ;;  %v5170_v23 = vmul.f32 0.015625, %v1079_v31  ;;  %v1276_v56 = vmul.f32 0.140625, %v1079_v31 }
 0x377   :  { %v5142_v55 = vpop.permute.xlu1 %1369  ;;  %v5144_v37 = vpop.permute.xlu0 %1330  ;;  %v1318_v6 = vadd.f32 %v1303_v27, %v1263_v39 }
 0x378   :  { %v1342_v57 = vsel %vm491_vm4, %v5053_v63, %v5144_v37  ;;  %v1382_v19 = vsel %vm1379_vm9, %v5092_v25, %v5142_v55 }
 0x379   :  { %1571 = vrot.lane.b32.xlu1 %v5137_v7, %s4292_s30  ;;  %1118 = vrot.lane.b32.xlu0 %v5146_v54, %s4284_s26  ;;  %v1357_v2 = vadd.f32 %v1342_v57, %v1318_v6 }
 0x37b   :  { %v5153_v35 = vpop.permute.xlu1 %1448  ;;  %v5155_v0 = vpop.permute.xlu0 %1409  ;;  %v1397_v62 = vadd.f32 %v1382_v19, %v1357_v2 }
 0x37c   :  { %v1421_v6 = vsel %vm523_vm1, %v5059_v26, %v5155_v0  ;;  %v1460_v31 = vsel %vm555_vm15, %v5099_v9, %v5153_v35 }
 0x37d   :  { %1613 = vrot.lane.b32.xlu1 %v1597_v1, %s4293_s15  ;;  %1157 = vrot.lane.b32.xlu0 %v5146_v54, %s4281_s6  ;;  %v1436_v24 = vadd.f32 %v1421_v6, %v1397_v62 }
 0x37f   :  { %v5166_v50 = vpop.permute.xlu1 %1521  ;;  %v5168_v16 = vpop.permute.xlu0 %1485  ;;  %v1475_v48 = vadd.f32 %v1460_v31, %v1436_v24 }
 0x380   :  { %v1496_v62 = vsel %vm587_vm13, %v5066_v17, %v5168_v16 }
 0x381   :  { %1204 = vrot.lane.b32.xlu1 %v5170_v23, %s4289_s2  ;;  %1244 = vrot.lane.b32.xlu0 %v5146_v54, %s4282_s24  ;;  %v1511_v53 = vadd.f32 %v1496_v62, %v1475_v48 }
 0x383   :  { %v5176_v39 = vpop.permute.xlu1 %1151  ;;  %v5178_v27 = vpop.permute.xlu0 %1561 }
 0x384   :  { %v1162_v62 = vsel %vm400_vm11, %v5116_v38, %v5176_v39 }
 0x385   :  { %1299 = vrot.lane.b32.xlu1 %v1276_v56, %s4285_s27  ;;  %1338 = vrot.lane.b32.xlu0 %v1276_v56, %s4286_s28 }
 0x387   :  { %v5188_v57 = vpop.permute.xlu1 %1238  ;;  %v5190_v32 = vpop.permute.xlu0 %1603 }
 0x388   :  { %v1249_v38 = vsel %vm432_vm12, %v5127_v15, %v5188_v57 }
 0x389   :  { %1377 = vrot.lane.b32.xlu1 %v5146_v54, %s4290_s13  ;;  %1417 = vrot.lane.b32.xlu0 %v5146_v54, %s4283_s25 }
 0x38b   :  { %v5196_v2 = vpop.permute.xlu1 %1332  ;;  %v5198_v19 = vpop.permute.xlu0 %1643 }
 0x38c   :  { %v1343_v15 = vsel %vm491_vm4, %v5144_v37, %v5196_v2 }
 0x38d   :  { %1456 = vrot.lane.b32.xlu1 %v1276_v56, %s4279_s1  ;;  %1493 = vrot.lane.b32.xlu0 %v1276_v56, %s4280_s21  ;;  %v1533_v56 = vsel %vm1531_vm6, %v5106_v36, %v5166_v50  ;;  %v1575_v36 = vsel %vm7216_vm0, %v5073_v59, %v5178_v27 }
 0x38e   :  { %v1548_v9 = vadd.f32 %v1533_v56, %v1511_v53 }
 0x38f   :  { %v5208_v6 = vpop.permute.xlu1 %1411  ;;  %v5210_v11 = vpop.permute.xlu0 %1683 }
 0x391   :  { %1529 = vrot.lane.b32.xlu1 %v5146_v54, %s4291_s23  ;;  %1569 = vrot.lane.b32.xlu0 %v5170_v23, %s4292_s30 }
 0x393   :  { %v5216_v24 = vpop.permute.xlu1 %1487  ;;  %v1113_v31 = vpop.permute.xlu0 %1112 }
 0x394   :  { %v1123_v17 = vsel %vm368_vm14, %v5104_v61, %v1113_v31 }
 0x395   :  { %v1138_v48 = vadd.f32 %v1123_v17, %v4947_v46  ;;  %1611 = vrot.lane.b32.xlu0 %v5146_v54, %s4293_s15  ;;  %1653 = vrot.lane.b32.xlu1 %v1597_v1, %s4294_s16  ;;  %v1617_v46 = vsel %vm7212_vm2, %v5079_v45, %v5190_v32  ;;  %v1591_v1 = vadd.f32 %v1575_v36, %v1548_v9 }
 0x397   :  { %v5233_v61 = vpop.permute.xlu1 %1563  ;;  %v1177_v53 = vadd.f32 %v1162_v62, %v1138_v48  ;;  %v1199_v56 = vpop.permute.xlu0 %1198  ;;  %v1657_v48 = vsel %vm7215_vm8, %v5090_v21, %v5198_v19  ;;  %v1633_v62 = vadd.f32 %v1617_v46, %v1591_v1 }
 0x398   :  { %v1210_v17 = vsel %vm1206_vm10, %v5114_v29, %v1199_v56  ;;  %v1697_v29 = vsel %vm7214_vm7, %v5097_v14, %v5210_v11 }
 0x399   :  { %v1225_v18 = vadd.f32 %v1210_v17, %v1177_v53  ;;  %1651 = vrot.lane.b32.xlu0 %v5146_v54, %s4294_s16  ;;  %1693 = vrot.lane.b32.xlu1 %v5137_v7, %s4295_s17  ;;  %v1673_v54 = vadd.f32 %v1657_v48, %v1633_v62 }
 0x39b   :  { %v5250_v45 = vpop.permute.xlu1 %1605  ;;  %v1264_v9 = vadd.f32 %v1249_v38, %v1225_v18  ;;  %v1294_v36 = vpop.permute.xlu0 %1293  ;;  %v1713_v46 = vadd.f32 %v1697_v29, %v1673_v54 }
 0x39c   :  { %v1304_v7 = vsel %vm462_vm5, %v5125_v12, %v1294_v36  ;;  %v1422_v12 = vsel %vm523_vm1, %v5155_v0, %v5208_v6 }
 0x39d   :  { %v1319_v53 = vadd.f32 %v1304_v7, %v1264_v9  ;;  %1691 = vrot.lane.b32.xlu0 %v5170_v23, %s4295_s17 }
 0x39f   :  { %v5262_v17 = vpop.permute.xlu1 %1645  ;;  %v1358_v18 = vadd.f32 %v1343_v15, %v1319_v53  ;;  %v1372_v1 = vpop.permute.xlu0 %1371 }
 0x3a0   :  { %v1383_v38 = vsel %vm1379_vm9, %v5142_v55, %v1372_v1  ;;  %v1497_v55 = vsel %vm587_vm13, %v5168_v16, %v5216_v24 }
 0x3a1   :  { %v1398_v14 = vadd.f32 %v1383_v38, %v1358_v18  ;;  %1731 = vrot.lane.b32.xlu0 %v1713_v46, %s4296_s7 }
 0x3a3   :  { %v5270_v48 = vpop.permute.xlu1 %1685  ;;  %v1437_v62 = vadd.f32 %v1422_v12, %v1398_v14  ;;  %v1451_v37 = vpop.permute.xlu0 %1450  ;;  %v1618_v12 = vsel %vm7212_vm2, %v5190_v32, %v5250_v45 }
 0x3a4   :  { %v1461_v9 = vsel %vm555_vm15, %v5153_v35, %v1451_v37  ;;  %v1576_v35 = vsel %vm7216_vm0, %v5178_v27, %v5233_v61  ;;  %v1658_v27 = vsel %vm7215_vm8, %v5198_v19, %v5262_v17  ;;  %v1698_v32 = vsel %vm7214_vm7, %v5210_v11, %v5270_v48 }
 0x3a5   :  { %v1476_v29 = vadd.f32 %v1461_v9, %v1437_v62 }
 0x3a7   :  { %v5277_v7 = vpop.permute.xlu1 %1114  ;;  %v1512_v54 = vadd.f32 %v1497_v55, %v1476_v29  ;;  %v1524_v53 = vpop.permute.xlu0 %1523 }
 0x3a8   :  { %v1124_v15 = vsel %vm368_vm14, %v1113_v31, %v5277_v7  ;;  %v1534_v0 = vsel %vm1531_vm6, %v5166_v50, %v1524_v53 }
 0x3a9   :  { %v1549_v14 = vadd.f32 %v1534_v0, %v1512_v54  ;;  %v1139_v46 = vadd.f32 %v1124_v15, %v4982_v47 }
 0x3ab   :  { %v1592_v18 = vadd.f32 %v1576_v35, %v1549_v14  ;;  %v5287_v38 = vpop.permute.xlu1 %1200  ;;  %v5289_v16 = vpop.permute.xlu0 %1153 }
 0x3ac   :  { %v1163_v50 = vsel %vm400_vm11, %v5176_v39, %v5289_v16  ;;  %v1211_v47 = vsel %vm1206_vm10, %v1199_v56, %v5287_v38 }
 0x3ad   :  { %v1634_v31 = vadd.f32 %v1618_v12, %v1592_v18  ;;  %v1178_v62 = vadd.f32 %v1163_v50, %v1139_v46 }
 0x3af   :  { %v5302_v9 = vpop.permute.xlu1 %1295  ;;  %v1226_v29 = vadd.f32 %v1211_v47, %v1178_v62  ;;  %v5304_v55 = vpop.permute.xlu0 %1240  ;;  %v1674_v54 = vadd.f32 %v1658_v27, %v1634_v31 }
 0x3b0   :  { %v1250_v39 = vsel %vm432_vm12, %v5188_v57, %v5304_v55  ;;  %v1305_v19 = vsel %vm462_vm5, %v1294_v36, %v5302_v9  ;;  %v1121_v36 = vsel %vm368_vm14, %v5012_v28, %v5068_v51 }
 0x3b1   :  { %v1265_v15 = vadd.f32 %v1250_v39, %v1226_v29  ;;  %v1714_v0 = vadd.f32 %v1698_v32, %v1674_v54  ;;  %v1136_v27 = vadd.f32 %v1121_v36, %v4867_v5 }
 0x3b3   :  { %v5314_v56 = vpop.permute.xlu1 %1373  ;;  %1733 = vrot.lane.b32.xlu1 %v1714_v0, %s4296_s7  ;;  %v1320_v14 = vadd.f32 %v1305_v19, %v1265_v15  ;;  %v5317_v35 = vpop.permute.xlu0 %1334 }
 0x3b4   :  { %v1344_v11 = vsel %vm491_vm4, %v5196_v2, %v5317_v35  ;;  %v1384_v57 = vsel %vm1379_vm9, %v1372_v1, %v5314_v56  ;;  %v1120_v1 = vsel %vm368_vm14, %v4970_v58, %v5012_v28  ;;  %v1208_v28 = vsel %vm1206_vm10, %v5022_v20, %v5075_v42 }
 0x3b5   :  { %v1359_v46 = vadd.f32 %v1344_v11, %v1320_v14 }
 0x3b7   :  { %v5324_v18 = vpop.permute.xlu1 %1452  ;;  %v1399_v12 = vadd.f32 %v1384_v57, %v1359_v46  ;;  %v5326_v50 = vpop.permute.xlu0 %1413 }
 0x3b8   :  { %v1423_v31 = vsel %vm523_vm1, %v5208_v6, %v5326_v50  ;;  %v1462_v2 = vsel %vm555_vm15, %v1451_v37, %v5324_v18  ;;  %v1135_v6 = vadd.f32 %v1120_v1, %v4838_v43  ;;  %v1160_v37 = vsel %vm400_vm11, %v5010_v3, %v5039_v40 }
 0x3b9   :  { %v1438_v62 = vadd.f32 %v1423_v31, %v1399_v12  ;;  %v1175_v32 = vadd.f32 %v1160_v37, %v1136_v27  ;;  %v1207_v40 = vsel %vm1206_vm10, %v4975_v8, %v5022_v20  ;;  %v1302_v12 = vsel %vm462_vm5, %v5029_v52, %v5081_v22 }
 0x3ba   :  { %v1301_v31 = vsel %vm462_vm5, %v4988_v44, %v5029_v52  ;;  %v1381_v52 = vsel %vm1379_vm9, %v5035_v30, %v5092_v25 }
 0x3bb   :  { %v5340_v47 = vpop.permute.xlu1 %1525  ;;  %v1477_v29 = vadd.f32 %v1462_v2, %v1438_v62  ;;  %v5342_v54 = vpop.permute.xlu0 %1489  ;;  %v1223_v0 = vadd.f32 %v1208_v28, %v1175_v32 }
 0x3bc   :  { %v1498_v51 = vsel %vm587_vm13, %v5216_v24, %v5342_v54  ;;  %v1159_v24 = vsel %vm400_vm11, %v4977_v41, %v5010_v3  ;;  %v1535_v43 = vsel %vm1531_vm6, %v1524_v53, %v5340_v47  ;;  %v1247_v41 = vsel %vm432_vm12, %v5020_v60, %v5045_v34 }
 0x3bd   :  { %v1513_v39 = vadd.f32 %v1498_v51, %v1477_v29  ;;  %v1174_v15 = vadd.f32 %v1159_v24, %v1135_v6  ;;  %v1262_v8 = vadd.f32 %v1247_v41, %v1223_v0  ;;  %v1246_v34 = vsel %vm432_vm12, %v4990_v49, %v5020_v60 }
 0x3be   :  { %v1341_v49 = vsel %vm491_vm4, %v5027_v33, %v5053_v63  ;;  %v1340_v6 = vsel %vm491_vm4, %v4996_v13, %v5027_v33 }
 0x3bf   :  { %v5351_v58 = vpop.permute.xlu1 %1155  ;;  %v5353_v5 = vpop.permute.xlu0 %1565  ;;  %v1550_v19 = vadd.f32 %v1535_v43, %v1513_v39  ;;  %v1222_v46 = vadd.f32 %v1207_v40, %v1174_v15  ;;  %v1317_v62 = vadd.f32 %v1302_v12, %v1262_v8  ;;  %v1380_v39 = vsel %vm1379_vm9, %v4994_v10, %v5035_v30 }
 0x3c0   :  { %v1577_v42 = vsel %vm7216_vm0, %v5233_v61, %v5353_v5  ;;  %v1164_v32 = vsel %vm400_vm11, %v5289_v16, %v5351_v58 }
 0x3c1   :  { %v1593_v20 = vadd.f32 %v1577_v42, %v1550_v19  ;;  %v1356_v60 = vadd.f32 %v1341_v49, %v1317_v62  ;;  %v7244_v19 = vld [vmem:[#allocation14_spill] sm:$0xff] }
 0x3c2   :  { %v7245_v42 = vld [vmem:[#allocation6_spill] sm:$0xff] }
 0x3c3   :  { %v5366_v14 = vpop.permute.xlu1 %1242  ;;  %v5368_v11 = vpop.permute.xlu0 %1607  ;;  %v1396_v25 = vadd.f32 %v1381_v52, %v1356_v60 }
 0x3c4   :  { %v1619_v3 = vsel %vm7212_vm2, %v5250_v45, %v5368_v11  ;;  %v1261_v45 = vadd.f32 %v1246_v34, %v1222_v46  ;;  %v1251_v16 = vsel %vm432_vm12, %v5304_v55, %v5366_v14 }
 0x3c5   :  { %v1635_v36 = vadd.f32 %v1619_v3, %v1593_v20  ;;  %v7247_v20 = vld [vmem:[#allocation3_spill] sm:$0xff] }
 0x3c6   :  { %v1316_v29 = vadd.f32 %v1301_v31, %v1261_v45  ;;  %v1458_v12 = vsel %vm555_vm15, %v7247_v20, %v7245_v42 }
 0x3c7   :  { %v5379_v53 = vpop.permute.xlu1 %1336  ;;  %v5381_v57 = vpop.permute.xlu0 %1647 }
 0x3c8   :  { %v1659_v61 = vsel %vm7215_vm8, %v5262_v17, %v5381_v57  ;;  %v1355_v37 = vadd.f32 %v1340_v6, %v1316_v29  ;;  %v1345_v8 = vsel %vm491_vm4, %v5317_v35, %v5379_v53  ;;  %v7251_v6 = vld [vmem:[#allocation8_spill] sm:$0xff] }
 0x3c9   :  { %v1675_v2 = vadd.f32 %v1659_v61, %v1635_v36 }
 0x3cb   :  { %v5395_v1 = vpop.permute.xlu1 %1415  ;;  %v5397_v27 = vpop.permute.xlu0 %1687 }
 0x3cc   :  { %v1699_v22 = vsel %vm7214_vm7, %v5270_v48, %v5397_v27 }
 0x3cd   :  { %v1715_v17 = vadd.f32 %v1699_v22, %v1675_v2  ;;  %v7248_v2 = vld [vmem:[#allocation10_spill] sm:$0xff]  ;;  %v7249_v22 = vld [vmem:[#allocation7_spill] sm:$0xff] }
 0x3ce   :  { %v1495_v35 = vsel %vm587_vm13, %v7249_v22, %v7248_v2  ;;  %v7254_v2 = vld [vmem:[#allocation13_spill] sm:$0xff] }
 0x3cf   :  { %v5405_v51 = vpop.permute.xlu1 %1491  ;;  %1735 = vrot.lane.b32.xlu0 %v1715_v17, %s4296_s7  ;;  %v5408_v44 = vpop.permute.xlu0 %1116  ;;  %v1424_v17 = vsel %vm523_vm1, %v5326_v50, %v5395_v1 }
 0x3d0   :  { %v1125_v48 = vsel %vm368_vm14, %v5277_v7, %v5408_v44  ;;  %v7243_v7 = vld [vmem:[#allocation5_spill] sm:$0xff]  ;;  %v1499_v50 = vsel %vm587_vm13, %v5342_v54, %v5405_v51 }
 0x3d1   :  { %v1140_v63 = vadd.f32 %v1125_v48, %v5015_v4  ;;  %v1395_v4 = vadd.f32 %v1380_v39, %v1355_v37  ;;  %v1420_v43 = vsel %vm523_vm1, %v7243_v7, %v5059_v26  ;;  %v7246_v26 = vld [vmem:[#allocation4_spill] sm:$0xff]  ;;  %v7250_v48 = vld [vmem:[#allocation15_spill] sm:$0xff] }
 0x3d2   :  { %v1435_v10 = vadd.f32 %v1420_v43, %v1396_v25  ;;  %v1419_v41 = vsel %vm523_vm1, %v7246_v26, %v7243_v7  ;;  %v7252_v7 = vld [vmem:[#allocation9_spill] sm:$0xff] }
 0x3d3   :  { %v1640_v28 = vpop.permute.xlu1 %1639  ;;  %v1179_v24 = vadd.f32 %v1164_v32, %v1140_v63  ;;  %v5426_v15 = vpop.permute.xlu0 %1202  ;;  %v1434_v55 = vadd.f32 %v1419_v41, %v1395_v4 }
 0x3d4   :  { %v1212_v13 = vsel %vm1206_vm10, %v5287_v38, %v5426_v15  ;;  %v1459_v38 = vsel %vm555_vm15, %v7245_v42, %v7244_v19 }
 0x3d5   :  { %v1227_v33 = vadd.f32 %v1212_v13, %v1179_v24  ;;  %v1474_v61 = vadd.f32 %v1459_v38, %v1435_v10  ;;  %v1473_v62 = vadd.f32 %v1458_v12, %v1434_v55  ;;  %v7253_v38 = vld [vmem:[#allocation11_spill] sm:$0xff]  ;;  %v1656_v12 = vsel %vm7215_vm8, %v1640_v28, %v5090_v21 }
 0x3d7   :  { %v5437_v30 = vpop.permute.xlu1 %1679  ;;  %v1266_v40 = vadd.f32 %v1251_v16, %v1227_v33  ;;  %v5439_v0 = vpop.permute.xlu0 %1297  ;;  %v1510_v29 = vadd.f32 %v1495_v35, %v1474_v61  ;;  %v1509_v32 = vadd.f32 %v7249_v22, %v1473_v62  ;;  %v1574_v16 = vsel %vm7216_vm0, %v7252_v7, %v5073_v59  ;;  %v7255_v22 = vld [vmem:[#allocation12_spill] sm:$0xff] }
 0x3d8   :  { %v1306_v46 = vsel %vm462_vm5, %v5302_v9, %v5439_v0  ;;  %v1696_v21 = vsel %vm7214_vm7, %v5437_v30, %v7254_v2 }
 0x3d9   :  { %v1321_v3 = vadd.f32 %v1306_v46, %v1266_v40  ;;  %v1546_v33 = vadd.f32 %v7251_v6, %v1509_v32 }
 0x3db   :  { %v5456_v34 = vpop.permute.xlu1 %1567  ;;  %v1360_v36 = vadd.f32 %v1345_v8, %v1321_v3  ;;  %v5458_v45 = vpop.permute.xlu0 %1375  ;;  %v1589_v43 = vadd.f32 %v7252_v7, %v1546_v33 }
 0x3dc   :  { %v1385_v9 = vsel %vm1379_vm9, %v5314_v56, %v5458_v45  ;;  %v1532_v56 = vsel %vm1531_vm6, %v7251_v6, %v7250_v48  ;;  %v1578_v54 = vsel %vm7216_vm0, %v5353_v5, %v5456_v34 }
 0x3dd   :  { %v1400_v31 = vadd.f32 %v1385_v9, %v1360_v36  ;;  %v1547_v39 = vadd.f32 %v1532_v56, %v1510_v29 }
 0x3df   :  { %v5469_v49 = vpop.permute.xlu1 %1609  ;;  %v1439_v60 = vadd.f32 %v1424_v17, %v1400_v31  ;;  %v5471_v52 = vpop.permute.xlu0 %1454  ;;  %v1590_v19 = vadd.f32 %v1574_v16, %v1547_v39 }
 0x3e0   :  { %v1463_v63 = vsel %vm555_vm15, %v5324_v18, %v5471_v52 }
 0x3e1   :  { %v1478_v37 = vadd.f32 %v1463_v63, %v1439_v60 }
 0x3e3   :  { %v5483_v25 = vpop.permute.xlu1 %1649  ;;  %v1514_v24 = vadd.f32 %v1499_v50, %v1478_v37  ;;  %v5485_v13 = vpop.permute.xlu0 %1527 }
 0x3e4   :  { %v1536_v4 = vsel %vm1531_vm6, %v5340_v47, %v5485_v13  ;;  %v1620_v47 = vsel %vm7212_vm2, %v5368_v11, %v5469_v49  ;;  %v1660_v59 = vsel %vm7215_vm8, %v5381_v57, %v5483_v25 }
 0x3e5   :  { %v1551_v18 = vadd.f32 %v1536_v4, %v1514_v24 }
 0x3e7   :  { %v1594_v10 = vadd.f32 %v1578_v54, %v1551_v18  ;;  %v5498_v40 = vpop.permute.xlu1 %1689  ;;  %v1600_v42 = vpop.permute.xlu0 %1599 }
 0x3e8   :  { %v1616_v46 = vsel %vm7212_vm2, %v1600_v42, %v7253_v38  ;;  %v1631_v26 = vadd.f32 %v1600_v42, %v1589_v43  ;;  %v1700_v11 = vsel %vm7214_vm7, %v5397_v27, %v5498_v40 }
 0x3e9   :  { %v1636_v41 = vadd.f32 %v1620_v47, %v1594_v10  ;;  %v1632_v3 = vadd.f32 %v1616_v46, %v1590_v19 }
 0x3ea   :  { %v1671_v5 = vadd.f32 %v1640_v28, %v1631_v26 }
 0x3eb   :  { %v1676_v55 = vadd.f32 %v1660_v59, %v1636_v41  ;;  %v1572_v8 = vpop.permute.xlu1 %1571  ;;  %v1119_v20 = vpop.permute.xlu0 %1118  ;;  %v1672_v9 = vadd.f32 %v1656_v12, %v1632_v3 }
 0x3ec   :  { %v1711_v61 = vadd.f32 %v5437_v30, %v1671_v5  ;;  %v1126_v31 = vsel %vm368_vm14, %v5408_v44, %v1119_v20  ;;  %v1142_v28 = vadd.f32 %v1119_v20, %v5170_v23 }
 0x3ed   :  { %v1716_v36 = vadd.f32 %v1700_v11, %v1676_v55  ;;  %v1141_v35 = vadd.f32 %v1126_v31, %v7255_v22  ;;  %v1712_v17 = vadd.f32 %v1696_v21, %v1672_v9 }
 0x3ee   :  { %1727 = vrot.lane.b32.xlu0 %v1711_v61, %s4296_s7 }
 0x3ef   :  { %v1614_v57 = vpop.permute.xlu1 %1613  ;;  %1737 = vrot.lane.b32.xlu1 %v1716_v36, %s4296_s7  ;;  %v1158_v62 = vpop.permute.xlu0 %1157 }
 0x3f0   :  { %v1165_v27 = vsel %vm400_vm11, %v5351_v58, %v1158_v62  ;;  %v1181_v29 = vadd.f32 %v1158_v62, %v1142_v28 }
 0x3f1   :  { %v1180_v44 = vadd.f32 %v1165_v27, %v1141_v35 }
 0x3f3   :  { %v1205_v60 = vpop.permute.xlu1 %1204  ;;  %1729 = vrot.lane.b32.xlu1 %v1712_v17, %s4296_s7  ;;  %v1245_v48 = vpop.permute.xlu0 %1244 }
 0x3f4   :  { %v1213_v6 = vsel %vm1206_vm10, %v5426_v15, %v1205_v60  ;;  %v1229_v56 = vadd.f32 %v1205_v60, %v1181_v29  ;;  %v1252_v23 = vsel %vm432_vm12, %v5366_v14, %v1245_v48 }
 0x3f5   :  { %v1228_v63 = vadd.f32 %v1213_v6, %v1180_v44 }
 0x3f6   :  { %v1268_v30 = vadd.f32 %v1245_v48, %v1229_v56 }
 0x3f7   :  { %v1267_v37 = vadd.f32 %v1252_v23, %v1228_v63  ;;  %v1300_v58 = vpop.permute.xlu1 %1299  ;;  %v1339_v32 = vpop.permute.xlu0 %1338 }
 0x3f8   :  { %v1307_v50 = vsel %vm462_vm5, %v5439_v0, %v1300_v58  ;;  %v1323_v39 = vadd.f32 %v1300_v58, %v1268_v30  ;;  %v1346_v33 = vsel %vm491_vm4, %v5379_v53, %v1339_v32 }
 0x3f9   :  { %v1322_v24 = vadd.f32 %v1307_v50, %v1267_v37 }
 0x3fa   :  { %v1362_v4 = vadd.f32 %v1339_v32, %v1323_v39 }
 0x3fb   :  { %v1361_v18 = vadd.f32 %v1346_v33, %v1322_v24  ;;  %v1378_v15 = vpop.permute.xlu1 %1377  ;;  %v1418_v7 = vpop.permute.xlu0 %1417 }
 0x3fc   :  { %v1386_v43 = vsel %vm1379_vm9, %v5458_v45, %v1378_v15  ;;  %v1402_v14 = vadd.f32 %v1378_v15, %v1362_v4  ;;  %v1425_v54 = vsel %vm523_vm1, %v5395_v1, %v1418_v7  ;;  %v7256_v4 = vld [vmem:[#allocation16_spill] sm:$0xff] }
 0x3fd   :  { %v1401_v16 = vadd.f32 %v1386_v43, %v1361_v18 }
 0x3fe   :  { %v1441_v10 = vadd.f32 %v1418_v7, %v1402_v14  ;;  %v2646_v7 = vld [vmem:[%s7183_s0] sm:$0xff]  ;;  %v2647_v14 = vld [vmem:[%s7183_s0 + $0x8] sm:$0xff] }
 0x3ff   :  { %v1440_v19 = vadd.f32 %v1425_v54, %v1401_v16  ;;  %v1457_v0 = vpop.permute.xlu1 %1456  ;;  %v1494_v42 = vpop.permute.xlu0 %1493  ;;  %v2654_v43 = vmul.f32 0.046875, %v2646_v7  ;;  %v2648_v16 = vld [vmem:[%s7183_s0 + $0x10] sm:$0xff]  ;;  %v2655_v54 = vmul.f32 0.046875, %v2647_v14 }
 0x400   :  { %v1464_v47 = vsel %vm555_vm15, %v5471_v52, %v1457_v0  ;;  %v1480_v53 = vadd.f32 %v1457_v0, %v1441_v10  ;;  %v1500_v46 = vsel %vm587_vm13, %v5405_v51, %v1494_v42  ;;  %v2656_v10 = vmul.f32 0.046875, %v2648_v16 }
 0x401   :  { %v1479_v38 = vadd.f32 %v1464_v47, %v1440_v19  ;;  %v5661_v19 = vmul.f32 0.015625, %v2646_v7  ;;  %v5666_v0 = vmul.f32 0.015625, %v2647_v14  ;;  %v2774_v47 = vld [vmem:[%s7183_s0 + $0x4] sm:$0xff] }
 0x402   :  { %v1516_v26 = vadd.f32 %v1494_v42, %v1480_v53  ;;  %v5668_v42 = vmul.f32 0.015625, %v2648_v16  ;;  %v2778_v53 = vmul.f32 0.140625, %v2774_v47 }
 0x403   :  { %v1515_v41 = vadd.f32 %v1500_v46, %v1479_v38  ;;  %v1530_v45 = vpop.permute.xlu1 %1529  ;;  %v1570_v3 = vpop.permute.xlu0 %1569  ;;  %v2649_v38 = vld [vmem:[%s7183_s0 + $0x18] sm:$0xff]  ;;  %v2775_v46 = vld [vmem:[%s7183_s0 + $0xc] sm:$0xff] }
 0x404   :  { %v1537_v59 = vsel %vm1531_vm6, %v5485_v13, %v1530_v45  ;;  %v1553_v5 = vadd.f32 %v1530_v45, %v1516_v26  ;;  %v1580_v55 = vsel %vm7216_vm0, %v1570_v3, %v1572_v8  ;;  %v1579_v52 = vsel %vm7216_vm0, %v5456_v34, %v1570_v3 }
 0x405   :  { %v1552_v1 = vadd.f32 %v1537_v59, %v1515_v41  ;;  %v2657_v26 = vmul.f32 0.046875, %v2649_v38  ;;  %v2779_v41 = vmul.f32 0.140625, %v2775_v46  ;;  %v5691_v45 = vmul.f32 0.046875, %v2774_v47 }
 0x406   :  { %v1596_v61 = vadd.f32 %v1580_v55, %v1553_v5  ;;  %v5696_v3 = vmul.f32 0.015625, %v2649_v38  ;;  %v5698_v59 = vmul.f32 0.046875, %v2775_v46 }
 0x407   :  { %v1612_v20 = vpop.permute.xlu0 %1611  ;;  %v1654_v12 = vpop.permute.xlu1 %1653  ;;  %v1595_v11 = vadd.f32 %v1579_v52, %v1552_v1 }
 0x408   :  { %v1621_v51 = vsel %vm7212_vm2, %v5469_v49, %v1612_v20  ;;  %v1622_v36 = vsel %vm7212_vm2, %v1612_v20, %v1614_v57  ;;  %vm1743_vm2 = vcmask 359424  }
 0x409   :  { %v1637_v62 = vadd.f32 %v1621_v51, %v1595_v11  ;;  %v1638_v8 = vadd.f32 %v1622_v36, %v1596_v61 }
 0x40b   :  { %v1652_v9 = vpop.permute.xlu0 %1651  ;;  %v1694_v2 = vpop.permute.xlu1 %1693 }
 0x40c   :  { %v1661_v13 = vsel %vm7215_vm8, %v5483_v25, %v1652_v9  ;;  %v1662_v31 = vsel %vm7215_vm8, %v1652_v9, %v1654_v12  ;;  %v5712_v12 = vld [vmem:[%s7183_s0 + $0x14] sm:$0xff] }
 0x40d   :  { %v1677_v21 = vadd.f32 %v1661_v13, %v1637_v62  ;;  %v1678_v28 = vadd.f32 %v1662_v31, %v1638_v8  ;;  %v5720_v61 = vmul.f32 0.140625, %v5712_v12 }
 0x40f   :  { %v1692_v27 = vpop.permute.xlu0 %1691 }
 0x410   :  { %v1701_v34 = vsel %vm7214_vm7, %v5498_v40, %v1692_v27  ;;  %v1702_v22 = vsel %vm7214_vm7, %v1692_v27, %v1694_v2 }
 0x411   :  { %v1717_v49 = vadd.f32 %v1701_v34, %v1677_v21  ;;  %v1718_v35 = vadd.f32 %v1702_v22, %v1678_v28 }
 0x413   :  { %1741 = vrot.lane.b32.xlu1 %v1718_v35, %s4296_s7  ;;  %1739 = vrot.lane.b32.xlu0 %v1717_v49, %s4296_s7  ;;  %v1732_v25 = vpop.permute.xlu0 %1731  ;;  %v5751_v49 = vmul.f32 0.046875, %v5712_v12  ;;  %v5753_v35 = vmul.f32 0.015625, %v2774_v47 }
 0x425   :  { %v1734_v57 = vpop.permute.xlu1 %1733 }
 0x426   :  { %v5559_v17 = vsel %vm1743_vm2, %v1732_v25, %v1734_v57 }
 0x441   :  { %v1736_v29 = vpop.permute.xlu0 %1735 }
 0x442   :  { %v5562_v44 = vsel %vm1743_vm2, %v1734_v57, %v1736_v29 }
 0x443   :  { %v4126_v37 = vpack.i.bf16 %v5562_v44, %v5559_v17 }
 0x460   :  { %v1728_v48 = vpop.permute.xlu0 %1727 }
 0x461   :  { %v1738_v60 = vpop.permute.xlu1 %1737 }
 0x462   :  { %v5565_v40 = vsel %vm1743_vm2, %v1736_v29, %v1738_v60 }
 0x463   :  { %v4141_v58 = vpack.i.bf16 %v5565_v40, %v5562_v44 }
 0x465   :  { %v1730_v6 = vpop.permute.xlu1 %1729 }
 0x466   :  { %v5568_v56 = vsel %vm1743_vm2, %v1728_v48, %v1730_v6  ;;  %v5571_v63 = vsel %vm1743_vm2, %v1730_v6, %v1732_v25  ;;  %v5755_v25 = vmul.f32 0.015625, %v2775_v46 }
 0x467   :  { %1955 = vrot.lane.b32.xlu0 %v5568_v56, %s4279_s1  ;;  %1925 = vrot.lane.b32.xlu1 %v5568_v56, %s4283_s25  ;;  %v4101_v23 = vpack.i.bf16 %v5571_v63, %v5559_v17  ;;  %v4131_v30 = vpack.i.bf16 %v5568_v56, %v5565_v40 }
 0x46b   :  { %1895 = vrot.lane.b32.xlu0 %v5568_v56, %s4286_s28  ;;  %1865 = vrot.lane.b32.xlu1 %v5568_v56, %s4285_s27 }
 0x46f   :  { %1987 = vrot.lane.b32.xlu0 %v5571_v63, %s4280_s21  ;;  %4102 = vrot.lane.b32.xlu1 %v4101_v23, %s4279_s1 }
 0x473   :  { %4097 = vrot.lane.b32.xlu0 %v4101_v23, %s4283_s25  ;;  %4107 = vrot.lane.b32.xlu1 %v4101_v23, %s4285_s27 }
 0x477   :  { %4112 = vrot.lane.b32.xlu0 %v4101_v23, %s4286_s28  ;;  %4117 = vrot.lane.b32.xlu1 %v4101_v23, %s4281_s6 }
 0x47b   :  { %4122 = vrot.lane.b32.xlu0 %v4101_v23, %s4282_s24  ;;  %4132 = vrot.lane.b32.xlu1 %v4131_v30, %s4280_s21 }
 0x47f   :  { %4127 = vrot.lane.b32.xlu0 %v4126_v37, %s4280_s21  ;;  %4142 = vrot.lane.b32.xlu1 %v4141_v58, %s4279_s1 }
 0x483   :  { %4137 = vrot.lane.b32.xlu0 %v4141_v58, %s4283_s25  ;;  %4147 = vrot.lane.b32.xlu1 %v4141_v58, %s4285_s27 }
 0x485   :  { %v1742_v32 = vpop.permute.xlu1 %1741  ;;  %v1740_v50 = vpop.permute.xlu0 %1739 }
 0x486   :  { %v5603_v39 = vsel %vm1743_vm2, %v1738_v60, %v1740_v50  ;;  %v1750_v24 = vsel %vm1743_vm2, %v1740_v50, %v1742_v32  ;;  %vm7257_vm2 = vcmask 1043456  }
 0x487   :  { %1764 = vst.msk [vmem:[#allocation2 + $0x38] sm:$0xff] %vm7213_vm3, %v1750_v24  ;;  %4152 = vrot.lane.b32.xlu0 %v4141_v58, %s4286_s28  ;;  %4157 = vrot.lane.b32.xlu1 %v4141_v58, %s4281_s6  ;;  %vm7258_vm3 = vmmov %vm7257_vm2 }
 0x488   :  { %vm7259_vm7 = vmmov %vm7257_vm2 }
 0x489   :  { %vm7260_vm8 = vmmov %vm7257_vm2 }
 0x48b   :  { %4162 = vrot.lane.b32.xlu0 %v4141_v58, %s4282_s24  ;;  %4172 = vrot.lane.b32.xlu1 %v4141_v58, %s4284_s26 }
 0x48e   :  { %v5614_v33 = vld [vmem:[#allocation2 + $0x38] sm:$0xff] }
 0x48f   :  { %4167 = vrot.lane.b32.xlu0 %v4101_v23, %s4284_s26  ;;  %1807 = vrot.lane.b32.xlu1 %v5568_v56, %s4281_s6  ;;  %v4181_v18 = vpack.i.bf16 %v7256_v4, %v5614_v33  ;;  %v4206_v15 = vpack.i.bf16 %v5603_v39, %v5614_v33 }
 0x493   :  { %1835 = vrot.lane.b32.xlu0 %v5568_v56, %s4282_s24  ;;  %1780 = vrot.lane.b32.xlu1 %v5568_v56, %s4284_s26 }
 0x497   :  { %4182 = vrot.lane.b32.xlu1 %v4181_v18, %s4283_s25  ;;  %4177 = vrot.lane.b32.xlu0 %v4181_v18, %s4280_s21 }
 0x49b   :  { %4187 = vrot.lane.b32.xlu0 %v4181_v18, %s4279_s1  ;;  %1995 = vrot.lane.b32.xlu1 %v5603_v39, %s4280_s21 }
 0x49f   :  { %4192 = vrot.lane.b32.xlu0 %v4181_v18, %s4285_s27  ;;  %4197 = vrot.lane.b32.xlu1 %v4181_v18, %s4286_s28 }
 0x4a3   :  { %1935 = vrot.lane.b32.xlu0 %v5603_v39, %s4283_s25  ;;  %1965 = vrot.lane.b32.xlu1 %v5603_v39, %s4279_s1 }
 0x4a7   :  { %4202 = vrot.lane.b32.xlu0 %v4181_v18, %s4282_s24  ;;  %1875 = vrot.lane.b32.xlu1 %v5603_v39, %s4285_s27 }
 0x4ab   :  { %1905 = vrot.lane.b32.xlu0 %v5603_v39, %s4286_s28  ;;  %4207 = vrot.lane.b32.xlu1 %v4206_v15, %s4281_s6 }
 0x4af   :  { %1845 = vrot.lane.b32.xlu0 %v5603_v39, %s4282_s24  ;;  %1792 = vrot.lane.b32.xlu1 %v5614_v33, %s4284_s26 }
 0x4b3   :  { %1790 = vrot.lane.b32.xlu0 %v5603_v39, %s4284_s26  ;;  %2662 = vrot.lane.b32.xlu1 %v2654_v43, %s4284_s26 }
 0x4b7   :  { %2664 = vrot.lane.b32.xlu0 %v2655_v54, %s4284_s26  ;;  %2666 = vrot.lane.b32.xlu1 %v2656_v10, %s4284_s26 }
 0x4bb   :  { %2689 = vrot.lane.b32.xlu0 %v2654_v43, %s4281_s6  ;;  %2691 = vrot.lane.b32.xlu1 %v2655_v54, %s4281_s6 }
 0x4bf   :  { %2693 = vrot.lane.b32.xlu0 %v2656_v10, %s4281_s6  ;;  %2720 = vrot.lane.b32.xlu1 %v5661_v19, %s4289_s2 }
 0x4c3   :  { %2722 = vrot.lane.b32.xlu0 %v5666_v0, %s4289_s2  ;;  %2724 = vrot.lane.b32.xlu1 %v5668_v42, %s4289_s2 }
 0x4c7   :  { %2747 = vrot.lane.b32.xlu0 %v2654_v43, %s4282_s24  ;;  %2749 = vrot.lane.b32.xlu1 %v2655_v54, %s4282_s24 }
 0x4cb   :  { %2751 = vrot.lane.b32.xlu0 %v2656_v10, %s4282_s24  ;;  %2786 = vrot.lane.b32.xlu1 %v2778_v53, %s4285_s27 }
 0x4cf   :  { %2668 = vrot.lane.b32.xlu0 %v2657_v26, %s4284_s26  ;;  %2788 = vrot.lane.b32.xlu1 %v2779_v41, %s4285_s27 }
 0x4d3   :  { %2813 = vrot.lane.b32.xlu0 %v2778_v53, %s4286_s28  ;;  %2695 = vrot.lane.b32.xlu1 %v2657_v26, %s4281_s6 }
 0x4d7   :  { %2815 = vrot.lane.b32.xlu0 %v2779_v41, %s4286_s28  ;;  %2848 = vrot.lane.b32.xlu1 %v5691_v45, %s4290_s13 }
 0x4d9   :  { %v1926_v1 = vpop.permute.xlu1 %1925  ;;  %v1956_v5 = vpop.permute.xlu0 %1955 }
 0x4db   :  { %2726 = vrot.lane.b32.xlu0 %v5696_v3, %s4289_s2  ;;  %2850 = vrot.lane.b32.xlu1 %v5698_v59, %s4290_s13 }
 0x4dd   :  { %v1866_v55 = vpop.permute.xlu1 %1865  ;;  %v5704_v20 = vpop.permute.xlu0 %1895 }
 0x4df   :  { %2878 = vrot.lane.b32.xlu0 %v5691_v45, %s4283_s25  ;;  %2753 = vrot.lane.b32.xlu1 %v2657_v26, %s4282_s24 }
 0x4e1   :  { %v5714_v52 = vpop.permute.xlu1 %4102  ;;  %v1988_v11 = vpop.permute.xlu0 %1987 }
 0x4e2   :  { %v4105_v31 = vunpack.i.h.bf16 %v5714_v52  ;;  %v4104_v2 = vunpack.i.l.bf16 %v5714_v52 }
 0x4e3   :  { %2880 = vrot.lane.b32.xlu0 %v5698_v59, %s4283_s25  ;;  %2907 = vrot.lane.b32.xlu1 %v2778_v53, %s4279_s1 }
 0x4e4   :  { %v5758_v57 = vsel %vm555_vm15, %v1956_v5, %v4105_v31  ;;  %v1972_v32 = vsel %vm555_vm15, %v4105_v31, %v4104_v2 }
 0x4e5   :  { %v5722_v51 = vpop.permute.xlu1 %4107  ;;  %v5724_v36 = vpop.permute.xlu0 %4097 }
 0x4e6   :  { %v4100_v62 = vunpack.i.h.bf16 %v5724_v36  ;;  %v4099_v8 = vunpack.i.l.bf16 %v5724_v36  ;;  %v4110_v21 = vunpack.i.h.bf16 %v5722_v51  ;;  %v4109_v34 = vunpack.i.l.bf16 %v5722_v51 }
 0x4e7   :  { %2790 = vrot.lane.b32.xlu0 %v5720_v61, %s4285_s27  ;;  %2909 = vrot.lane.b32.xlu1 %v2779_v41, %s4279_s1 }
 0x4e8   :  { %v5761_v29 = vsel %vm523_vm1, %v1926_v1, %v4100_v62  ;;  %v1942_v48 = vsel %vm523_vm1, %v4100_v62, %v4099_v8  ;;  %v5766_v6 = vsel %vm462_vm5, %v1866_v55, %v4110_v21  ;;  %v5777_v18 = vsel %vm462_vm5, %v4110_v21, %v4109_v34 }
 0x4e9   :  { %v5729_v9 = vpop.permute.xlu1 %4117  ;;  %v5731_v13 = vpop.permute.xlu0 %4112  ;;  %v2038_v43 = vpack.c.bf16 %v1972_v32, %v1942_v48  ;;  %v2037_v14 = vpack.c.bf16 %v5758_v57, %v5761_v29 }
 0x4ea   :  { %v4115_v23 = vunpack.i.h.bf16 %v5731_v13  ;;  %v4114_v30 = vunpack.i.l.bf16 %v5731_v13  ;;  %v4120_v29 = vunpack.i.h.bf16 %v5729_v9 }
 0x4eb   :  { %2934 = vrot.lane.b32.xlu0 %v2778_v53, %s4280_s21  ;;  %2817 = vrot.lane.b32.xlu1 %v5720_v61, %s4286_s28 }
 0x4ec   :  { %v1912_v1 = vsel %vm491_vm4, %v4115_v23, %v4114_v30 }
 0x4ed   :  { %v5741_v28 = vpop.permute.xlu1 %4132  ;;  %v5743_v27 = vpop.permute.xlu0 %4122 }
 0x4ee   :  { %v4135_v22 = vunpack.i.h.bf16 %v5741_v28  ;;  %v4134_v50 = vunpack.i.l.bf16 %v5741_v28  ;;  %v4125_v5 = vunpack.i.h.bf16 %v5743_v27  ;;  %v4124_v55 = vunpack.i.l.bf16 %v5743_v27  ;;  %v5901_v27 = vld [vmem:[%s7189_s3] sm:$0xf]  ;;  %v2777_v28 = vld [vmem:[%s7183_s0 + $0x1c] sm:$0xf] }
 0x4ef   :  { %2936 = vrot.lane.b32.xlu0 %v2779_v41, %s4280_s21  ;;  %2961 = vrot.lane.b32.xlu1 %v5691_v45, %s4291_s23 }
 0x4f0   :  { %v2001_v60 = vsel %vm587_vm13, %v4135_v22, %v1988_v11 }
 0x4f1   :  { %v5770_v37 = vpop.permute.xlu1 %4142  ;;  %v4128_v58 = vpop.permute.xlu0 %4127  ;;  %v2044_v7 = vpack.c.bf16 %v2001_v60, %v2001_v60  ;;  %v4119_v60 = vunpack.i.l.bf16 %v5729_v9 }
 0x4f2   :  { %v4130_v24 = vunpack.i.h.bf16 %v4128_v58  ;;  %v4129_v4 = vunpack.i.l.bf16 %v4128_v58  ;;  %v4144_v15 = vunpack.i.l.bf16 %v5770_v37  ;;  %v4145_v16 = vunpack.i.h.bf16 %v5770_v37 }
 0x4f3   :  { %2852 = vrot.lane.b32.xlu0 %v5751_v49, %s4290_s13  ;;  %2963 = vrot.lane.b32.xlu1 %v5698_v59, %s4291_s23 }
 0x4f4   :  { %v2004_v54 = vsel %vm587_vm13, %v4130_v24, %v4134_v50  ;;  %v2002_v10 = vsel %vm587_vm13, %v1988_v11, %v4129_v4  ;;  %v2003_v47 = vsel %vm587_vm13, %v4129_v4, %v4130_v24  ;;  %v1973_v11 = vsel %vm555_vm15, %v4104_v2, %v4144_v15 }
 0x4f5   :  { %v2047_v53 = vpack.c.bf16 %v2004_v54, %v2004_v54  ;;  %v2045_v38 = vpack.c.bf16 %v2002_v10, %v2002_v10  ;;  %v5792_v46 = vpop.permute.xlu1 %4147  ;;  %v5794_v26 = vpop.permute.xlu0 %4137  ;;  %v2046_v41 = vpack.c.bf16 %v2003_v47, %v2003_v47  ;;  %v2055_v2 = vsel %vm7260_vm8, %v2044_v7, 0  ;;  %vm7263_vm8 = vmmov %vm7257_vm2 }
 0x4f6   :  { %v4140_v52 = vunpack.i.h.bf16 %v5794_v26  ;;  %v4139_v36 = vunpack.i.l.bf16 %v5794_v26  ;;  %v4150_v13 = vunpack.i.h.bf16 %v5792_v46  ;;  %v4149_v31 = vunpack.i.l.bf16 %v5792_v46 }
 0x4f7   :  { %2996 = vrot.lane.b32.xlu0 %v5753_v35, %s4292_s30  ;;  %2882 = vrot.lane.b32.xlu1 %v5751_v49, %s4283_s25  ;;  %v2061_v62 = vsel %vm7257_vm2, %v2046_v41, 0  ;;  %v1974_v57 = vsel %vm555_vm15, %v4144_v15, %v4145_v16  ;;  %v1911_v24 = vsel %vm491_vm4, %v5704_v20, %v4115_v23  ;;  %v2031_v15 = vpack.c.bf16 %v1912_v1, %v5777_v18 }
 0x4f8   :  { %v1943_v21 = vsel %vm523_vm1, %v4099_v8, %v4139_v36  ;;  %3565 = vmatprep.subr.msk.bf16.mxu0 %vm7258_vm3, %v2045_v38  ;;  %3567 = vmatprep.subr.msk.bf16.mxu1 %vm7259_vm7, %v2047_v53  ;;  %v1944_v22 = vsel %vm523_vm1, %v4139_v36, %v4140_v52  ;;  %v1883_v54 = vsel %vm462_vm5, %v4109_v34, %v4149_v31  ;;  %vm7261_vm3 = vcmask 588800  }
 0x4f9   :  { %v2039_v48 = vpack.c.bf16 %v1973_v11, %v1943_v21  ;;  %2082 = vmatpush1.bf16.msra.mxu0 %v2055_v2  ;;  %2123 = vmatpush1.bf16.msra.mxu1 %v2061_v62  ;;  %v5821_v8 = vpop.permute.xlu1 %4157  ;;  %v5823_v58 = vpop.permute.xlu0 %4152  ;;  %v2040_v32 = vpack.c.bf16 %v1974_v57, %v1944_v22  ;;  %v1884_v20 = vsel %vm462_vm5, %v4149_v31, %v4150_v13  ;;  %vm7262_vm7 = vmmov 0   ;;  %vm7264_vm2 = vmmov %vm7261_vm3 }
 0x4fa   :  { %v4155_v4 = vunpack.i.h.bf16 %v5823_v58  ;;  %v4154_v7 = vunpack.i.l.bf16 %v5823_v58  ;;  %2083 = vmatprep.subr.bf16.mxu0 %v2038_v43  ;;  %v1852_v23 = vsel %vm432_vm12, %v4125_v5, %v4124_v55  ;;  %v4160_v18 = vunpack.i.h.bf16 %v5821_v8 }
 0x4fb   :  { %2998 = vrot.lane.b32.xlu0 %v5755_v25, %s4292_s30  ;;  %3023 = vrot.lane.b32.xlu1 %v5691_v45, %s4293_s15  ;;  %v4159_v51 = vunpack.i.l.bf16 %v5821_v8  ;;  %v1822_v41 = vsel %vm400_vm11, %v4120_v29, %v4119_v60 }
 0x4fc   :  { %v1913_v34 = vsel %vm491_vm4, %v4114_v30, %v4154_v7  ;;  %2124 = vmatprep.subr.bf16.mxu1 %v2040_v32  ;;  %v1914_v43 = vsel %vm491_vm4, %v4154_v7, %v4155_v4  ;;  %v2024_v31 = vpack.c.bf16 %v1852_v23, %v1822_v41 }
 0x4fd   :  { %v2032_v10 = vpack.c.bf16 %v1913_v34, %v1883_v54  ;;  %2084 = vmatpush1.bf16.msra.mxu0 %v2037_v14  ;;  %2125 = vmatpush1.bf16.msra.mxu1 %v2039_v48  ;;  %v5849_v47 = vpop.permute.xlu1 %4172  ;;  %v5851_v53 = vpop.permute.xlu0 %4162  ;;  %v2033_v38 = vpack.c.bf16 %v1914_v43, %v1884_v20  ;;  %v2030_v14 = vpack.c.bf16 %v1911_v24, %v5766_v6 }
 0x4fe   :  { %v4175_v1 = vunpack.i.h.bf16 %v5849_v47  ;;  %v4174_v30 = vunpack.i.l.bf16 %v5849_v47  ;;  %v4165_v36 = vunpack.i.h.bf16 %v5851_v53  ;;  %v4164_v11 = vunpack.i.l.bf16 %v5851_v53  ;;  %2085 = vmatprep.subr.bf16.mxu0 %v2031_v15  ;;  %v2285_v47 = vld [vmem:[%s7190_s5 + $0x178] sm:$0xff] }
 0x4ff   :  { %2911 = vrot.lane.b32.xlu0 %v5720_v61, %s4279_s1  ;;  %3025 = vrot.lane.b32.xlu1 %v5698_v59, %s4293_s15  ;;  %v1823_v62 = vsel %vm400_vm11, %v4119_v60, %v4159_v51  ;;  %v1824_v2 = vsel %vm400_vm11, %v4159_v51, %v4160_v18 }
 0x500   :  { %v1853_v21 = vsel %vm432_vm12, %v4124_v55, %v4164_v11  ;;  %2126 = vmatprep.subr.bf16.mxu1 %v2033_v38  ;;  %v1854_v6 = vsel %vm432_vm12, %v4164_v11, %v4165_v36  ;;  %v1797_v60 = vsel %vm368_vm14, %v4174_v30, %v4175_v1 }
 0x501   :  { %v2025_v22 = vpack.c.bf16 %v1853_v21, %v1823_v62  ;;  %2086 = vmatpush1.bf16.msra.mxu0 %v2030_v14  ;;  %2127 = vmatpush1.bf16.msra.mxu1 %v2032_v10  ;;  %v1808_v57 = vpop.permute.xlu1 %1807  ;;  %v4168_v48 = vpop.permute.xlu0 %4167  ;;  %v2026_v32 = vpack.c.bf16 %v1854_v6, %v1824_v2  ;;  %v2019_v15 = vpack.c.bf16 %v1797_v60, %v5562_v44 }
 0x502   :  { %v4170_v55 = vunpack.i.h.bf16 %v4168_v48  ;;  %v4169_v24 = vunpack.i.l.bf16 %v4168_v48  ;;  %2087 = vmatprep.subr.bf16.mxu0 %v2024_v31  ;;  %v1821_v34 = vsel %vm400_vm11, %v1808_v57, %v4120_v29 }
 0x503   :  { %3050 = vrot.lane.b32.xlu0 %v5691_v45, %s4294_s16  ;;  %2938 = vrot.lane.b32.xlu1 %v5720_v61, %s4280_s21 }
 0x504   :  { %v1796_v7 = vsel %vm368_vm14, %v4169_v24, %v4174_v30  ;;  %2128 = vmatprep.subr.bf16.mxu1 %v2026_v32  ;;  %v1795_v51 = vsel %vm368_vm14, %v4170_v55, %v4169_v24 }
 0x505   :  { %v2018_v54 = vpack.c.bf16 %v1796_v7, %v5559_v17  ;;  %2129 = vmatpush1.bf16.msra.mxu1 %v2025_v22  ;;  %v1781_v20 = vpop.permute.xlu1 %1780  ;;  %v1836_v23 = vpop.permute.xlu0 %1835  ;;  %v2017_v44 = vpack.c.bf16 %v1795_v51, %v5571_v63  ;;  %v2990_v63 = vmul.f32 0.015625, %v5712_v12  ;;  %v2875_v51 = vld [vmem:[%s7183_s0 + $0x1c] sm:$0xff] }
 0x506   :  { %v1851_v45 = vsel %vm432_vm12, %v1836_v23, %v4125_v5  ;;  %2130 = vmatprep.subr.bf16.mxu1 %v2019_v15  ;;  %v1794_v17 = vsel %vm368_vm14, %v1781_v20, %v4170_v55  ;;  %v7267_v15 = vmov 0   ;;  %v2991_v46 = vmul.f32 0.015625, %v2875_v51 }
 0x507   :  { %v2023_v61 = vpack.c.bf16 %v1851_v45, %v1821_v34  ;;  %3052 = vrot.lane.b32.xlu0 %v5698_v59, %s4294_s16  ;;  %3077 = vrot.lane.b32.xlu1 %v5753_v35, %s4295_s17  ;;  %v5903_v59 = vld [vmem:[#allocation2] sm:$0xff]  ;;  %v2016_v35 = vpack.c.bf16 %v1794_v17, %v5568_v56 }
 0x509   :  { %2131 = vmatpush1.bf16.msra.mxu1 %v2018_v54  ;;  %v5896_v9 = vpop.permute.xlu1 %4182  ;;  %v4178_v29 = vpop.permute.xlu0 %4177  ;;  %2088 = vmatpush1.bf16.msra.mxu0 %v2023_v61  ;;  %v2781_v54 = vmul.f32 0.140625, %v2777_v28 }
 0x50a   :  { %v4180_v5 = vunpack.i.h.bf16 %v4178_v29  ;;  %v4179_v43 = vunpack.i.l.bf16 %v4178_v29  ;;  %2089 = vmatprep.subr.bf16.mxu0 %v2017_v44  ;;  %3852 = vmatprep.subr.bf16.mxu1 %v5903_v59  ;;  %v4185_v10 = vunpack.i.h.bf16 %v5896_v9  ;;  %v4184_v38 = vunpack.i.l.bf16 %v5896_v9 }
 0x50b   :  { %2965 = vrot.lane.b32.xlu0 %v5751_v49, %s4291_s23  ;;  %3079 = vrot.lane.b32.xlu1 %v5755_v25, %s4295_s17 }
 0x50c   :  { %3568 = vmatmul.mubr.msk.bf16.vlgmr.msra.gmra.mxu1 %vm7261_vm3, %v5901_v27  ;;  %v2007_v41 = vsel %vm587_vm13, %v4179_v43, %v4180_v5  ;;  %v1947_v6 = vsel %vm523_vm1, %v4184_v38, %v4185_v10  ;;  %vm7265_vm3 = vmmov %vm7263_vm8 }
 0x50d   :  { %v1996_v30 = vpop.permute.xlu1 %1995  ;;  %v4188_v11 = vpop.permute.xlu0 %4187  ;;  %2090 = vmatpush1.bf16.msra.mxu0 %v2016_v35  ;;  %v2050_v56 = vpack.c.bf16 %v2007_v41, %v2007_v41  ;;  %3862 = vmatprep.mubr.msk.bf16.mxu1 %vm7262_vm7, %v5903_v59  ;;  %vm7266_vm0 = vmmov %vm7265_vm3  ;;  %v2876_v35 = vmul.f32 0.046875, %v2875_v51 }
 0x50e   :  { %v2005_v12 = vsel %vm587_vm13, %v4134_v50, %v1996_v30  ;;  %v2006_v25 = vsel %vm587_vm13, %v1996_v30, %v4179_v43  ;;  %v4190_v14 = vunpack.i.h.bf16 %v4188_v11  ;;  %v4189_v31 = vunpack.i.l.bf16 %v4188_v11 }
 0x50f   :  { %v2048_v62 = vpack.c.bf16 %v2005_v12, %v2005_v12  ;;  %v2049_v21 = vpack.c.bf16 %v2006_v25, %v2006_v25  ;;  %3000 = vrot.lane.b32.xlu0 %v2990_v63, %s4292_s30  ;;  %3027 = vrot.lane.b32.xlu1 %v5751_v49, %s4293_s15  ;;  %v2073_v2 = vsel %vm7263_vm8, %v2050_v56, 0  ;;  %v2843_v43 = vmul.f32 0.046875, %v2777_v28 }
 0x510   :  { %v1977_v22 = vsel %vm555_vm15, %v4189_v31, %v4190_v14  ;;  %3566 = vmatmul.mubr.msk.bf16.vlgmr.msra.gmra.mxu0 %vm7264_vm2, %v5901_v27  ;;  %3853 = vmatpush3.bf16.msra.mxu1 %v2073_v2 }
 0x511   :  { %v2043_v50 = vpack.c.bf16 %v1977_v22, %v1947_v6  ;;  %v4198_v57 = vpop.permute.xlu1 %4197  ;;  %v4193_v48 = vpop.permute.xlu0 %4192  ;;  %3569 = vmatprep.subr.msk.bf16.mxu0 %vm7265_vm3, %v2049_v21  ;;  %v2067_v32 = vsel %vm7266_vm0, %v2048_v62, 0  ;;  %3854 = vmatprep.subr.bf16.mxu1 %v5903_v59  ;;  %vm7268_vm0 = vmmov %vm7264_vm2 }
 0x512   :  { %v4200_v60 = vunpack.i.h.bf16 %v4198_v57  ;;  %v4199_v55 = vunpack.i.l.bf16 %v4198_v57  ;;  %v4195_v24 = vunpack.i.h.bf16 %v4193_v48  ;;  %v4194_v7 = vunpack.i.l.bf16 %v4193_v48  ;;  %2164 = vmatpush1.bf16.msra.mxu0 %v2067_v32  ;;  %2189 = vmatprep.mubr.bf16.mxu0 %v7267_v15  ;;  %v2283_v15 = vld [vmem:[%s7190_s5 + $0x168] sm:$0xff]  ;;  %vm7269_vm8 = vmmov %vm7268_vm0 }
 0x513   :  { %3054 = vrot.lane.b32.xlu0 %v5751_v49, %s4294_s16  ;;  %3081 = vrot.lane.b32.xlu1 %v2990_v63, %s4295_s17  ;;  %vm7272_vm2 = vmmov %vm7265_vm3 }
 0x514   :  { %v1917_v20 = vsel %vm491_vm4, %v4199_v55, %v4200_v60  ;;  %v1887_v23 = vsel %vm462_vm5, %v4194_v7, %v4195_v24  ;;  %3855 = vmatpush3.bf16.msra.mxu1 %v2043_v50  ;;  %v2299_v24 = vld [vmem:[%s7190_s5 + $0x1e8] sm:$0xff]  ;;  %vm7273_vm3 = vmmov %vm7272_vm2 }
 0x515   :  { %v2036_v34 = vpack.c.bf16 %v1917_v20, %v1887_v23  ;;  %v1966_v45 = vpop.permute.xlu1 %1965  ;;  %v1936_v61 = vpop.permute.xlu0 %1935  ;;  %3856 = vmatprep.subr.bf16.mxu1 %v5903_v59 }
 0x516   :  { %v1975_v49 = vsel %vm555_vm15, %v4145_v16, %v1966_v45  ;;  %v1976_v17 = vsel %vm555_vm15, %v1966_v45, %v4189_v31  ;;  %v1945_v44 = vsel %vm523_vm1, %v4140_v52, %v1936_v61  ;;  %v1946_v9 = vsel %vm523_vm1, %v1936_v61, %v4184_v38  ;;  %v2282_v45 = vld [vmem:[%s7190_s5 + $0x160] sm:$0xff]  ;;  %v2267_v61 = vld [vmem:[%s7190_s5 + $0xe8] sm:$0xff] }
 0x517   :  { %v2041_v29 = vpack.c.bf16 %v1975_v49, %v1945_v44  ;;  %v2042_v5 = vpack.c.bf16 %v1976_v17, %v1946_v9  ;;  %2792 = vrot.lane.b32.xlu0 %v2781_v54, %s4285_s27  ;;  %2819 = vrot.lane.b32.xlu1 %v2781_v54, %s4286_s28  ;;  %v2905_v52 = vmul.f32 0.140625, %v2875_v51  ;;  %v2268_v54 = vld [vmem:[%s7190_s5 + $0xf0] sm:$0xff]  ;;  %v2298_v51 = vld [vmem:[%s7190_s5 + $0x1e0] sm:$0xff] }
 0x518   :  { %3857 = vmatpush3.bf16.msra.mxu1 %v2036_v34  ;;  %v2252_v34 = vld [vmem:[%s7190_s5 + $0x70] sm:$0xff]  ;;  %v2251_v49 = vld [vmem:[%s7190_s5 + $0x68] sm:$0xff]  ;;  %v2281_v17 = vld [vmem:[%s7190_s5 + $0x158] sm:$0xff] }
 0x519   :  { %v1876_v37 = vpop.permute.xlu1 %1875  ;;  %v4203_v63 = vpop.permute.xlu0 %4202  ;;  %2165 = vmatprep.subr.bf16.mxu0 %v2042_v5  ;;  %3858 = vmatprep.subr.bf16.mxu1 %v5903_v59  ;;  %v2266_v44 = vld [vmem:[%s7190_s5 + $0xe0] sm:$0xff]  ;;  %v2296_v5 = vld [vmem:[%s7190_s5 + $0x1d0] sm:$0xff] }
 0x51a   :  { %2166 = vmatpush1.bf16.msra.mxu0 %v2041_v29  ;;  %v4205_v16 = vunpack.i.h.bf16 %v4203_v63  ;;  %v4204_v26 = vunpack.i.l.bf16 %v4203_v63  ;;  %v1885_v10 = vsel %vm462_vm5, %v4150_v13, %v1876_v37  ;;  %v1886_v38 = vsel %vm462_vm5, %v1876_v37, %v4194_v7  ;;  %v2253_v7 = vld [vmem:[%s7190_s5 + $0x78] sm:$0xff]  ;;  %v2295_v63 = vld [vmem:[%s7190_s5 + $0x1c8] sm:$0xff] }
 0x51b   :  { %2854 = vrot.lane.b32.xlu0 %v2843_v43, %s4290_s13  ;;  %2884 = vrot.lane.b32.xlu1 %v2876_v35, %s4283_s25  ;;  %v2250_v43 = vld [vmem:[%s7190_s5 + $0x60] sm:$0xff]  ;;  %v2265_v37 = vld [vmem:[%s7190_s5 + $0xd8] sm:$0xff] }
 0x51c   :  { %v1857_v14 = vsel %vm432_vm12, %v4204_v26, %v4205_v16  ;;  %v2249_v16 = vld [vmem:[%s7190_s5 + $0x58] sm:$0xff] }
 0x51d   :  { %v4208_v41 = vpop.permute.xlu1 %4207  ;;  %v1906_v30 = vpop.permute.xlu0 %1905 }
 0x51e   :  { %v4210_v11 = vunpack.i.h.bf16 %v4208_v41  ;;  %v4209_v56 = vunpack.i.l.bf16 %v4208_v41  ;;  %v1915_v12 = vsel %vm491_vm4, %v4155_v4, %v1906_v30  ;;  %v1916_v25 = vsel %vm491_vm4, %v1906_v30, %v4199_v55  ;;  %v2284_v55 = vld [vmem:[%s7190_s5 + $0x170] sm:$0xff]  ;;  %v2294_v41 = vld [vmem:[%s7190_s5 + $0x1c0] sm:$0xff] }
 0x51f   :  { %v2034_v31 = vpack.c.bf16 %v1915_v12, %v1885_v10  ;;  %v2035_v62 = vpack.c.bf16 %v1916_v25, %v1886_v38  ;;  %2913 = vrot.lane.b32.xlu0 %v2905_v52, %s4279_s1  ;;  %2940 = vrot.lane.b32.xlu1 %v2905_v52, %s4280_s21  ;;  %v2264_v52 = vld [vmem:[%s7190_s5 + $0xd0] sm:$0xff]  ;;  %v2293_v12 = vld [vmem:[%s7190_s5 + $0x1b8] sm:$0xff] }
 0x520   :  { %v2029_v13 = vpack.c.bf16 %v1857_v14, %v4209_v56  ;;  %v1825_v2 = vsel %vm400_vm11, %v4160_v18, %v4210_v11  ;;  %v1826_v4 = vsel %vm400_vm11, %v4210_v11, %v4209_v56  ;;  %v2248_v30 = vld [vmem:[%s7190_s5 + $0x50] sm:$0xff]  ;;  %v2278_v11 = vld [vmem:[%s7190_s5 + $0x140] sm:$0xff]  ;;  %v2263_v56 = vld [vmem:[%s7190_s5 + $0xc8] sm:$0xff] }
 0x521   :  { %v1793_v21 = vpop.permute.xlu1 %1792  ;;  %v1846_v58 = vpop.permute.xlu0 %1845  ;;  %2167 = vmatprep.subr.bf16.mxu0 %v2035_v62  ;;  %v2247_v25 = vld [vmem:[%s7190_s5 + $0x48] sm:$0xff]  ;;  %v2277_v14 = vld [vmem:[%s7190_s5 + $0x138] sm:$0xff] }
 0x522   :  { %v1855_v6 = vsel %vm432_vm12, %v4165_v36, %v1846_v58  ;;  %v1856_v22 = vsel %vm432_vm12, %v1846_v58, %v4204_v26  ;;  %2168 = vmatpush1.bf16.msra.mxu0 %v2034_v31  ;;  %3859 = vmatpush3.bf16.msra.mxu1 %v2029_v13  ;;  %v2022_v8 = vpack.c.bf16 %v1793_v21, %v5614_v33  ;;  %v2301_v33 = vld [vmem:[%s7190_s5 + $0x1f8] sm:$0xff]  ;;  %v2279_v26 = vld [vmem:[%s7190_s5 + $0x148] sm:$0xff]  ;;  %v2262_v31 = vld [vmem:[%s7190_s5 + $0xc0] sm:$0xff] }
 0x523   :  { %v2027_v28 = vpack.c.bf16 %v1855_v6, %v1825_v2  ;;  %v2028_v50 = vpack.c.bf16 %v1856_v22, %v1826_v4  ;;  %2967 = vrot.lane.b32.xlu0 %v2876_v35, %s4291_s23  ;;  %3002 = vrot.lane.b32.xlu1 %v2991_v46, %s4292_s30  ;;  %v2292_v13 = vld [vmem:[%s7190_s5 + $0x1b0] sm:$0xff]  ;;  %v2261_v58 = vld [vmem:[%s7190_s5 + $0xb8] sm:$0xff] }
 0x524   :  { %3860 = vmatprep.subr.bf16.mxu1 %v5903_v59  ;;  %v2276_v2 = vld [vmem:[%s7190_s5 + $0x130] sm:$0xff]  ;;  %v2291_v4 = vld [vmem:[%s7190_s5 + $0x1a8] sm:$0xff]  ;;  %v2245_v6 = vld [vmem:[%s7190_s5 + $0x38] sm:$0xff] }
 0x525   :  { %v5983_v18 = vpop.permute.xlu1 %2662  ;;  %v1791_v57 = vpop.permute.xlu0 %1790  ;;  %2169 = vmatprep.subr.bf16.mxu0 %v2028_v50  ;;  %v2275_v22 = vld [vmem:[%s7190_s5 + $0x128] sm:$0xff] }
 0x526   :  { %v1798_v53 = vsel %vm368_vm14, %v4175_v1, %v1791_v57  ;;  %v1799_v36 = vsel %vm368_vm14, %v1791_v57, %v1793_v21  ;;  %2170 = vmatpush1.bf16.msra.mxu0 %v2027_v28  ;;  %3861 = vmatpush3.bf16.msra.mxu1 %v2022_v8  ;;  %v2246_v21 = vld [vmem:[%s7190_s5 + $0x40] sm:$0xff]  ;;  %v6141_v28 = vld [vmem:[%s7190_s5 + $0xb0] sm:$0xff] }
 0x527   :  { %v2020_v48 = vpack.c.bf16 %v1798_v53, %v5565_v40  ;;  %v2021_v32 = vpack.c.bf16 %v1799_v36, %v5603_v39  ;;  %3029 = vrot.lane.b32.xlu0 %v2876_v35, %s4293_s15  ;;  %3056 = vrot.lane.b32.xlu1 %v2876_v35, %s4294_s16  ;;  %v2300_v40 = vld [vmem:[%s7190_s5 + $0x1f0] sm:$0xff]  ;;  %v2269_v39 = vld [vmem:[%s7190_s5 + $0xf8] sm:$0xff] }
 0x528   :  { %3625 = vmatprep.subr.mxu1 %v2301_v33  ;;  %v2280_v35 = vld [vmem:[%s7190_s5 + $0x150] sm:$0xff]  ;;  %v2290_v57 = vld [vmem:[%s7190_s5 + $0x1a0] sm:$0xff]  ;;  %v6170_v33 = vld [vmem:[%s7190_s5 + $0x28] sm:$0xff] }
 0x529   :  { %v5999_v1 = vpop.permute.xlu1 %2666  ;;  %v6001_v60 = vpop.permute.xlu0 %2664  ;;  %2171 = vmatprep.subr.bf16.mxu0 %v2021_v32  ;;  %3863 = vmatmul.mubr.msk.bf16.vlgmr.msra.gmra.mxu1 %vm7268_vm0, %v5901_v27  ;;  %v6153_v53 = vld [vmem:[%s7190_s5 + $0x30] sm:$0xff]  ;;  %v2274_v36 = vld [vmem:[%s7190_s5 + $0x120] sm:$0xff]  ;;  %v2289_v32 = vld [vmem:[%s7190_s5 + $0x198] sm:$0xff] }
 0x52a   :  { %2172 = vmatpush1.bf16.msra.mxu0 %v2020_v48  ;;  %3626 = vmatpush3.msra.mxu1 %v2285_v47  ;;  %v6161_v48 = vld [vmem:[%s7190_s5 + $0xa8] sm:$0xff]  ;;  %v2273_v47 = vld [vmem:[%s7190_s5 + $0x118] sm:$0xff]  ;;  %vm7274_vm0 = vmmov %vm7272_vm2 }
 0x52b   :  { %3083 = vrot.lane.b32.xlu0 %v2991_v46, %s4295_s17  ;;  %3627 = vmatprep.subr.mxu1 %v2300_v40  ;;  %v6179_v40 = vld [vmem:[%s7190_s5 + $0xa0] sm:$0xff] }
 0x52c   :  { %3590 = vmatprep.subr.mxu0 %v2269_v39  ;;  %3628 = vmatpush3.msra.mxu1 %v2284_v55 }
 0x52d   :  { %v6027_v20 = vpop.permute.xlu1 %2691  ;;  %v6029_v23 = vpop.permute.xlu0 %2689  ;;  %3570 = vmatmul.mubr.msk.bf16.vlgmr.msra.gmra.mxu0 %vm7269_vm8, %v5901_v27  ;;  %3629 = vmatprep.subr.mxu1 %v2299_v24  ;;  %v2297_v27 = vld [vmem:[%s7190_s5 + $0x1d8] sm:$0xff]  ;;  %v2288_v24 = vld [vmem:[%s7190_s5 + $0x190] sm:$0xff]  ;;  %vm7275_vm8 = vmmov %vm7274_vm0 }
 0x52e   :  { %3591 = vmatpush3.msra.mxu0 %v2253_v7  ;;  %3630 = vmatpush3.msra.mxu1 %v2283_v15  ;;  %v6192_v7 = vld [vmem:[%s7190_s5 + $0x20] sm:$0xff] }
 0x52f   :  { %3592 = vmatprep.subr.mxu0 %v2268_v54  ;;  %3631 = vmatprep.subr.mxu1 %v2298_v51  ;;  %v2272_v54 = vld [vmem:[%s7190_s5 + $0x110] sm:$0xff]  ;;  %v2287_v51 = vld [vmem:[%s7190_s5 + $0x188] sm:$0xff] }
 0x530   :  { %3593 = vmatpush3.msra.mxu0 %v2252_v34  ;;  %3632 = vmatpush3.msra.mxu1 %v2282_v45 }
 0x531   :  { %v6057_v9 = vpop.permute.xlu1 %2720  ;;  %v6059_v29 = vpop.permute.xlu0 %2693  ;;  %3594 = vmatprep.subr.mxu0 %v2267_v61  ;;  %3633 = vmatprep.subr.mxu1 %v2297_v27 }
 0x532   :  { %3595 = vmatpush3.msra.mxu0 %v2251_v49  ;;  %3634 = vmatpush3.msra.mxu1 %v2281_v17 }
 0x533   :  { %3596 = vmatprep.subr.mxu0 %v2266_v44  ;;  %3635 = vmatprep.subr.mxu1 %v2296_v5 }
 0x534   :  { %3597 = vmatpush3.msra.mxu0 %v2250_v43  ;;  %3636 = vmatpush3.msra.mxu1 %v2280_v35  ;;  %v2671_v35 = vrot.slane %v6001_v60, 4 }
 0x535   :  { %v6085_v10 = vpop.permute.xlu1 %2724  ;;  %v6087_v38 = vpop.permute.xlu0 %2722  ;;  %3598 = vmatprep.subr.mxu0 %v2265_v37  ;;  %3637 = vmatprep.subr.mxu1 %v2295_v63  ;;  %v6229_v37 = vld [vmem:[%s7190_s5 + $0x98] sm:$0xff]  ;;  %v6234_v63 = vld [vmem:[%s7190_s5 + $0x108] sm:$0xff] }
 0x536   :  { %3599 = vmatpush3.msra.mxu0 %v2249_v16  ;;  %3638 = vmatpush3.msra.mxu1 %v2279_v26  ;;  %v6239_v16 = vld [vmem:[%s7190_s5 + $0x18] sm:$0xff] }
 0x537   :  { %3600 = vmatprep.subr.mxu0 %v2264_v52  ;;  %3639 = vmatprep.subr.mxu1 %v2294_v41  ;;  %v6250_v41 = vld [vmem:[%s7190_s5 + $0x180] sm:$0xff] }
 0x538   :  { %3601 = vmatpush3.msra.mxu0 %v2248_v30  ;;  %3640 = vmatpush3.msra.mxu1 %v2278_v11  ;;  %7270 = vst [vmem:[#allocation5_spill] sm:$0xff] %v6250_v41  ;;  %v6257_v30 = vld [vmem:[%s7190_s5 + $0x90] sm:$0xff]  ;;  %v6262_v11 = vld [vmem:[%s7190_s5 + $0x100] sm:$0xff] }
 0x539   :  { %v6113_v62 = vpop.permute.xlu1 %2749  ;;  %v6115_v46 = vpop.permute.xlu0 %2747  ;;  %3602 = vmatprep.subr.mxu0 %v2263_v56  ;;  %3641 = vmatprep.subr.mxu1 %v2293_v12  ;;  %7271 = vst [vmem:[#allocation14_spill] sm:$0xff] %v6262_v11  ;;  %v6267_v56 = vld [vmem:[%s7190_s5 + $0x10] sm:$0xff] }
 0x53a   :  { %3603 = vmatpush3.msra.mxu0 %v2247_v25  ;;  %3642 = vmatpush3.msra.mxu1 %v2277_v14  ;;  %v2698_v25 = vrot.slane %v6027_v20, 4  ;;  %v2697_v14 = vrot.slane %v6029_v23, 4 }
 0x53b   :  { %3604 = vmatprep.subr.mxu0 %v2262_v31  ;;  %3643 = vmatprep.subr.mxu1 %v2292_v13  ;;  %v6279_v31 = vld [vmem:[%s7190_s5 + $0x88] sm:$0xff] }
 0x53c   :  { %3605 = vmatpush3.msra.mxu0 %v2246_v21  ;;  %3644 = vmatpush3.msra.mxu1 %v2276_v2  ;;  %v6289_v2 = vld [vmem:[%s7190_s5 + $0x8] sm:$0xff] }
 0x53d   :  { %v6143_v50 = vpop.permute.xlu1 %2786  ;;  %v6145_v8 = vpop.permute.xlu0 %2751  ;;  %3606 = vmatprep.subr.mxu0 %v2261_v58  ;;  %3645 = vmatprep.subr.mxu1 %v2291_v4  ;;  %v2672_v58 = vrot.slane %v5999_v1, 4 }
 0x53e   :  { %3607 = vmatpush3.msra.mxu0 %v2245_v6  ;;  %3646 = vmatpush3.msra.mxu1 %v2275_v22  ;;  %v6304_v6 = vld [vmem:[%s7190_s5] sm:$0xff]  ;;  %v2701_v22 = vsel %vm7273_vm3, %v2697_v14, %v2698_v25  ;;  %vm7277_vm3 = vmmov %vm7274_vm0 }
 0x53f   :  { %3608 = vmatprep.subr.mxu0 %v6141_v28  ;;  %3647 = vmatprep.subr.mxu1 %v2290_v57  ;;  %v2728_v57 = vrot.slane %v6057_v9, 4 }
 0x540   :  { %3609 = vmatpush3.msra.mxu0 %v6153_v53  ;;  %3648 = vmatpush3.msra.mxu1 %v2274_v36  ;;  %v2729_v36 = vrot.slane %v6087_v38, 4 }
 0x541   :  { %v6181_v39 = vpop.permute.xlu1 %2788  ;;  %v6183_v55 = vpop.permute.xlu0 %2668  ;;  %3610 = vmatprep.subr.mxu0 %v6161_v48  ;;  %3649 = vmatprep.subr.mxu1 %v2289_v32  ;;  %v6313_v32 = vld [vmem:[%s7190_s5 + $0x2f8] sm:$0xff] }
 0x542   :  { %v7218_v15 = vrot.slane %v6183_v55, 4  ;;  %3611 = vmatpush3.msra.mxu0 %v6170_v33  ;;  %3650 = vmatpush3.msra.mxu1 %v2273_v47 }
 0x543   :  { %3612 = vmatprep.subr.mxu0 %v6179_v40  ;;  %3651 = vmatprep.subr.mxu1 %v2288_v24  ;;  %v2676_v24 = vsel %vm7274_vm0, %v2671_v35, %v2672_v58 }
 0x544   :  { %v2680_v34 = vsel %vm368_vm14, %v6183_v55, %v7218_v15  ;;  %3613 = vmatpush3.msra.mxu0 %v6192_v7  ;;  %3652 = vmatpush3.msra.mxu1 %v2272_v54  ;;  %v2757_v15 = vrot.slane %v6145_v8, 4 }
 0x545   :  { %v2688_v45 = vadd.f32 %v2680_v34, %v5696_v3  ;;  %v6209_v61 = vpop.permute.xlu1 %2695  ;;  %v6211_v27 = vpop.permute.xlu0 %2813  ;;  %3653 = vmatprep.subr.mxu1 %v2287_v51  ;;  %v2670_v3 = vrot.slane %v5983_v18, 4  ;;  %3614 = vmatprep.subr.mxu0 %v6229_v37  ;;  %v2699_v51 = vrot.slane %v6059_v29, 4  ;;  %v2702_v34 = vsel %vm400_vm11, %v6029_v23, %v2701_v22 }
 0x546   :  { %v7217_v49 = vrot.slane %v6209_v61, 4  ;;  %3654 = vmatpush3.msra.mxu1 %v6234_v63  ;;  %3615 = vmatpush3.msra.mxu0 %v6239_v16 }
 0x547   :  { %3655 = vmatprep.subr.mxu1 %v6250_v41  ;;  %3616 = vmatprep.subr.mxu0 %v6257_v30  ;;  %v2674_v12 = vsel %vm7272_vm2, %v2670_v3, %v2671_v35  ;;  %v2755_v3 = vrot.slane %v6115_v46, 4  ;;  %vm7276_vm2 = vmmov %vm7274_vm0 }
 0x548   :  { %v2707_v17 = vsel %vm400_vm11, %v6209_v61, %v7217_v49  ;;  %3656 = vmatpush3.msra.mxu1 %v6262_v11  ;;  %3617 = vmatpush3.msra.mxu0 %v6267_v56  ;;  %v2675_v4 = vsel %vm368_vm14, %v5983_v18, %v2674_v12  ;;  %v2677_v12 = vsel %vm368_vm14, %v6001_v60, %v2676_v24 }
 0x549   :  { %v6218_v44 = vadd.f32 %v2707_v17, %v2688_v45  ;;  %v6220_v5 = vpop.permute.xlu1 %2848  ;;  %v6222_v43 = vpop.permute.xlu0 %2815  ;;  %3866 = vmatprep.subr.mxu1 %v5903_v59  ;;  %3618 = vmatprep.subr.mxu0 %v6279_v31  ;;  %v6296_v59 = vld [vmem:[%s7190_s5 + $0x80] sm:$0xff]  ;;  %v2685_v54 = vadd.f32 %v2675_v4, %v5661_v19  ;;  %v2732_v45 = vsel %vm7275_vm8, %v2728_v57, %v2729_v36  ;;  %v2756_v17 = vrot.slane %v6113_v62, 4  ;;  %vm7278_vm8 = vmmov %vm7274_vm0 }
 0x54a   :  { %3619 = vmatpush3.msra.mxu0 %v6289_v2  ;;  %v2703_v19 = vsel %vm7276_vm2, %v2698_v25, %v2699_v51  ;;  %v2730_v4 = vrot.slane %v6085_v10, 4  ;;  %v2733_v23 = vsel %vm1206_vm10, %v6057_v9, %v2732_v45  ;;  %v2686_v22 = vadd.f32 %v2677_v12, %v5666_v0  ;;  %vm7280_vm2 = vmmov %vm7274_vm0 }
 0x54b   :  { %3620 = vmatprep.subr.mxu0 %v6296_v59  ;;  %v2712_v35 = vadd.f32 %v2702_v34, %v2685_v54  ;;  %v2759_v57 = vsel %vm7277_vm3, %v2755_v3, %v2756_v17  ;;  %v2704_v60 = vsel %vm400_vm11, %v6027_v20, %v2703_v19  ;;  %v2794_v34 = vrot.slane %v6143_v50, 4  ;;  %vm7281_vm3 = vmmov %vm7274_vm0 }
 0x54c   :  { %3621 = vmatpush3.msra.mxu0 %v6304_v6  ;;  %v2734_v25 = vsel %vm7274_vm0, %v2729_v36, %v2730_v4  ;;  %v2760_v9 = vsel %vm432_vm12, %v6115_v46, %v2759_v57  ;;  %v2795_v0 = vrot.slane %v6181_v39, 4  ;;  %v2713_v45 = vadd.f32 %v2704_v60, %v2686_v22 }
 0x54d   :  { %v6241_v26 = vpop.permute.xlu1 %2850  ;;  %v6243_v52 = vpop.permute.xlu0 %2726  ;;  %3660 = vmatprep.subr.mxu0 %v6313_v32  ;;  %v2743_v54 = vadd.f32 %v2733_v23, %v2712_v35  ;;  %v2761_v3 = vsel %vm7278_vm8, %v2756_v17, %v2757_v15  ;;  %v2735_v20 = vsel %vm1206_vm10, %v6087_v38, %v2734_v25  ;;  %v7279_v12 = vrot.slane %v6183_v55, 4  ;;  %vm7284_vm8 = vmmov %vm7274_vm0 }
 0x54e   :  { %v2821_v36 = vrot.slane %v6211_v27, 4  ;;  %v2798_v46 = vsel %vm462_vm5, %v2794_v34, %v6143_v50  ;;  %v2762_v17 = vsel %vm432_vm12, %v6113_v62, %v2761_v3  ;;  %v2799_v22 = vsel %vm7281_vm3, %v2794_v34, %v2795_v0  ;;  %vm7286_vm3 = vmmov %vm7274_vm0 }
 0x54f   :  { %v2678_v19 = vsel %vm7280_vm2, %v2672_v58, %v7279_v12  ;;  %v2770_v41 = vadd.f32 %v2760_v9, %v2743_v54  ;;  %v2822_v38 = vrot.slane %v6222_v43, 4  ;;  %v2731_v55 = vrot.slane %v6243_v52, 4  ;;  %vm7285_vm2 = vmmov %vm7274_vm0 }
 0x550   :  { %v2744_v58 = vadd.f32 %v2735_v20, %v2713_v45  ;;  %v2679_v57 = vsel %vm368_vm14, %v5999_v1, %v2678_v19  ;;  %v2856_v60 = vrot.slane %v6220_v5, 4  ;;  %v7282_v25 = vrot.slane %v6209_v61, 4  ;;  %vm7283_vm14 = vmmov %vm7274_vm0 }
 0x551   :  { %v6281_v13 = vpop.permute.xlu1 %2753  ;;  %v6283_v21 = vpop.permute.xlu0 %2878  ;;  %v2825_v50 = vsel %vm491_vm4, %v2821_v36, %v6211_v27  ;;  %v2857_v62 = vrot.slane %v6241_v26, 4  ;;  %v2809_v45 = vadd.f32 %v2798_v46, %v2770_v41  ;;  %v2800_v1 = vsel %vm462_vm5, %v2799_v22, %v6181_v39 }
 0x552   :  { %v2705_v54 = vsel %vm7274_vm0, %v2699_v51, %v7282_v25  ;;  %v7222_v34 = vrot.slane %v6281_v13, 4  ;;  %v2771_v20 = vadd.f32 %v2762_v17, %v2744_v58  ;;  %v2687_v61 = vadd.f32 %v2679_v57, %v5668_v42 }
 0x553   :  { %v2826_v51 = vsel %vm7283_vm14, %v2821_v36, %v2822_v38  ;;  %v2736_v27 = vsel %vm7284_vm8, %v2730_v4, %v2731_v55  ;;  %v2706_v19 = vsel %vm400_vm11, %v6059_v29, %v2705_v54  ;;  %v2836_v41 = vadd.f32 %v2825_v50, %v2809_v45  ;;  %vm7287_vm11 = vmmov %vm7274_vm0 }
 0x554   :  { %v2860_v46 = vsel %vm1379_vm9, %v2856_v60, %v6220_v5  ;;  %v2886_v39 = vrot.slane %v6283_v21, 4  ;;  %v2861_v42 = vsel %vm7285_vm2, %v2856_v60, %v2857_v62  ;;  %v2763_v36 = vsel %vm7286_vm3, %v2757_v15, %v7222_v34  ;;  %vm7288_vm14 = vmmov %vm7274_vm0 }
 0x555   :  { %v6315_v18 = vpop.permute.xlu1 %2907  ;;  %v6317_v47 = vpop.permute.xlu0 %2880  ;;  %v2827_v5 = vsel %vm491_vm4, %v2826_v51, %v6222_v43  ;;  %v2737_v58 = vsel %vm1206_vm10, %v6085_v10, %v2736_v27  ;;  %v2810_v60 = vadd.f32 %v2800_v1, %v2771_v20  ;;  %v2871_v25 = vadd.f32 %v2860_v46, %v2836_v41  ;;  %vm7289_vm8 = vmmov %vm7274_vm0 }
 0x556   :  { %v2887_v12 = vrot.slane %v6317_v47, 4  ;;  %v2915_v4 = vrot.slane %v6315_v18, 4  ;;  %v2714_v54 = vadd.f32 %v2706_v19, %v2687_v61  ;;  %v2862_v50 = vsel %vm1379_vm9, %v2861_v42, %v6241_v26  ;;  %vm7290_vm2 = vmmov %vm7274_vm0 }
 0x557   :  { %v2890_v45 = vsel %vm523_vm1, %v2886_v39, %v6283_v21  ;;  %v2764_v51 = vsel %vm432_vm12, %v6145_v8, %v2763_v36  ;;  %v2837_v27 = vadd.f32 %v2827_v5, %v2810_v60  ;;  %vm7291_vm3 = vmmov %vm7274_vm0 }
 0x558   :  { %v2891_v15 = vsel %vm7287_vm11, %v2886_v39, %v2887_v12  ;;  %v2919_v20 = vsel %vm555_vm15, %v2915_v4, %v6315_v18  ;;  %v2745_v61 = vadd.f32 %v2737_v58, %v2714_v54  ;;  %v2901_v42 = vadd.f32 %v2890_v45, %v2871_v25 }
 0x559   :  { %v6330_v14 = vpop.permute.xlu1 %2909  ;;  %v6332_v49 = vpop.permute.xlu0 %2790  ;;  %v2892_v21 = vsel %vm523_vm1, %v2891_v15, %v6317_v47  ;;  %v2872_v18 = vadd.f32 %v2862_v50, %v2837_v27  ;;  %vm7292_vm11 = vcmask 531456  }
 0x55a   :  { %v2916_v17 = vrot.slane %v6330_v14, 4  ;;  %v7221_v57 = vrot.slane %v6332_v49, 4  ;;  %v2772_v36 = vadd.f32 %v2764_v51, %v2745_v61  ;;  %v2930_v54 = vadd.f32 %v2919_v20, %v2901_v42 }
 0x55c   :  { %v2920_v1 = vsel %vm7274_vm0, %v2915_v4, %v2916_v17  ;;  %v2801_v8 = vsel %vm7288_vm14, %v2795_v0, %v7221_v57  ;;  %v2902_v0 = vadd.f32 %v2892_v21, %v2872_v18  ;;  %vm7293_vm14 = vcmask 523264  }
 0x55d   :  { %v6343_v24 = vpop.permute.xlu1 %2817  ;;  %v6345_v11 = vpop.permute.xlu0 %2934  ;;  %v2921_v5 = vsel %vm555_vm15, %v2920_v1, %v6330_v14  ;;  %v2802_v57 = vsel %vm462_vm5, %v2801_v8, %v6332_v49 }
 0x55e   :  { %v2942_v10 = vrot.slane %v6345_v11, 4  ;;  %v2823_v4 = vrot.slane %v6343_v24, 4  ;;  %v2931_v61 = vadd.f32 %v2921_v5, %v2902_v0  ;;  %v2811_v18 = vadd.f32 %v2802_v57, %v2772_v36 }
 0x560   :  { %v2946_v58 = vsel %vm587_vm13, %v2942_v10, %v6345_v11  ;;  %v2828_v20 = vsel %vm7290_vm2, %v2822_v38, %v2823_v4  ;;  %vm7295_vm2 = vmmov %vm7274_vm0 }
 0x561   :  { %v6359_v35 = vpop.permute.xlu1 %2961  ;;  %v6361_v23 = vpop.permute.xlu0 %2936  ;;  %v2957_v21 = vadd.f32 %v2946_v58, %v2930_v54 }
 0x562   :  { %v2969_v46 = vrot.slane %v6359_v35, 4  ;;  %v2943_v39 = vrot.slane %v6361_v23, 4 }
 0x564   :  { %v2973_v51 = vsel %vm1531_vm6, %v2969_v46, %v6359_v35  ;;  %v2947_v27 = vsel %vm7289_vm8, %v2942_v10, %v2943_v39  ;;  %vm7294_vm8 = vmmov %vm7274_vm0 }
 0x565   :  { %v6380_v9 = vpop.permute.xlu1 %2963  ;;  %v6382_v3 = vpop.permute.xlu0 %2852  ;;  %v2984_v34 = vadd.f32 %v2973_v51, %v2957_v21  ;;  %v2948_v5 = vsel %vm587_vm13, %v2947_v27, %v6361_v23 }
 0x566   :  { %v2970_v60 = vrot.slane %v6380_v9, 4  ;;  %v2858_v50 = vrot.slane %v6382_v3, 4  ;;  %v2958_v51 = vadd.f32 %v2948_v5, %v2931_v61 }
 0x568   :  { %v2974_v35 = vsel %vm7291_vm3, %v2969_v46, %v2970_v60  ;;  %v2863_v43 = vsel %vm7274_vm0, %v2857_v62, %v2858_v50  ;;  %vm7296_vm3 = vmmov %vm7274_vm0  ;;  %vm7298_vm0 = vcmask 531456  }
 0x569   :  { %v6407_v22 = vpop.permute.xlu1 %2882  ;;  %v2997_v29 = vpop.permute.xlu0 %2996  ;;  %v2975_v26 = vsel %vm1531_vm6, %v2974_v35, %v6380_v9  ;;  %v2738_v9 = vsel %vm1206_vm10, %v6243_v52, %v2731_v55  ;;  %vm7310_vm10 = vcmask 523264  }
 0x56a   :  { %v3004_v15 = vrot.slane %v2997_v29, 4  ;;  %v2888_v8 = vrot.slane %v6407_v22, 4  ;;  %v2985_v35 = vadd.f32 %v2975_v26, %v2958_v51 }
 0x56c   :  { %v3008_v10 = vsel %vm7292_vm11, %v3004_v15, %v2997_v29  ;;  %v2829_v29 = vsel %vm491_vm4, %v2828_v20, %v6343_v24  ;;  %v2893_v62 = vsel %vm7295_vm2, %v2887_v12, %v2888_v8  ;;  %vm7297_vm11 = vcmask 515072  }
 0x56d   :  { %v3024_v19 = vpop.permute.xlu1 %3023  ;;  %v6429_v41 = vpop.permute.xlu0 %2998  ;;  %v3019_v54 = vadd.f32 %v3008_v10, %v2984_v34  ;;  %v2838_v20 = vadd.f32 %v2829_v29, %v2811_v18  ;;  %v2894_v10 = vsel %vm523_vm1, %v2893_v62, %v6407_v22 }
 0x56e   :  { %v3031_v11 = vrot.slane %v3024_v19, 4  ;;  %v3005_v1 = vrot.slane %v6429_v41, 4 }
 0x570   :  { %v3035_v46 = vsel %vm7293_vm14, %v3031_v11, %v3024_v19  ;;  %v3009_v23 = vsel %vm7294_vm8, %v3004_v15, %v3005_v1  ;;  %v2864_v19 = vsel %vm1379_vm9, %v2863_v43, %v6382_v3  ;;  %vm7299_vm14 = vmmov %vm7295_vm2  ;;  %vm7300_vm8 = vcmask 523264  }
 0x571   :  { %v6447_v25 = vpop.permute.xlu1 %3025  ;;  %v6449_v45 = vpop.permute.xlu0 %2911  ;;  %v3046_v21 = vadd.f32 %v3035_v46, %v3019_v54  ;;  %v3010_v47 = vsel %vm7298_vm0, %v3009_v23, %v6429_v41  ;;  %v2873_v43 = vadd.f32 %v2864_v19, %v2838_v20  ;;  %vm7303_vm0 = vcmask 515072  }
 0x572   :  { %v3032_v42 = vrot.slane %v6447_v25, 4  ;;  %v2917_v38 = vrot.slane %v6449_v45, 4  ;;  %v3020_v14 = vadd.f32 %v3010_v47, %v2985_v35 }
 0x573   :  { %v2903_v26 = vadd.f32 %v2894_v10, %v2873_v43 }
 0x574   :  { %v3036_v15 = vsel %vm7296_vm3, %v3031_v11, %v3032_v42  ;;  %v2922_v34 = vsel %vm7299_vm14, %v2916_v17, %v2917_v38  ;;  %vm7301_vm3 = vcmask 506880   ;;  %vm7304_vm14 = vmmov %vm7295_vm2 }
 0x575   :  { %v6474_v57 = vpop.permute.xlu1 %2938  ;;  %v3051_v36 = vpop.permute.xlu0 %3050  ;;  %v3037_v18 = vsel %vm7300_vm8, %v3036_v15, %v6447_v25  ;;  %v2923_v17 = vsel %vm555_vm15, %v2922_v34, %v6449_v45  ;;  %vm7305_vm8 = vmmov %vm7295_vm2 }
 0x576   :  { %v3058_v58 = vrot.slane %v3051_v36, 4  ;;  %v2944_v0 = vrot.slane %v6474_v57, 4  ;;  %v3047_v15 = vadd.f32 %v3037_v18, %v3020_v14 }
 0x578   :  { %v3062_v27 = vsel %vm7297_vm11, %v3058_v58, %v3051_v36  ;;  %v2949_v36 = vsel %vm7295_vm2, %v2943_v39, %v2944_v0  ;;  %vm7302_vm11 = vmmov %vm7295_vm2 }
 0x579   :  { %v3078_v12 = vpop.permute.xlu1 %3077  ;;  %v3053_v61 = vpop.permute.xlu0 %3052  ;;  %v3073_v29 = vadd.f32 %v3062_v27, %v3046_v21  ;;  %v2950_v39 = vsel %vm587_vm13, %v2949_v36, %v6474_v57  ;;  %v2932_v21 = vadd.f32 %v2923_v17, %v2903_v26  ;;  %vm7306_vm2 = vmmov %vm7301_vm3 }
 0x57a   :  { %v3085_v11 = vrot.slane %v3078_v12, 4  ;;  %v3059_v5 = vrot.slane %v3053_v61, 4 }
 0x57c   :  { %v3089_v46 = vsel %vm7301_vm3, %v3085_v11, %v3078_v12  ;;  %v3063_v23 = vsel %vm7302_vm11, %v3058_v58, %v3059_v5  ;;  %v2959_v12 = vadd.f32 %v2950_v39, %v2932_v21  ;;  %vm7307_vm3 = vmmov %vm7305_vm8 }
 0x57d   :  { %v3100_v62 = vadd.f32 %v3089_v46, %v3073_v29  ;;  %v3064_v54 = vsel %vm7303_vm0, %v3063_v23, %v3053_v61  ;;  %v3080_v51 = vpop.permute.xlu1 %3079  ;;  %v6515_v19 = vpop.permute.xlu0 %2965  ;;  %vm7308_vm11 = vmmov %vm7307_vm3  ;;  %vm7309_vm0 = vcmask 531456  }
 0x57e   :  { %v3086_v27 = vrot.slane %v3080_v51, 4  ;;  %v2971_v20 = vrot.slane %v6515_v19, 4  ;;  %v3074_v47 = vadd.f32 %v3064_v54, %v3047_v15 }
 0x57f   :  { %3223 = vrot.lane.b32.xlu0 %v3100_v62, %s4287_s29  ;;  %v3219_v18 = vcombine.high %v3100_v62, %v3100_v62 }
 0x580   :  { %v3090_v58 = vsel %vm7304_vm14, %v3085_v11, %v3086_v27  ;;  %v2976_v34 = vsel %vm7305_vm8, %v2970_v60, %v2971_v20  ;;  %vm7312_vm14 = vmmov %vm7307_vm3 }
 0x581   :  { %v3091_v61 = vsel %vm7306_vm2, %v3090_v58, %v3080_v51  ;;  %v2977_v35 = vsel %vm1531_vm6, %v2976_v34, %v6515_v19  ;;  %v6530_v10 = vpop.permute.xlu1 %3027  ;;  %v6532_v43 = vpop.permute.xlu0 %3000  ;;  %vm7313_vm8 = vmmov %vm7307_vm3 }
 0x582   :  { %v3101_v36 = vadd.f32 %v3091_v61, %v3074_v47  ;;  %v3033_v11 = vrot.slane %v6530_v10, 4  ;;  %v3006_v29 = vrot.slane %v6532_v43, 4  ;;  %v2986_v14 = vadd.f32 %v2977_v35, %v2959_v12 }
 0x584   :  { %v4211_v60 = vpack.i.bf16 %v3101_v36, %v3219_v18  ;;  %v3038_v17 = vsel %vm7307_vm3, %v3032_v42, %v3033_v11  ;;  %v3011_v46 = vsel %vm7308_vm11, %v3005_v1, %v3006_v29  ;;  %v2746_v42 = vadd.f32 %v2738_v9, %v6218_v44  ;;  %vm7317_vm11 = vmmov %vm7313_vm8 }
 0x585   :  { %v3012_v23 = vsel %vm7309_vm0, %v3011_v46, %v6532_v43  ;;  %v6552_v26 = vpop.permute.xlu1 %3081  ;;  %v6554_v52 = vpop.permute.xlu0 %3054  ;;  %v3039_v41 = vsel %vm7310_vm10, %v3038_v17, %v6530_v10  ;;  %v7311_v1 = vrot.slane %v6281_v13, 4  ;;  %vm7314_vm3 = vcmask 515072   ;;  %vm7318_vm0 = vmmov %vm7313_vm8 }
 0x586   :  { %v3021_v55 = vadd.f32 %v3012_v23, %v2986_v14  ;;  %v3087_v62 = vrot.slane %v6552_v26, 4  ;;  %v3060_v25 = vrot.slane %v6554_v52, 4  ;;  %4212 = vrot.lane.b32.xlu1 %v4211_v60, %s4287_s29  ;;  %v3220_v35 = vcombine.high %v3101_v36, %v3101_v36  ;;  %vm7321_vm10 = vmmov %vm7318_vm0 }
 0x587   :  { %v2765_v54 = vsel %vm432_vm12, %v6281_v13, %v7311_v1  ;;  %vm7315_vm12 = vmmov %vm7313_vm8 }
 0x588   :  { %v3092_v51 = vsel %vm7312_vm14, %v3086_v27, %v3087_v62  ;;  %v3048_v15 = vadd.f32 %v3039_v41, %v3021_v55  ;;  %v3065_v39 = vsel %vm7313_vm8, %v3059_v5, %v3060_v25  ;;  %v2773_v61 = vadd.f32 %v2765_v54, %v2746_v42  ;;  %vm7326_vm14 = vmmov %vm7318_vm0 }
 0x589   :  { %v3093_v44 = vsel %vm7306_vm2, %v3092_v51, %v6552_v26  ;;  %v3066_v21 = vsel %vm7314_vm3, %v3065_v39, %v6554_v52  ;;  %v2820_v47 = vpop.permute.xlu1 %2819  ;;  %v2793_v58 = vpop.permute.xlu0 %2792  ;;  %v7316_v5 = vrot.slane %v6332_v49, 4  ;;  %vm7327_vm8 = vcmask 523264   ;;  %vm7329_vm2 = vmmov %vm7318_vm0 }
 0x58a   :  { %v3075_v34 = vadd.f32 %v3066_v21, %v3048_v15  ;;  %v2824_v12 = vrot.slane %v2820_v47, 4  ;;  %v2797_v13 = vrot.slane %v2793_v58, 4 }
 0x58c   :  { %v3102_v18 = vadd.f32 %v3093_v44, %v3075_v34  ;;  %v2830_v27 = vsel %vm7315_vm12, %v2823_v4, %v2824_v12  ;;  %v2803_v9 = vsel %vm7317_vm11, %v7316_v5, %v2797_v13  ;;  %vm7331_vm12 = vcmask 1041408  }
 0x58d   :  { %v2804_v60 = vsel %vm462_vm5, %v2803_v9, %v2793_v58  ;;  %v2885_v14 = vpop.permute.xlu1 %2884  ;;  %v2855_v17 = vpop.permute.xlu0 %2854  ;;  %v2831_v42 = vsel %vm491_vm4, %v2830_v27, %v2820_v47  ;;  %vm7319_vm5 = vmmov %vm7318_vm0  ;;  %vm7336_vm11 = vcmask 932864  }
 0x58e   :  { %v4216_v46 = vpack.i.bf16 %v3102_v18, %v3220_v35  ;;  %v3221_v23 = vcombine.high %v3102_v18, %v3102_v18  ;;  %v2812_v55 = vadd.f32 %v2804_v60, %v2773_v61  ;;  %v2889_v41 = vrot.slane %v2885_v14, 4  ;;  %vm7320_vm4 = vmmov %vm7318_vm0 }
 0x58f   :  { %v2859_v36 = vrot.slane %v2855_v17, 4 }
 0x590   :  { %v2839_v1 = vadd.f32 %v2831_v42, %v2812_v55  ;;  %4217 = vrot.lane.b32.xlu1 %v4216_v46, %s4287_s29  ;;  %3233 = vrot.lane.b32.xlu0 %v3221_v23, %s4287_s29  ;;  %v2895_v49 = vsel %vm7318_vm0, %v2888_v8, %v2889_v41  ;;  %v2349_v42 = vld [vmem:[%s7184_s4] sm:$0xff] }
 0x591   :  { %v2865_v24 = vsel %vm7319_vm5, %v2858_v50, %v2859_v36  ;;  %v2941_v4 = vpop.permute.xlu1 %2940  ;;  %v2914_v54 = vpop.permute.xlu0 %2913  ;;  %v2896_v21 = vsel %vm523_vm1, %v2895_v49, %v2885_v14  ;;  %vm7322_vm1 = vmmov %vm7318_vm0 }
 0x592   :  { %v2866_v51 = vsel %vm1379_vm9, %v2865_v24, %v2855_v17  ;;  %v2945_v15 = vrot.slane %v2941_v4, 4  ;;  %v2918_v39 = vrot.slane %v2914_v54, 4  ;;  %vm7323_vm9 = vmmov %vm7318_vm0  ;;  %v6633_v24 = vld [vmem:[%s7190_s5 + $0x368] sm:$0xff] }
 0x593   :  { %v2874_v44 = vadd.f32 %v2866_v51, %v2839_v1 }
 0x594   :  { %v2924_v47 = vsel %vm7320_vm4, %v2917_v38, %v2918_v39  ;;  %v2951_v22 = vsel %vm7321_vm10, %v2944_v0, %v2945_v15  ;;  %v6644_v15 = vld [vmem:[%s7190_s5 + $0x360] sm:$0xff]  ;;  %v6649_v39 = vld [vmem:[%s7190_s5 + $0x278] sm:$0xff] }
 0x595   :  { %v2904_v3 = vadd.f32 %v2896_v21, %v2874_v44  ;;  %v2925_v50 = vsel %vm555_vm15, %v2924_v47, %v2914_v54  ;;  %v3003_v8 = vpop.permute.xlu1 %3002  ;;  %v2968_v58 = vpop.permute.xlu0 %2967  ;;  %v2952_v61 = vsel %vm587_vm13, %v2951_v22, %v2941_v4  ;;  %vm7324_vm15 = vcmask 531456   ;;  %vm7325_vm13 = vmmov %vm7318_vm0  ;;  %v6636_v4 = vld [vmem:[#allocation2] sm:$0xff]  ;;  %v6655_v44 = vld [vmem:[%s7190_s5 + $0x2f0] sm:$0xff] }
 0x596   :  { %v3007_v34 = vrot.slane %v3003_v8, 4  ;;  %v2972_v12 = vrot.slane %v2968_v58, 4  ;;  %v6661_v47 = vld [vmem:[%s7190_s5 + $0x358] sm:$0xff]  ;;  %v6666_v22 = vld [vmem:[%s7190_s5 + $0x270] sm:$0xff]  ;;  %vm7340_vm0 = vcmask 179200  }
 0x597   :  { %v2933_v13 = vadd.f32 %v2925_v50, %v2904_v3  ;;  %v6673_v3 = vld [vmem:[%s7190_s5 + $0x2e8] sm:$0xff]  ;;  %vm7341_vm5 = vmmov %vm7340_vm0 }
 0x598   :  { %v2978_v45 = vsel %vm7322_vm1, %v2971_v20, %v2972_v12  ;;  %v3013_v38 = vsel %vm7323_vm9, %v3006_v29, %v3007_v34  ;;  %v6692_v34 = vld [vmem:[%s7190_s5 + $0x2e0] sm:$0xff]  ;;  %v6699_v12 = vld [vmem:[%s7190_s5 + $0x348] sm:$0xff]  ;;  %vm7343_vm4 = vmmov %vm7340_vm0 }
 0x599   :  { %v2960_v57 = vadd.f32 %v2952_v61, %v2933_v13  ;;  %v2979_v0 = vsel %vm1531_vm6, %v2978_v45, %v2968_v58  ;;  %v3057_v35 = vpop.permute.xlu1 %3056  ;;  %v3030_v18 = vpop.permute.xlu0 %3029  ;;  %v3014_v60 = vsel %vm7324_vm15, %v3013_v38, %v3003_v8  ;;  %vm7328_vm6 = vmmov %vm7314_vm3  ;;  %vm7330_vm3 = vcmask 506880   ;;  %v6680_v8 = vld [vmem:[%s7190_s5 + $0x350] sm:$0xff]  ;;  %v6685_v58 = vld [vmem:[%s7190_s5 + $0x268] sm:$0xff] }
 0x59a   :  { %v3061_v27 = vrot.slane %v3057_v35, 4  ;;  %v3034_v5 = vrot.slane %v3030_v18, 4  ;;  %v6704_v13 = vld [vmem:[%s7190_s5 + $0x260] sm:$0xff]  ;;  %v6711_v61 = vld [vmem:[%s7190_s5 + $0x2d8] sm:$0xff]  ;;  %vm7346_vm10 = vmmov %vm7340_vm0 }
 0x59b   :  { %v2987_v9 = vadd.f32 %v2979_v0, %v2960_v57  ;;  %v6718_v45 = vld [vmem:[%s7190_s5 + $0x340] sm:$0xff]  ;;  %v6723_v38 = vld [vmem:[%s7190_s5 + $0x258] sm:$0xff]  ;;  %v6730_v57 = vld [vmem:[%s7190_s5 + $0x2d0] sm:$0xff] }
 0x59c   :  { %v3040_v19 = vsel %vm7325_vm13, %v3033_v11, %v3034_v5  ;;  %v3067_v20 = vsel %vm7326_vm14, %v3060_v25, %v3061_v27  ;;  %v4297_v11 = vmov 2   ;;  %v6737_v0 = vld [vmem:[%s7190_s5 + $0x338] sm:$0xff]  ;;  %v6756_v27 = vld [vmem:[%s7190_s5 + $0x330] sm:$0xff]  ;;  %v6761_v5 = vld [vmem:[%s7190_s5 + $0x248] sm:$0xff] }
 0x59d   :  { %v3022_v43 = vadd.f32 %v3014_v60, %v2987_v9  ;;  %v3041_v29 = vsel %vm7327_vm8, %v3040_v19, %v3030_v18  ;;  %v3084_v14 = vpop.permute.xlu0 %3083  ;;  %v3068_v23 = vsel %vm7328_vm6, %v3067_v20, %v3057_v35  ;;  %4221 = vset.pattern.permute.xlu1 %v4297_v11  ;;  %4222 = vset.pattern.permute.xlu0 %v4297_v11  ;;  %v6742_v35 = vld [vmem:[%s7190_s5 + $0x250] sm:$0xff]  ;;  %v6749_v18 = vld [vmem:[%s7190_s5 + $0x2c8] sm:$0xff]  ;;  %v6768_v9 = vld [vmem:[%s7190_s5 + $0x2c0] sm:$0xff] }
 0x59e   :  { %v3088_v17 = vrot.slane %v3084_v14, 4  ;;  %v6775_v60 = vld [vmem:[%s7190_s5 + $0x328] sm:$0xff]  ;;  %v6780_v19 = vld [vmem:[%s7190_s5 + $0x240] sm:$0xff]  ;;  %v6787_v20 = vld [vmem:[%s7190_s5 + $0x2b8] sm:$0xff] }
 0x59f   :  { %v3049_v46 = vadd.f32 %v3041_v29, %v3022_v43  ;;  %v6794_v43 = vld [vmem:[%s7190_s5 + $0x320] sm:$0xff]  ;;  %v6799_v29 = vld [vmem:[%s7190_s5 + $0x238] sm:$0xff]  ;;  %v6851_v11 = vld [vmem:[%s7190_s5 + $0x308] sm:$0xff] }
 0x5a0   :  { %v3094_v55 = vsel %vm7329_vm2, %v3087_v62, %v3088_v17  ;;  %v2348_v62 = vld [vmem:[%s7190_s5 + $0x370] sm:$0x3]  ;;  %v6813_v17 = vld [vmem:[%s7190_s5 + $0x318] sm:$0xff]  ;;  %7334 = vst [vmem:[#allocation3_spill] sm:$0xff] %v6851_v11  ;;  %vm7347_vm1 = vmmov %vm7331_vm12 }
 0x5a1   :  { %v3076_v41 = vadd.f32 %v3068_v23, %v3049_v46  ;;  %v3095_v10 = vsel %vm7330_vm3, %v3094_v55, %v3084_v14  ;;  %v6806_v14 = vld [vmem:[%s7190_s5 + $0x2b0] sm:$0xff]  ;;  %7332 = vst [vmem:[#allocation6_spill] sm:$0xff] %v6813_v17  ;;  %v6825_v23 = vld [vmem:[%s7190_s5 + $0x2a8] sm:$0xff]  ;;  %vm7348_vm9 = vmmov %vm7340_vm0 }
 0x5a2   :  { %v6818_v46 = vld [vmem:[%s7190_s5 + $0x230] sm:$0xff]  ;;  %vm7350_vm15 = vmmov %vm7340_vm0 }
 0x5a3   :  { %v3103_v52 = vadd.f32 %v3095_v10, %v3076_v41  ;;  %v6832_v55 = vld [vmem:[%s7190_s5 + $0x310] sm:$0xff]  ;;  %v6837_v41 = vld [vmem:[%s7190_s5 + $0x228] sm:$0xff]  ;;  %v6844_v10 = vld [vmem:[%s7190_s5 + $0x2a0] sm:$0xff] }
 0x5a4   :  { %7333 = vst [vmem:[#allocation4_spill] sm:$0xff] %v6832_v55  ;;  %vm7355_vm13 = vmmov %vm7340_vm0 }
 0x5a5   :  { %v3222_v25 = vcombine.high %v3103_v52, %v3103_v52  ;;  %3235 = vrot.lane.b32.xlu1 %v3103_v52, %s4287_s29  ;;  %v6856_v52 = vld [vmem:[%s7190_s5 + $0x220] sm:$0xff]  ;;  %vm7357_vm14 = vmmov %vm7336_vm11 }
 0x5a7   :  { %3237 = vrot.lane.b32.xlu0 %v3222_v25, %s4287_s29 }
 0x5a9   :  { %2352 = vperm.xlu1 %4221, %v2349_v42   ;;  %v6863_v42 = vld [vmem:[%s7190_s5 + $0x298] sm:$0xff] }
 0x5cc   :  { %v2150_v26 = vpop.f32.mrf.mxu1 }
 0x5ce   :  { %v2152_v36 = vpop.f32.mrf.mxu1 }
 0x5cf   :  { %2495 = vmatprep.mubr.f32.mxu1 %v2152_v36  ;;  %v6875_v36 = vld [vmem:[%s7190_s5 + $0x218] sm:$0xff] }
 0x5d0   :  { %v2154_v1 = vpop.f32.mrf.mxu1  ;;  %2496 = vmatmul.mubr.f32.vlgmr.msra.gmra.mxu1 %v2150_v26  ;;  %v2109_v49 = vpop.f32.mrf.mxu0  ;;  %v6870_v26 = vld [vmem:[%s7190_s5 + $0x300] sm:$0xff] }
 0x5d1   :  { %3867 = vmatpush3.msk.msra.mxu1 %vm7331_vm12, %v2348_v62  ;;  %3896 = vmatprep.mubr.msk.f32.mxu1 %vm7262_vm7, %v6636_v4  ;;  %7335 = vst [vmem:[#allocation10_spill] sm:$0xff] %v6870_v26  ;;  %v6884_v1 = vld [vmem:[%s7190_s5 + $0x290] sm:$0xff] }
 0x5d2   :  { %3868 = vmatprep.subr.mxu1 %v6636_v4  ;;  %v2155_v54 = vpop.f32.mrf.mxu1  ;;  %v2111_v51 = vpop.f32.mrf.mxu0 }
 0x5d3   :  { %3869 = vmatpush3.msra.mxu1 %v6633_v24  ;;  %2425 = vmatprep.mubr.f32.mxu0 %v2111_v51  ;;  %v6891_v51 = vld [vmem:[%s7190_s5 + $0x210] sm:$0xff] }
 0x5d4   :  { %3870 = vmatprep.subr.mxu1 %v6636_v4  ;;  %v2113_v21 = vpop.f32.mrf.mxu0  ;;  %2426 = vmatmul.mubr.f32.vlgmr.msra.gmra.mxu0 %v2109_v49 }
 0x5d5   :  { %3871 = vmatpush3.msra.mxu1 %v6644_v15  ;;  %3661 = vmatpush3.msra.mxu0 %v6649_v39  ;;  %v4229_v21 = vld [vmem:[%s7190_s5 + $0xf8] sm:$0xff] }
 0x5d6   :  { %3872 = vmatprep.subr.mxu1 %v6636_v4  ;;  %3662 = vmatprep.subr.mxu0 %v6655_v44  ;;  %v2114_v50 = vpop.f32.mrf.mxu0 }
 0x5d7   :  { %3873 = vmatpush3.msra.mxu1 %v6661_v47  ;;  %3663 = vmatpush3.msra.mxu0 %v6666_v22  ;;  %v6900_v50 = vld [vmem:[%s7190_s5 + $0x288] sm:$0xff] }
 0x5d8   :  { %3874 = vmatprep.subr.mxu1 %v6636_v4  ;;  %3664 = vmatprep.subr.mxu0 %v6673_v3 }
 0x5d9   :  { %3875 = vmatpush3.msra.mxu1 %v6680_v8  ;;  %3665 = vmatpush3.msra.mxu0 %v6685_v58 }
 0x5da   :  { %3876 = vmatprep.subr.mxu1 %v6636_v4  ;;  %3666 = vmatprep.subr.mxu0 %v6692_v34 }
 0x5db   :  { %3877 = vmatpush3.msra.mxu1 %v6699_v12  ;;  %3667 = vmatpush3.msra.mxu0 %v6704_v13 }
 0x5dc   :  { %3878 = vmatprep.subr.mxu1 %v6636_v4  ;;  %3668 = vmatprep.subr.mxu0 %v6711_v61 }
 0x5dd   :  { %3879 = vmatpush3.msra.mxu1 %v6718_v45  ;;  %3669 = vmatpush3.msra.mxu0 %v6723_v38 }
 0x5de   :  { %3880 = vmatprep.subr.mxu1 %v6636_v4  ;;  %3670 = vmatprep.subr.mxu0 %v6730_v57 }
 0x5df   :  { %3881 = vmatpush3.msra.mxu1 %v6737_v0  ;;  %3671 = vmatpush3.msra.mxu0 %v6742_v35 }
 0x5e0   :  { %3882 = vmatprep.subr.mxu1 %v6636_v4  ;;  %3672 = vmatprep.subr.mxu0 %v6749_v18 }
 0x5e1   :  { %3883 = vmatpush3.msra.mxu1 %v6756_v27  ;;  %3673 = vmatpush3.msra.mxu0 %v6761_v5 }
 0x5e2   :  { %3884 = vmatprep.subr.mxu1 %v6636_v4  ;;  %3674 = vmatprep.subr.mxu0 %v6768_v9 }
 0x5e3   :  { %3885 = vmatpush3.msra.mxu1 %v6775_v60  ;;  %3675 = vmatpush3.msra.mxu0 %v6780_v19 }
 0x5e4   :  { %3886 = vmatprep.subr.mxu1 %v6636_v4  ;;  %3676 = vmatprep.subr.mxu0 %v6787_v20 }
 0x5e5   :  { %3887 = vmatpush3.msra.mxu1 %v6794_v43  ;;  %3677 = vmatpush3.msra.mxu0 %v6799_v29 }
 0x5e6   :  { %3888 = vmatprep.subr.mxu1 %v6636_v4  ;;  %3678 = vmatprep.subr.mxu0 %v6806_v14 }
 0x5e7   :  { %3889 = vmatpush3.msra.mxu1 %v6813_v17  ;;  %3679 = vmatpush3.msra.mxu0 %v6818_v46  ;;  %v4234_v17 = vld [vmem:[%s7190_s5 + $0x68] sm:$0xff] }
 0x5e8   :  { %3890 = vmatprep.subr.mxu1 %v6636_v4  ;;  %3680 = vmatprep.subr.mxu0 %v6825_v23 }
 0x5e9   :  { %3891 = vmatpush3.msra.mxu1 %v6832_v55  ;;  %3681 = vmatpush3.msra.mxu0 %v6837_v41  ;;  %v2232_v25 = vpop.f32.mrf.mxu1  ;;  %v6927_v55 = vld [vmem:[%s7190_s5 + $0x200] sm:$0xff] }
 0x5ea   :  { %3892 = vmatprep.subr.mxu1 %v6636_v4  ;;  %3682 = vmatprep.subr.mxu0 %v6844_v10  ;;  %7338 = vst [vmem:[#allocation15_spill] sm:$0xff] %v6927_v55 }
 0x5eb   :  { %3893 = vmatpush3.msra.mxu1 %v6851_v11  ;;  %3683 = vmatpush3.msra.mxu0 %v6856_v52  ;;  %v3864_v62 = vpop.f32.mrf.mxu1  ;;  %v6918_v11 = vld [vmem:[%s7190_s5 + $0x280] sm:$0xff] }
 0x5ec   :  { %3894 = vmatprep.subr.mxu1 %v6636_v4  ;;  %3684 = vmatprep.subr.mxu0 %v6863_v42  ;;  %v4230_v62 = vld [vmem:[%s7190_s5 + $0x78] sm:$0xff]  ;;  %7337 = vst [vmem:[#allocation7_spill] sm:$0xff] %v6918_v11 }
 0x5ed   :  { %3895 = vmatpush3.msra.mxu1 %v6870_v26  ;;  %3685 = vmatpush3.msra.mxu0 %v6875_v36  ;;  %v2191_v49 = vpop.f32.mrf.mxu0  ;;  %v2235_v54 = vpop.f32.mrf.mxu1 }
 0x5ee   :  { %3897 = vmatmul.mubr.msk.f32.vlgmr.msra.gmra.mxu1 %vm7336_vm11, %v2232_v25  ;;  %3711 = vmatprep.subr.mxu1 %v4229_v21  ;;  %v6909_v25 = vld [vmem:[%s7190_s5 + $0x208] sm:$0xff]  ;;  %v4231_v21 = vld [vmem:[%s7190_s5 + $0xf0] sm:$0xff] }
 0x5ef   :  { %3686 = vmatprep.subr.mxu0 %v6884_v1  ;;  %3712 = vmatpush3.msra.mxu1 %v4230_v62  ;;  %v2193_v54 = vpop.f32.mrf.mxu0  ;;  %v3865_v26 = vpop.f32.mrf.mxu1 }
 0x5f0   :  { %3687 = vmatpush3.msra.mxu0 %v6891_v51  ;;  %3713 = vmatprep.subr.mxu1 %v4231_v21  ;;  %v4232_v26 = vld [vmem:[%s7190_s5 + $0x70] sm:$0xff]  ;;  %v4233_v21 = vld [vmem:[%s7190_s5 + $0xe8] sm:$0xff] }
 0x5f1   :  { %3688 = vmatprep.subr.mxu0 %v6900_v50  ;;  %3714 = vmatpush3.msra.mxu1 %v4232_v26  ;;  %v2195_v62 = vpop.f32.mrf.mxu0 }
 0x5f2   :  { %3689 = vmatpush3.msra.mxu0 %v6909_v25  ;;  %3715 = vmatprep.subr.mxu1 %v4233_v21  ;;  %v4235_v62 = vld [vmem:[%s7190_s5 + $0xe0] sm:$0xff] }
 0x5f3   :  { %3690 = vmatprep.subr.mxu0 %v6918_v11  ;;  %3716 = vmatpush3.msra.mxu1 %v4234_v17  ;;  %v2196_v26 = vpop.f32.mrf.mxu0  ;;  %v4236_v21 = vld [vmem:[%s7190_s5 + $0x60] sm:$0xff]  ;;  %v4237_v11 = vld [vmem:[%s7190_s5 + $0x1f8] sm:$0xff] }
 0x5f4   :  { %3691 = vmatpush3.msra.mxu0 %v6927_v55  ;;  %2565 = vmatprep.mubr.f32.mxu0 %v2193_v54  ;;  %v4238_v17 = vld [vmem:[%s7190_s5 + $0xd8] sm:$0xff]  ;;  %v4241_v26 = vld [vmem:[%s7190_s5 + $0x1f0] sm:$0xff] }
 0x5f5   :  { %3717 = vmatprep.subr.mxu1 %v4235_v62  ;;  %2566 = vmatmul.mubr.f32.vlgmr.msra.gmra.mxu0 %v2191_v49  ;;  %v4239_v54 = vld [vmem:[%s7190_s5 + $0x178] sm:$0xff]  ;;  %v4242_v62 = vld [vmem:[%s7190_s5 + $0xd0] sm:$0xff] }
 0x5f6   :  { %3718 = vmatpush3.msra.mxu1 %v4236_v21  ;;  %3746 = vmatprep.subr.mxu0 %v4237_v11  ;;  %v4240_v49 = vld [vmem:[%s7190_s5 + $0x58] sm:$0xff]  ;;  %v4243_v21 = vld [vmem:[%s7190_s5 + $0x170] sm:$0xff] }
 0x5f7   :  { %3719 = vmatprep.subr.mxu1 %v4238_v17  ;;  %3747 = vmatpush3.msra.mxu0 %v4239_v54  ;;  %v4248_v54 = vld [vmem:[%s7190_s5 + $0x48] sm:$0xff]  ;;  %v4253_v55 = vld [vmem:[%s7190_s5 + $0x1d8] sm:$0xff] }
 0x5f8   :  { %3720 = vmatpush3.msra.mxu1 %v4240_v49  ;;  %3748 = vmatprep.subr.mxu0 %v4241_v26  ;;  %v6959_v11 = vpop.permute.xlu1 %4212  ;;  %v4244_v49 = vld [vmem:[%s7190_s5 + $0x50] sm:$0xff]  ;;  %v4245_v26 = vld [vmem:[%s7190_s5 + $0x1e8] sm:$0xff] }
 0x5f9   :  { %3721 = vmatprep.subr.mxu1 %v4242_v62  ;;  %3749 = vmatpush3.msra.mxu0 %v4243_v21  ;;  %v4215_v17 = vunpack.i.h.bf16 %v6959_v11  ;;  %v4246_v62 = vld [vmem:[%s7190_s5 + $0xc8] sm:$0xff] }
 0x5fa   :  { %3722 = vmatpush3.msra.mxu1 %v4244_v49  ;;  %3750 = vmatprep.subr.mxu0 %v4245_v26  ;;  %v4247_v21 = vld [vmem:[%s7190_s5 + $0x168] sm:$0xff]  ;;  %v4249_v49 = vld [vmem:[%s7190_s5 + $0x1e0] sm:$0xff]  ;;  %v7339_v26 = vunpack.i.l.bf16 %v6959_v11 }
 0x5fb   :  { %3723 = vmatprep.subr.mxu1 %v4246_v62  ;;  %3751 = vmatpush3.msra.mxu0 %v4247_v21  ;;  %v4250_v21 = vld [vmem:[%s7190_s5 + $0xc0] sm:$0xff] }
 0x5fc   :  { %3724 = vmatpush3.msra.mxu1 %v4248_v54  ;;  %3752 = vmatprep.subr.mxu0 %v4249_v49  ;;  %v3241_v62 = vsel %vm7340_vm0, %v7339_v26, %v4215_v17  ;;  %v4251_v54 = vld [vmem:[%s7190_s5 + $0x160] sm:$0xff]  ;;  %v4254_v26 = vld [vmem:[%s7190_s5 + $0xb8] sm:$0xff] }
 0x5fd   :  { %3725 = vmatprep.subr.mxu1 %v4250_v21  ;;  %3753 = vmatpush3.msra.mxu0 %v4251_v54  ;;  %v4252_v49 = vld [vmem:[%s7190_s5 + $0x40] sm:$0xff]  ;;  %v4255_v21 = vld [vmem:[%s7190_s5 + $0x158] sm:$0xff] }
 0x5fe   :  { %3726 = vmatpush3.msra.mxu1 %v4252_v49  ;;  %3754 = vmatprep.subr.mxu0 %v4253_v55  ;;  %v4256_v54 = vld [vmem:[%s7190_s5 + $0x38] sm:$0xff]  ;;  %v4257_v55 = vld [vmem:[%s7190_s5 + $0x1d0] sm:$0xff] }
 0x5ff   :  { %3727 = vmatprep.subr.mxu1 %v4254_v26  ;;  %3322 = vmatprep.mubr.f32.mxu1 %v3241_v62  ;;  %v4258_v62 = vld [vmem:[%s7190_s5 + $0x150] sm:$0xff]  ;;  %v4259_v26 = vld [vmem:[%s7190_s5 + $0x1c8] sm:$0xff] }
 0x600   :  { %3755 = vmatpush3.msra.mxu0 %v4255_v21  ;;  %3728 = vmatpush3.msra.mxu1 %v4256_v54  ;;  %v4260_v54 = vld [vmem:[%s7190_s5 + $0x148] sm:$0xff] }
 0x601   :  { %3756 = vmatprep.subr.mxu0 %v4257_v55  ;;  %3729 = vmatprep.subr.mxu1 %v6141_v28  ;;  %v4263_v55 = vld [vmem:[%s7190_s5 + $0x1b8] sm:$0xff] }
 0x602   :  { %3757 = vmatpush3.msra.mxu0 %v4258_v62  ;;  %3730 = vmatpush3.msra.mxu1 %v6153_v53  ;;  %v7021_v49 = vpop.permute.xlu1 %4217  ;;  %v4261_v53 = vld [vmem:[%s7190_s5 + $0x1c0] sm:$0xff]  ;;  %v4267_v62 = vld [vmem:[%s7190_s5 + $0x1a8] sm:$0xff] }
 0x603   :  { %3758 = vmatprep.subr.mxu0 %v4259_v26  ;;  %3731 = vmatprep.subr.mxu1 %v6161_v48  ;;  %v4220_v21 = vunpack.i.h.bf16 %v7021_v49  ;;  %v4219_v28 = vunpack.i.l.bf16 %v7021_v49  ;;  %v4262_v48 = vld [vmem:[%s7190_s5 + $0x140] sm:$0xff] }
 0x604   :  { %3759 = vmatpush3.msra.mxu0 %v4260_v54  ;;  %3732 = vmatpush3.msra.mxu1 %v6170_v33  ;;  %v4270_v26 = vld [vmem:[%s7190_s5 + $0x120] sm:$0xff] }
 0x605   :  { %3760 = vmatprep.subr.mxu0 %v4261_v53  ;;  %3733 = vmatprep.subr.mxu1 %v6179_v40  ;;  %v3243_v33 = vsel %vm7341_vm5, %v4219_v28, %v4220_v21  ;;  %v4264_v40 = vld [vmem:[%s7190_s5 + $0x138] sm:$0xff]  ;;  %v4274_v53 = vld [vmem:[%s7190_s5 + $0x110] sm:$0xff] }
 0x606   :  { %3761 = vmatpush3.msra.mxu0 %v4262_v48  ;;  %3734 = vmatpush3.msra.mxu1 %v6192_v7  ;;  %v4265_v7 = vld [vmem:[%s7190_s5 + $0x1b0] sm:$0xff]  ;;  %v4275_v48 = vld [vmem:[%s7190_s5 + $0x188] sm:$0xff] }
 0x607   :  { %3762 = vmatprep.subr.mxu0 %v4263_v55  ;;  %3735 = vmatprep.subr.mxu1 %v6229_v37  ;;  %v4266_v37 = vld [vmem:[%s7190_s5 + $0x130] sm:$0xff] }
 0x608   :  { %3763 = vmatpush3.msra.mxu0 %v4264_v40  ;;  %3736 = vmatpush3.msra.mxu1 %v6239_v16  ;;  %v4268_v16 = vld [vmem:[%s7190_s5 + $0x128] sm:$0xff]  ;;  %v3214_v55 = vld [vmem:[%s7190_s5 + $0x370] sm:$0x3] }
 0x609   :  { %3764 = vmatprep.subr.mxu0 %v4265_v7  ;;  %3737 = vmatprep.subr.mxu1 %v6257_v30  ;;  %v4269_v30 = vld [vmem:[%s7190_s5 + $0x1a0] sm:$0xff] }
 0x60a   :  { %3765 = vmatpush3.msra.mxu0 %v4266_v37  ;;  %3392 = vmatprep.mubr.f32.mxu0 %v3243_v33 }
 0x60b   :  { %3738 = vmatpush3.msra.mxu1 %v6267_v56  ;;  %3766 = vmatprep.subr.mxu0 %v4267_v62  ;;  %v3224_v56 = vpop.permute.xlu0 %3223 }
 0x60c   :  { %3739 = vmatprep.subr.mxu1 %v6279_v31  ;;  %3767 = vmatpush3.msra.mxu0 %v4268_v16  ;;  %v4271_v31 = vld [vmem:[%s7190_s5 + $0x198] sm:$0xff] }
 0x60d   :  { %3740 = vmatpush3.msra.mxu1 %v6289_v2  ;;  %3768 = vmatprep.subr.mxu0 %v4269_v30  ;;  %v7342_v2 = vunpack.i.l.bf16 %v6959_v11 }
 0x60e   :  { %3741 = vmatprep.subr.mxu1 %v6296_v59  ;;  %3769 = vmatpush3.msra.mxu0 %v4270_v26  ;;  %v4272_v59 = vld [vmem:[%s7190_s5 + $0x118] sm:$0xff] }
 0x60f   :  { %3742 = vmatpush3.msra.mxu1 %v6304_v6  ;;  %3770 = vmatprep.subr.mxu0 %v4271_v31  ;;  %v3240_v54 = vsel %vm7343_vm4, %v3224_v56, %v7342_v2  ;;  %v4273_v6 = vld [vmem:[%s7190_s5 + $0x190] sm:$0xff] }
 0x610   :  { %3323 = vmatmul.mubr.f32.vlgmr.msra.gmra.mxu1 %v3240_v54  ;;  %3771 = vmatpush3.msra.mxu0 %v4272_v59 }
 0x611   :  { %3781 = vmatprep.subr.mxu1 %v6313_v32  ;;  %3772 = vmatprep.subr.mxu0 %v4273_v6  ;;  %v7344_v32 = vld [vmem:[#allocation5_spill] sm:$0xff] }
 0x612   :  { %3782 = vmatpush3.msra.mxu1 %v6649_v39  ;;  %3773 = vmatpush3.msra.mxu0 %v4274_v53  ;;  %v7345_v39 = vld [vmem:[#allocation14_spill] sm:$0xff] }
 0x613   :  { %3783 = vmatprep.subr.mxu1 %v6655_v44  ;;  %3774 = vmatprep.subr.mxu0 %v4275_v48  ;;  %v3242_v44 = vsel %vm7346_vm10, %v4215_v17, %v4219_v28 }
 0x614   :  { %3784 = vmatpush3.msra.mxu1 %v6666_v22  ;;  %3775 = vmatpush3.msra.mxu0 %v6234_v63  ;;  %v3234_v22 = vpop.permute.xlu0 %3233 }
 0x615   :  { %3785 = vmatprep.subr.mxu1 %v6673_v3  ;;  %3776 = vmatprep.subr.mxu0 %v7344_v32 }
 0x616   :  { %3786 = vmatpush3.msra.mxu1 %v6685_v58  ;;  %3777 = vmatpush3.msra.mxu0 %v7345_v39  ;;  %v7353_v58 = vld [vmem:[#allocation4_spill] sm:$0xff] }
 0x617   :  { %3787 = vmatprep.subr.mxu1 %v6692_v34  ;;  %3393 = vmatmul.mubr.f32.vlgmr.msra.gmra.mxu0 %v3242_v44  ;;  %v7110_v63 = vpop.permute.xlu1 %3235 }
 0x618   :  { %3788 = vmatpush3.msra.mxu1 %v6704_v13  ;;  %3899 = vmatprep.subr.mxu0 %v6636_v4  ;;  %v3245_v3 = vsel %vm7348_vm9, %v3234_v22, %v7110_v63 }
 0x619   :  { %3789 = vmatprep.subr.mxu1 %v6711_v61  ;;  %3900 = vmatpush3.msk.msra.mxu0 %vm7347_vm1, %v3214_v55  ;;  %v3238_v34 = vpop.permute.xlu0 %3237  ;;  %v7356_v61 = vld [vmem:[#allocation10_spill] sm:$0xff] }
 0x61a   :  { %3790 = vmatpush3.msra.mxu1 %v6723_v38  ;;  %3901 = vmatprep.subr.mxu0 %v6636_v4  ;;  %v3246_v13 = vsel %vm7355_vm13, %v7110_v63, %v3238_v34 }
 0x61b   :  { %3791 = vmatprep.subr.mxu1 %v6730_v57  ;;  %3902 = vmatpush3.msra.mxu0 %v6633_v24  ;;  %v7349_v24 = vld [vmem:[#allocation7_spill] sm:$0xff] }
 0x61c   :  { %3792 = vmatpush3.msra.mxu1 %v6742_v35  ;;  %3903 = vmatprep.subr.mxu0 %v6636_v4 }
 0x61d   :  { %3793 = vmatprep.subr.mxu1 %v6749_v18  ;;  %3462 = vmatprep.mubr.f32.mxu1 %v3245_v3 }
 0x61e   :  { %3904 = vmatpush3.msra.mxu0 %v6644_v15  ;;  %3794 = vmatpush3.msra.mxu1 %v6761_v5  ;;  %v3244_v15 = vsel %vm7350_vm15, %v4220_v21, %v3234_v22 }
 0x61f   :  { %3905 = vmatprep.subr.mxu0 %v6636_v4  ;;  %3795 = vmatprep.subr.mxu1 %v6768_v9 }
 0x620   :  { %3906 = vmatpush3.msra.mxu0 %v6661_v47  ;;  %3796 = vmatpush3.msra.mxu1 %v6780_v19  ;;  %v7351_v47 = vld [vmem:[#allocation6_spill] sm:$0xff] }
 0x621   :  { %3907 = vmatprep.subr.mxu0 %v6636_v4  ;;  %3797 = vmatprep.subr.mxu1 %v6787_v20 }
 0x622   :  { %3908 = vmatpush3.msra.mxu0 %v6680_v8  ;;  %3798 = vmatpush3.msra.mxu1 %v6799_v29  ;;  %v7352_v8 = vld [vmem:[#allocation15_spill] sm:$0xff] }
 0x623   :  { %3909 = vmatprep.subr.mxu0 %v6636_v4  ;;  %3799 = vmatprep.subr.mxu1 %v6806_v14 }
 0x624   :  { %3910 = vmatpush3.msra.mxu0 %v6699_v12  ;;  %3800 = vmatpush3.msra.mxu1 %v6818_v46  ;;  %v7354_v12 = vld [vmem:[#allocation3_spill] sm:$0xff]  ;;  %v2353_v5 = vpop.permute.xlu1 %2352 }
 0x625   :  { %3911 = vmatprep.subr.mxu0 %v6636_v4  ;;  %3801 = vmatprep.subr.mxu1 %v6825_v23 }
 0x626   :  { %3912 = vmatpush3.msra.mxu0 %v6718_v45  ;;  %3802 = vmatpush3.msra.mxu1 %v6837_v41 }
 0x627   :  { %3913 = vmatprep.subr.mxu0 %v6636_v4  ;;  %3803 = vmatprep.subr.mxu1 %v6844_v10 }
 0x628   :  { %3914 = vmatpush3.msra.mxu0 %v6737_v0  ;;  %3804 = vmatpush3.msra.mxu1 %v6856_v52 }
 0x629   :  { %3915 = vmatprep.subr.mxu0 %v6636_v4  ;;  %3805 = vmatprep.subr.mxu1 %v6863_v42 }
 0x62a   :  { %3916 = vmatpush3.msra.mxu0 %v6756_v27  ;;  %3806 = vmatpush3.msra.mxu1 %v6875_v36 }
 0x62b   :  { %3917 = vmatprep.subr.mxu0 %v6636_v4  ;;  %3807 = vmatprep.subr.mxu1 %v6884_v1 }
 0x62c   :  { %3918 = vmatpush3.msra.mxu0 %v6775_v60  ;;  %3808 = vmatpush3.msra.mxu1 %v6891_v51 }
 0x62d   :  { %3919 = vmatprep.subr.mxu0 %v6636_v4  ;;  %3809 = vmatprep.subr.mxu1 %v6900_v50 }
 0x62e   :  { %3920 = vmatpush3.msra.mxu0 %v6794_v43  ;;  %3810 = vmatpush3.msra.mxu1 %v6909_v25 }
 0x62f   :  { %3921 = vmatprep.subr.mxu0 %v6636_v4  ;;  %3811 = vmatprep.subr.mxu1 %v7349_v24 }
 0x630   :  { %3922 = vmatpush3.msra.mxu0 %v7351_v47  ;;  %3812 = vmatpush3.msra.mxu1 %v7352_v8 }
 0x631   :  { %3923 = vmatprep.subr.mxu0 %v6636_v4  ;;  %3463 = vmatmul.mubr.f32.vlgmr.msra.gmra.mxu1 %v3244_v15 }
 0x632   :  { %3924 = vmatpush3.msra.mxu0 %v7353_v58  ;;  %3929 = vmatprep.mubr.msk.f32.mxu0 %vm7262_vm7, %v6636_v4 }
 0x633   :  { %3925 = vmatprep.subr.mxu0 %v6636_v4 }
 0x634   :  { %3926 = vmatpush3.msra.mxu0 %v7354_v12 }
 0x635   :  { %3927 = vmatprep.subr.mxu0 %v6636_v4 }
 0x636   :  { %3928 = vmatpush3.msra.mxu0 %v7356_v61 }
 0x637   :  { %3930 = vmatmul.mubr.msk.f32.vlgmr.msra.gmra.mxu0 %vm7357_vm14, %v3246_v13 }
 0x690   :  { %v3657_v45 = vpop.f32.mrf.mxu1 }
 0x692   :  { %v3658_v57 = vpop.f32.mrf.mxu1 }
 0x693   :  { %v3659_v19 = vadd.f32 %v3658_v57, %v3657_v45 }
 0x694   :  { %v3622_v38 = vpop.f32.mrf.mxu0 }
 0x696   :  { %v3623_v0 = vpop.f32.mrf.mxu0 }
 0x697   :  { %v3624_v18 = vadd.f32 %v3623_v0, %v3622_v38 }
 0x699   :  { %v2428_v9 = vadd.f32 %v3624_v18, %v2353_v5 }
 0x69b   :  { %v2498_v4 = vadd.f32 %v3659_v19, %v2428_v9 }
 0x6ae   :  { %v2637_v35 = vpop.f32.mrf.mxu1 }
 0x6b0   :  { %v3898_v27 = vpop.f32.mrf.mxu1 }
 0x6b5   :  { %v3692_v60 = vpop.f32.mrf.mxu0 }
 0x6b7   :  { %v3693_v20 = vpop.f32.mrf.mxu0 }
 0x6b8   :  { %v3694_v43 = vadd.f32 %v3693_v20, %v3692_v60 }
 0x6ba   :  { %v2568_v29 = vadd.f32 %v3694_v43, %v2498_v4 }
 0x6bc   :  { %v2638_v14 = vadd.f32 %v2637_v35, %v2568_v29 }
 0x6be   :  { %vm2641_vm7 = vcmp.ge.f32.partialorder %v2638_v14, 0.0  ;;  %v2642_v46 = vmul.f32 0.2, %v2638_v14 }
 0x6c0   :  { %v2643_v23 = vsel %vm2641_vm7, %v2638_v14, %v2642_v46 }
 0x6c1   :  { %v2644_v41 = vmul.f32 1.4142135, %v2643_v23 }
 0x6c3   :  { %2645 = vst [vmem:[%s7191_s8] sm:$0xff] %v2644_v41 }
 0x6d0   :  { %v3743_v52 = vpop.f32.mrf.mxu1 }
 0x6d2   :  { %v3744_v36 = vpop.f32.mrf.mxu1 }
 0x6d3   :  { %v3745_v50 = vadd.f32 %v3744_v36, %v3743_v52 }
 0x6d7   :  { %v3778_v10 = vpop.f32.mrf.mxu0 }
 0x6d9   :  { %v3779_v42 = vpop.f32.mrf.mxu0 }
 0x6da   :  { %v3780_v1 = vadd.f32 %v3779_v42, %v3778_v10 }
 0x6dc   :  { %v3395_v11 = vadd.f32 %v3780_v1, %v3745_v50 }
 0x6f1   :  { %v3813_v51 = vpop.f32.mrf.mxu1 }
 0x6f3   :  { %v3814_v25 = vpop.f32.mrf.mxu1 }
 0x6f4   :  { %v3815_v17 = vadd.f32 %v3814_v25, %v3813_v51 }
 0x6f6   :  { %v3465_v49 = vadd.f32 %v3815_v17, %v3395_v11 }
 0x6f7   :  { %v3534_v21 = vpop.f32.mrf.mxu0 }
 0x6f8   :  { %v3535_v28 = vadd.f32 %v3534_v21, %v3465_v49 }
 0x6f9   :  { %v3931_v33 = vpop.f32.mrf.mxu0 }
 0x6fa   :  { %3538 = vst [vmem:[%s7192_s9] sm:$0xf] %v3535_v28 }

</bundles_post_ra>
